<compile_context>
chip_gen: v6e
topology: v6e:2x2x1
jax: 0.10.0
libtpu: 0.0.40
codegen_flags: <defaults>
</compile_context>

<pallas_src>
import functools

import jax
import jax.numpy as jnp
from jax.experimental import pallas as pl
from jax.experimental.pallas import tpu as pltpu

D_IN, D_H1, D_H2, D_H3, D_OUT = 784, 1024, 512, 512, 10
D_IN_PAD = 896    # 7 * 128: K-aligned layer-1 contraction
D_OUT_PAD = 128   # lane-dense padded width of the final layer


def _round_up(x, m):
    return ((x + m - 1) // m) * m


def _vmem_limit_bytes():
    """Per-generation scoped-VMEM limit with headroom for compiler scratch."""
    try:
        cap = pltpu.get_tpu_info().vmem_capacity_bytes
    except Exception:
        cap = 64 * 1024 * 1024  # safe fallback (v7x physical)
    return max(32 * 1024 * 1024, min(int(cap * 5 // 8), 96 * 1024 * 1024))


_VMEM_LIMIT = _vmem_limit_bytes()


def _invariant_spec(shape):
    """BlockSpec for grid-invariant weights/biases: fetched once, single-buffered."""
    idx = lambda i: (0, 0)
    try:
        return pl.BlockSpec(shape, idx, pipeline_mode=pl.Buffered(1))
    except (TypeError, ValueError):
        # Older Pallas without pipeline_mode: fall back to default double-buffering.
        return pl.BlockSpec(shape, idx)


def mlp_kernel(x_ref, w1_ref, b1_ref, w2_ref, b2_ref, w3_ref, b3_ref,
               w4_ref, b4_ref, o_ref):
    # Layer 1: (tb, 896) @ (896, 1024) + (1, 1024), ReLU  (f32 MXU accumulation)
    h = jnp.dot(x_ref[...], w1_ref[...], preferred_element_type=jnp.float32)
    h = jnp.maximum(h + b1_ref[...], 0.0)
    # Layer 2: (tb, 1024) @ (1024, 512) + (1, 512), ReLU
    h = jnp.dot(h.astype(w2_ref.dtype), w2_ref[...], preferred_element_type=jnp.float32)
    h = jnp.maximum(h + b2_ref[...], 0.0)
    # Layer 3: (tb, 512) @ (512, 512) + (1, 512), ReLU
    h = jnp.dot(h.astype(w3_ref.dtype), w3_ref[...], preferred_element_type=jnp.float32)
    h = jnp.maximum(h + b3_ref[...], 0.0)
    # Layer 4 (lane-padded): (tb, 512) @ (512, 128) + (1, 128); cols 10..127 are zero.
    out = jnp.dot(h.astype(w4_ref.dtype), w4_ref[...],
                  preferred_element_type=jnp.float32) + b4_ref[...]
    o_ref[...] = out.astype(o_ref.dtype)


def prepare_params(params, use_bf16=True):
    """One-time weight prep (do this OUTSIDE the per-call path):
      * K-pad W1 rows 784 -> 896 with zeros,
      * lane-pad layer 4 to 128 outputs,
      * optional bf16 cast of all weights (biases stay f32)."""
    w1, b1, w2, b2, w3, b3, w4, b4 = params
    w1p = jnp.pad(w1, ((0, D_IN_PAD - D_IN), (0, 0)))
    w4p = jnp.pad(w4, ((0, 0), (0, D_OUT_PAD - D_OUT)))
    b4p = jnp.pad(b4, ((0, 0), (0, D_OUT_PAD - D_OUT)))
    wdt = jnp.bfloat16 if use_bf16 else jnp.float32
    w1p, w2p, w3p, w4p = (w.astype(wdt) for w in (w1p, w2, w3, w4p))
    b1p, b2p, b3p, b4p = (b.astype(jnp.float32) for b in (b1, b2, b3, b4p))
    return (w1p, b1p, w2p, b2p, w3p, b3p, w4p, b4p)


@functools.partial(jax.jit, static_argnames=("tb",))
def sequential_model(x, prepared_params, tb=512):
    """x: (B, 1, 28, 28) float32 (NCHW). prepared_params: output of prepare_params().
    Returns logits (B, 10) in float32."""
    w1, b1, w2, b2, w3, b3, w4, b4 = prepared_params
    B = x.shape[0]

    x2 = x.reshape(B, -1).astype(w1.dtype)                 # nn.Flatten -> (B, 784)
    x2 = jnp.pad(x2, ((0, 0), (0, D_IN_PAD - D_IN)))       # K-align layer 1 (zeros)

    # Batch tile: multiple of 8; for large B ensure >= 2 grid steps so both v7x TCs work.
    tb_eff = max(8, min(tb, _round_up((B + 1) // 2, 8)))
    Bp = _round_up(B, tb_eff)
    if Bp != B:
        x2 = jnp.pad(x2, ((0, Bp - B), (0, 0)))

    out = pl.pallas_call(
        mlp_kernel,
        out_shape=jax.ShapeDtypeStruct((Bp, D_OUT_PAD), jnp.float32),
        grid_spec=pltpu.PrefetchScalarGridSpec(
            num_scalar_prefetch=0,
            grid=(Bp // tb_eff,),
            in_specs=[
                pl.BlockSpec((tb_eff, D_IN_PAD), lambda i: (i, 0)),   # x tile (double-buffered)
                _invariant_spec((D_IN_PAD, D_H1)),                    # W1 (K-padded)
                _invariant_spec((1, D_H1)),                           # b1
                _invariant_spec((D_H1, D_H2)),                        # W2
                _invariant_spec((1, D_H2)),                           # b2
                _invariant_spec((D_H2, D_H3)),                        # W3
                _invariant_spec((1, D_H3)),                           # b3
                _invariant_spec((D_H3, D_OUT_PAD)),                   # W4 (lane-padded)
                _invariant_spec((1, D_OUT_PAD)),                      # b4 (lane-padded)
            ],
            out_specs=pl.BlockSpec((tb_eff, D_OUT_PAD), lambda i: (i, 0)),
        ),
        compiler_params=pltpu.CompilerParams(
            dimension_semantics=("parallel",),      # batch axis shards across TCs (v7x)
            vmem_limit_bytes=_VMEM_LIMIT,
        ),
    )(x2, w1, b1, w2, b2, w3, b3, w4, b4)
    return out[:B, :D_OUT]


def init_params(key):
    """Deterministic init mimicking nn.Linear default (uniform +-1/sqrt(fan_in)).
    Weights stored transposed, shape (in, out); biases shape (1, out)."""
    dims = [(D_IN, D_H1), (D_H1, D_H2), (D_H2, D_H3), (D_H3, D_OUT)]
    params = []
    for (fin, fout) in dims:
        key, kw, kb = jax.random.split(key, 3)
        bound = 1.0 / jnp.sqrt(jnp.float32(fin))
        w = jax.random.uniform(kw, (fin, fout), jnp.float32, -bound, bound)
        b = jax.random.uniform(kb, (1, fout), jnp.float32, -bound, bound)
        params += [w, b]
    return tuple(params)


def reference_forward(x, params):
    w1, b1, w2, b2, w3, b3, w4, b4 = params
    h = x.reshape(x.shape[0], -1)
    h = jnp.maximum(h @ w1 + b1, 0.0)
    h = jnp.maximum(h @ w2 + b2, 0.0)
    h = jnp.maximum(h @ w3 + b3, 0.0)
    return h @ w4 + b4


if __name__ == "__main__":
    key = jax.random.PRNGKey(0)
    kx, kp = jax.random.split(key)
    # Small MNIST-like input consistent with Flatten -> Linear(784, ...)
    x = jax.random.normal(kx, (2, 1, 28, 28), jnp.float32)
    params = init_params(kp)
    ref = reference_forward(x, params)

    # 1) f32 compute path: tight-tolerance validation.
    p_f32 = prepare_params(params, use_bf16=False)
    out_f32 = jax.block_until_ready(sequential_model(x, p_f32))
    assert out_f32.shape == (2, 10)
    assert jnp.allclose(out_f32, ref, atol=1e-4, rtol=1e-4)

    # 2) default bf16 compute path (MXU-rate), looser tolerance vs f32 reference.
    p_bf16 = prepare_params(params)  # use_bf16=True
    out_bf16 = jax.block_until_ready(sequential_model(x, p_bf16))
    assert out_bf16.shape == (2, 10)
    assert jnp.allclose(out_bf16, ref, atol=5e-2, rtol=5e-2)

    # 3) exercise multi-step grid + batch padding at a still-small shape.
    x20 = jax.random.normal(kx, (20, 1, 28, 28), jnp.float32)
    out20 = jax.block_until_ready(sequential_model(x20, p_bf16))
    assert out20.shape == (20, 10)
    assert jnp.allclose(out20, reference_forward(x20, params), atol=5e-2, rtol=5e-2)

    print("KERNEL_OK")
</pallas_src>

<mosaic_0001>
module attributes {stable_mosaic.version = 11 : i64} {
  func.func @mlp_kernel(%arg0: i32, %arg1: memref<8x896xf32, #tpu.memory_space<vmem>>, %arg2: memref<896x1024xf32, #tpu.memory_space<vmem>>, %arg3: memref<1x1024xf32, #tpu.memory_space<vmem>>, %arg4: memref<1024x512xf32, #tpu.memory_space<vmem>>, %arg5: memref<1x512xf32, #tpu.memory_space<vmem>>, %arg6: memref<512x512xf32, #tpu.memory_space<vmem>>, %arg7: memref<1x512xf32, #tpu.memory_space<vmem>>, %arg8: memref<512x128xf32, #tpu.memory_space<vmem>>, %arg9: memref<1x128xf32, #tpu.memory_space<vmem>>, %arg10: memref<8x128xf32, #tpu.memory_space<vmem>>) attributes {dimension_semantics = [#tpu.dimension_semantics<parallel>], iteration_bounds = array<i64: 1>, scalar_prefetch = 0 : i64, scratch_operands = 0 : i64, tpu.core_type = #tpu.core_type<tc>, window_params = [{transform_indices = @transform_0, window_bounds = array<i64: 8, 896>}, {pipeline_mode = #tpu.pipeline_mode<synchronous>, transform_indices = @transform_1, window_bounds = array<i64: 896, 1024>}, {pipeline_mode = #tpu.pipeline_mode<synchronous>, transform_indices = @transform_2, window_bounds = array<i64: 1, 1024>}, {pipeline_mode = #tpu.pipeline_mode<synchronous>, transform_indices = @transform_3, window_bounds = array<i64: 1024, 512>}, {pipeline_mode = #tpu.pipeline_mode<synchronous>, transform_indices = @transform_4, window_bounds = array<i64: 1, 512>}, {pipeline_mode = #tpu.pipeline_mode<synchronous>, transform_indices = @transform_5, window_bounds = array<i64: 512, 512>}, {pipeline_mode = #tpu.pipeline_mode<synchronous>, transform_indices = @transform_6, window_bounds = array<i64: 1, 512>}, {pipeline_mode = #tpu.pipeline_mode<synchronous>, transform_indices = @transform_7, window_bounds = array<i64: 512, 128>}, {pipeline_mode = #tpu.pipeline_mode<synchronous>, transform_indices = @transform_8, window_bounds = array<i64: 1, 128>}, {transform_indices = @transform_9, window_bounds = array<i64: 8, 128>}]} {
    %c0 = arith.constant 0 : index
    %c0_0 = arith.constant 0 : index
    %0 = vector.load %arg1[%c0, %c0_0] : memref<8x896xf32, #tpu.memory_space<vmem>>, vector<8x896xf32>
    %c0_1 = arith.constant 0 : index
    %c0_2 = arith.constant 0 : index
    %1 = vector.load %arg2[%c0_1, %c0_2] : memref<896x1024xf32, #tpu.memory_space<vmem>>, vector<896x1024xf32>
    %cst = arith.constant dense<0.000000e+00> : vector<8x1024xf32>
    %2 = tpu.matmul %0, %1, %cst {dimension_numbers = #tpu.dot_dimension_numbers<[1], [0], [0], [1], [0, 0, 1, 1], [], []>} : vector<8x896xf32>, vector<896x1024xf32>, vector<8x1024xf32> -> vector<8x1024xf32>
    %c0_3 = arith.constant 0 : index
    %c0_4 = arith.constant 0 : index
    %3 = vector.load %arg3[%c0_3, %c0_4] : memref<1x1024xf32, #tpu.memory_space<vmem>>, vector<1x1024xf32>
    %4 = vector.broadcast %3 : vector<1x1024xf32> to vector<8x1024xf32>
    %5 = arith.addf %2, %4 : vector<8x1024xf32>
    %cst_5 = arith.constant 0.000000e+00 : f32
    %6 = vector.broadcast %cst_5 : f32 to vector<8x1024xf32>
    %7 = arith.maximumf %5, %6 : vector<8x1024xf32>
    %c0_6 = arith.constant 0 : index
    %c0_7 = arith.constant 0 : index
    %8 = vector.load %arg4[%c0_6, %c0_7] : memref<1024x512xf32, #tpu.memory_space<vmem>>, vector<1024x512xf32>
    %cst_8 = arith.constant dense<0.000000e+00> : vector<8x512xf32>
    %9 = tpu.matmul %7, %8, %cst_8 {dimension_numbers = #tpu.dot_dimension_numbers<[1], [0], [0], [1], [0, 0, 1, 1], [], []>} : vector<8x1024xf32>, vector<1024x512xf32>, vector<8x512xf32> -> vector<8x512xf32>
    %c0_9 = arith.constant 0 : index
    %c0_10 = arith.constant 0 : index
    %10 = vector.load %arg5[%c0_9, %c0_10] : memref<1x512xf32, #tpu.memory_space<vmem>>, vector<1x512xf32>
    %11 = vector.broadcast %10 : vector<1x512xf32> to vector<8x512xf32>
    %12 = arith.addf %9, %11 : vector<8x512xf32>
    %cst_11 = arith.constant 0.000000e+00 : f32
    %13 = vector.broadcast %cst_11 : f32 to vector<8x512xf32>
    %14 = arith.maximumf %12, %13 : vector<8x512xf32>
    %c0_12 = arith.constant 0 : index
    %c0_13 = arith.constant 0 : index
    %15 = vector.load %arg6[%c0_12, %c0_13] : memref<512x512xf32, #tpu.memory_space<vmem>>, vector<512x512xf32>
    %cst_14 = arith.constant dense<0.000000e+00> : vector<8x512xf32>
    %16 = tpu.matmul %14, %15, %cst_14 {dimension_numbers = #tpu.dot_dimension_numbers<[1], [0], [0], [1], [0, 0, 1, 1], [], []>} : vector<8x512xf32>, vector<512x512xf32>, vector<8x512xf32> -> vector<8x512xf32>
    %c0_15 = arith.constant 0 : index
    %c0_16 = arith.constant 0 : index
    %17 = vector.load %arg7[%c0_15, %c0_16] : memref<1x512xf32, #tpu.memory_space<vmem>>, vector<1x512xf32>
    %18 = vector.broadcast %17 : vector<1x512xf32> to vector<8x512xf32>
    %19 = arith.addf %16, %18 : vector<8x512xf32>
    %cst_17 = arith.constant 0.000000e+00 : f32
    %20 = vector.broadcast %cst_17 : f32 to vector<8x512xf32>
    %21 = arith.maximumf %19, %20 : vector<8x512xf32>
    %c0_18 = arith.constant 0 : index
    %c0_19 = arith.constant 0 : index
    %22 = vector.load %arg8[%c0_18, %c0_19] : memref<512x128xf32, #tpu.memory_space<vmem>>, vector<512x128xf32>
    %cst_20 = arith.constant dense<0.000000e+00> : vector<8x128xf32>
    %23 = tpu.matmul %21, %22, %cst_20 {dimension_numbers = #tpu.dot_dimension_numbers<[1], [0], [0], [1], [0, 0, 1, 1], [], []>} : vector<8x512xf32>, vector<512x128xf32>, vector<8x128xf32> -> vector<8x128xf32>
    %c0_21 = arith.constant 0 : index
    %c0_22 = arith.constant 0 : index
    %24 = vector.load %arg9[%c0_21, %c0_22] : memref<1x128xf32, #tpu.memory_space<vmem>>, vector<1x128xf32>
    %25 = vector.broadcast %24 : vector<1x128xf32> to vector<8x128xf32>
    %26 = arith.addf %23, %25 : vector<8x128xf32>
    %c0_23 = arith.constant 0 : index
    %c0_24 = arith.constant 0 : index
    %27 = vector.load %arg10[%c0_23, %c0_24] : memref<8x128xf32, #tpu.memory_space<vmem>>, vector<8x128xf32>
    tpu.vector_store %arg10[%c0_23, %c0_24], %26 {strides = array<i32>} : memref<8x128xf32, #tpu.memory_space<vmem>>, vector<8x128xf32>,
    return
  }
  func.func @transform_0(%arg0: i32) -> (i32, i32) {
    %c0_i32 = arith.constant 0 : i32
    %c0_i32_0 = arith.constant 0 : i32
    return %arg0, %c0_i32 : i32, i32
  }
  func.func @transform_1(%arg0: i32) -> (i32, i32) {
    %c0_i32 = arith.constant 0 : i32
    %c0_i32_0 = arith.constant 0 : i32
    %c0_i32_1 = arith.constant 0 : i32
    return %c0_i32, %c0_i32_0 : i32, i32
  }
  func.func @transform_2(%arg0: i32) -> (i32, i32) {
    %c0_i32 = arith.constant 0 : i32
    %c0_i32_0 = arith.constant 0 : i32
    %c0_i32_1 = arith.constant 0 : i32
    return %c0_i32, %c0_i32_0 : i32, i32
  }
  func.func @transform_3(%arg0: i32) -> (i32, i32) {
    %c0_i32 = arith.constant 0 : i32
    %c0_i32_0 = arith.constant 0 : i32
    %c0_i32_1 = arith.constant 0 : i32
    return %c0_i32, %c0_i32_0 : i32, i32
  }
  func.func @transform_4(%arg0: i32) -> (i32, i32) {
    %c0_i32 = arith.constant 0 : i32
    %c0_i32_0 = arith.constant 0 : i32
    %c0_i32_1 = arith.constant 0 : i32
    return %c0_i32, %c0_i32_0 : i32, i32
  }
  func.func @transform_5(%arg0: i32) -> (i32, i32) {
    %c0_i32 = arith.constant 0 : i32
    %c0_i32_0 = arith.constant 0 : i32
    %c0_i32_1 = arith.constant 0 : i32
    return %c0_i32, %c0_i32_0 : i32, i32
  }
  func.func @transform_6(%arg0: i32) -> (i32, i32) {
    %c0_i32 = arith.constant 0 : i32
    %c0_i32_0 = arith.constant 0 : i32
    %c0_i32_1 = arith.constant 0 : i32
    return %c0_i32, %c0_i32_0 : i32, i32
  }
  func.func @transform_7(%arg0: i32) -> (i32, i32) {
    %c0_i32 = arith.constant 0 : i32
    %c0_i32_0 = arith.constant 0 : i32
    %c0_i32_1 = arith.constant 0 : i32
    return %c0_i32, %c0_i32_0 : i32, i32
  }
  func.func @transform_8(%arg0: i32) -> (i32, i32) {
    %c0_i32 = arith.constant 0 : i32
    %c0_i32_0 = arith.constant 0 : i32
    %c0_i32_1 = arith.constant 0 : i32
    return %c0_i32, %c0_i32_0 : i32, i32
  }
  func.func @transform_9(%arg0: i32) -> (i32, i32) {
    %c0_i32 = arith.constant 0 : i32
    %c0_i32_0 = arith.constant 0 : i32
    return %arg0, %c0_i32 : i32, i32
  }
}

</mosaic_0001>

<bundles_post_ra>
// kernel: sequential_model.1
= control target key start
LH: loop header
LB: loop body
LE: loop exit
PB: predicated region body
PF: predicated region fallthrough
CT: control target
= control target key end

     0   :  { %14 = vsyncpa [#allocation3], 0  ;;  %s4727_s0 = inlined_call_operand.vmem [shape: f32[8,896], index: 0, kind: input, shape index: {}]   ;;  %s4728_s1 = inlined_call_operand.hbm [shape: f32[896,1024], index: 1, kind: input, shape index: {}]   ;;  %s4729_s2 = inlined_call_operand.hbm [shape: f32[1,1024], index: 2, kind: input, shape index: {}]   ;;  %s4730_s3 = inlined_call_operand.hbm [shape: f32[1024,512], index: 3, kind: input, shape index: {}]   ;;  %s4731_s4 = inlined_call_operand.hbm [shape: f32[1,512], index: 4, kind: input, shape index: {}]   ;;  %s4732_s5 = inlined_call_operand.hbm [shape: f32[512,512], index: 5, kind: input, shape index: {}]   ;;  %s4733_s6 = inlined_call_operand.hbm [shape: f32[1,512], index: 6, kind: input, shape index: {}]   ;;  %s4734_s7 = inlined_call_operand.hbm [shape: f32[512,128], index: 7, kind: input, shape index: {}]   ;;  %s4735_s8 = inlined_call_operand.hbm [shape: f32[1,128], index: 8, kind: input, shape index: {}]   ;;  %s4736_s9 = inlined_call_operand.vmem [shape: f32[8,128], index: 9, kind: output, shape index: {}]  }
   0x1   :  { %15 = vsyncpa [#allocation5], 0 }
   0x2   :  { %16 = vsyncpa [#allocation8], 0 }
   0x3   :  { %17 = vsyncpa [#allocation11], 0 }
   0x4   :  { %18 = vsyncpa [#allocation14], 0  ;;  %s4383_s30 = smov [#allocation4]   ;;  %s4384_s11 = smov [#allocation7]  }
   0x5   :  { %s39_s10 = sshll.u32 %s4383_s30, 4  ;;  %s61_s12 = sshll.u32 %s4384_s11, 4  ;;  %s40_s10 = int_to_ptr.vmem [resolvable:$true] %s39_s10  ;;  %s62_s12 = int_to_ptr.vmem [resolvable:$true] %s61_s12 }
   0x6   :  { %s4221_s13 = scalar_lea.vmem %s40_s10, 128  ;;  %p4226_p1 = scmp.lt.s32.totalorder %s40_s10, %s40_s10 }
   0x7   :  { %p4222_p0 = scmp.ne.s32.totalorder %s40_s10, %s4221_s13  ;;  %p4227_p2 = scmp.lt.s32.totalorder %s4221_s13, %s4221_s13 }
   0x9   :  { %p4228_p3 = por %p4227_p2, %p4226_p1 }
   0xb   :  { %p4229_p4 = pnand %p4228_p3, %p4222_p0 }
   0xd   :  { %4232 = shalt.err (!%p4229_p4)
}
   0xe   :  { %42 = dma.hbm_to_vmem [thread:$0]  %s4729_s2, 128, %s40_s10, [#allocation5]  }
   0xf   :  { %s4241_s16 = scalar_lea.vmem %s62_s12, 64  ;;  %p4246_p6 = scmp.lt.s32.totalorder %s62_s12, %s62_s12 }
  0x10   :  { %p4242_p5 = scmp.ne.s32.totalorder %s62_s12, %s4241_s16  ;;  %p4247_p7 = scmp.lt.s32.totalorder %s4241_s16, %s4241_s16 }
  0x12   :  { %p4248_p8 = por %p4247_p7, %p4246_p6 }
  0x14   :  { %p4249_p9 = pnand %p4248_p8, %p4242_p5 }
  0x16   :  { %4252 = shalt.err (!%p4249_p9)
}
  0x17   :  { %64 = dma.hbm_to_vmem [thread:$0]  %s4731_s4, 64, %s62_s12, [#allocation8]  }
  0x18   :  { %s4385_s19 = smov [#allocation10]   ;;  %s4386_s21 = smov [#allocation2]  }
  0x19   :  { %s83_s20 = sshll.u32 %s4385_s19, 4  ;;  %s26_s22 = sshll.u32 %s4386_s21, 4  ;;  %s84_s20 = int_to_ptr.vmem [resolvable:$true] %s83_s20  ;;  %s27_s22 = int_to_ptr.vmem [resolvable:$true] %s26_s22 }
  0x1a   :  { %s4261_s23 = scalar_lea.vmem %s84_s20, 64  ;;  %p4266_p11 = scmp.lt.s32.totalorder %s84_s20, %s84_s20 }
  0x1b   :  { %p4262_p10 = scmp.ne.s32.totalorder %s84_s20, %s4261_s23  ;;  %p4267_p12 = scmp.lt.s32.totalorder %s4261_s23, %s4261_s23 }
  0x1d   :  { %p4268_p13 = por %p4267_p12, %p4266_p11 }
  0x1f   :  { %p4269_p0 = pnand %p4268_p13, %p4262_p10 }
  0x21   :  { %4272 = shalt.err (!%p4269_p0)
}
  0x22   :  { %86 = dma.hbm_to_vmem [thread:$0]  %s4733_s6, 64, %s84_s20, [#allocation11]  }
  0x23   :  { %s4281_s25 = scalar_lea.vmem %s27_s22, 114688  ;;  %p4286_p2 = scmp.lt.s32.totalorder %s27_s22, %s27_s22 }
  0x24   :  { %p4282_p1 = scmp.ne.s32.totalorder %s27_s22, %s4281_s25  ;;  %p4287_p3 = scmp.lt.s32.totalorder %s4281_s25, %s4281_s25 }
  0x26   :  { %p4288_p4 = por %p4287_p3, %p4286_p2 }
  0x28   :  { %p4289_p5 = pnand %p4288_p4, %p4282_p1 }
  0x2a   :  { %4292 = shalt.err (!%p4289_p5)
}
  0x2b   :  { %s4387_s4 = smov 1024   ;;  %s4388_s26 = smov 64  }
  0x2c   :  { %32 = dma.hbm_to_vmem [thread:$0]  %s4728_s1, 114688, %s27_s22, [#allocation3], %s4387_s4, %s4387_s4, %s4388_s26  }
  0x2d   :  { %s4389_s29 = smov [#allocation6]  }
  0x2e   :  { %s48_s30 = sshll.u32 %s4389_s29, 4  ;;  %s49_s30 = int_to_ptr.vmem [resolvable:$true] %s48_s30 }
  0x2f   :  { %s4301_s10 = scalar_lea.vmem %s49_s30, 65536  ;;  %p4306_p7 = scmp.lt.s32.totalorder %s49_s30, %s49_s30 }
  0x30   :  { %p4302_p6 = scmp.ne.s32.totalorder %s49_s30, %s4301_s10  ;;  %p4307_p8 = scmp.lt.s32.totalorder %s4301_s10, %s4301_s10 }
  0x32   :  { %p4308_p9 = por %p4307_p8, %p4306_p7 }
  0x34   :  { %p4309_p10 = pnand %p4308_p9, %p4302_p6 }
  0x36   :  { %4312 = shalt.err (!%p4309_p10)
}
  0x37   :  { %s4390_s6 = smov 512   ;;  %s4391_s11 = smov 32  }
  0x38   :  { %54 = dma.hbm_to_vmem [thread:$0]  %s4730_s3, 65536, %s49_s30, [#allocation5], %s4390_s6, %s4390_s6, %s4391_s11  }
  0x39   :  { %s4392_s14 = smov [#allocation9]   ;;  %s4393_s1 = smov [#allocation12]  }
  0x3a   :  { %s70_s15 = sshll.u32 %s4392_s14, 4  ;;  %s92_s16 = sshll.u32 %s4393_s1, 4  ;;  %s71_s15 = int_to_ptr.vmem [resolvable:$true] %s70_s15  ;;  %s93_s16 = int_to_ptr.vmem [resolvable:$true] %s92_s16 }
  0x3b   :  { %s4321_s17 = scalar_lea.vmem %s71_s15, 32768  ;;  %p4326_p12 = scmp.lt.s32.totalorder %s71_s15, %s71_s15 }
  0x3c   :  { %p4322_p11 = scmp.ne.s32.totalorder %s71_s15, %s4321_s17  ;;  %p4327_p13 = scmp.lt.s32.totalorder %s4321_s17, %s4321_s17 }
  0x3e   :  { %p4328_p0 = por %p4327_p13, %p4326_p12 }
  0x40   :  { %p4329_p1 = pnand %p4328_p0, %p4322_p11 }
  0x42   :  { %4332 = shalt.err (!%p4329_p1)
}
  0x43   :  { %76 = dma.hbm_to_vmem [thread:$0]  %s4732_s5, 32768, %s71_s15, [#allocation8], %s4390_s6, %s4390_s6, %s4391_s11  }
  0x44   :  { %s4341_s20 = scalar_lea.vmem %s93_s16, 8192  ;;  %p4346_p3 = scmp.lt.s32.totalorder %s93_s16, %s93_s16 }
  0x45   :  { %p4342_p2 = scmp.ne.s32.totalorder %s93_s16, %s4341_s20  ;;  %p4347_p4 = scmp.lt.s32.totalorder %s4341_s20, %s4341_s20 }
  0x47   :  { %p4348_p5 = por %p4347_p4, %p4346_p3 }
  0x49   :  { %p4349_p6 = pnand %p4348_p5, %p4342_p2 }
  0x4b   :  { %4352 = shalt.err (!%p4349_p6)
}
  0x4c   :  { %s4394_s3 = smov 128   ;;  %s4395_s21 = smov 8  }
  0x4d   :  { %98 = dma.hbm_to_vmem [thread:$0]  %s4734_s7, 8192, %s93_s16, [#allocation11], %s4394_s3, %s4394_s3, %s4395_s21  }
  0x4e   :  { %s4396_s2 = smov [#allocation13]  }
  0x4f   :  { %s105_s24 = sshll.u32 %s4396_s2, 4  ;;  %s106_s24 = int_to_ptr.vmem [resolvable:$true] %s105_s24 }
  0x50   :  { %s4361_s25 = scalar_lea.vmem %s106_s24, 16  ;;  %s4365_s5 = scalar_lea.vmem %s106_s24, 32 }
  0x51   :  { %p4362_p7 = scmp.ne.s32.totalorder %s106_s24, %s4361_s25  ;;  %p4366_p8 = scmp.lt.s32.totalorder %s106_s24, %s106_s24 }
  0x52   :  { %p4367_p9 = scmp.lt.s32.totalorder %s4365_s5, %s4361_s25 }
  0x54   :  { %p4368_p10 = por %p4367_p9, %p4366_p8 }
  0x56   :  { %p4369_p11 = pnand %p4368_p10, %p4362_p7 }
  0x58   :  { %4372 = shalt.err (!%p4369_p11)
}
  0x59   :  { %108 = dma.hbm_to_vmem [thread:$0]  %s4735_s8, 16, %s106_s24, [#allocation14]  }
  0x5a   :  { %4373 = dma.done.wait [#allocation3], 114688  }
  0x5b   :  { %4374 = vsyncadd [#allocation3], 4294852608 }
  0x5c   :  { %4375 = dma.done.wait [#allocation5], 65664  }
  0x5d   :  { %4376 = vsyncadd [#allocation5], 4294901632 }
  0x5e   :  { %4377 = dma.done.wait [#allocation8], 32832  }
  0x5f   :  { %4378 = vsyncadd [#allocation8], 4294934464 }
  0x60   :  { %4379 = dma.done.wait [#allocation11], 8256  }
  0x61   :  { %4380 = vsyncadd [#allocation11], 4294959040 }
  0x62   :  { %4381 = dma.done.wait [#allocation14], 16  }
  0x63   :  { %4382 = vsyncadd [#allocation14], 4294967280  ;;  %v261_v0 = vld [vmem:[#allocation2 + $0x3c8] sm:$0xff]  ;;  %v260_v2 = vld [vmem:[#allocation2 + $0x3c0] sm:$0xff] }
  0x64   :  { %v517_v1 = vld [vmem:[#allocation2 + $0xbc8] sm:$0xff]  ;;  %1078 = vmatprep.subr.mxu0 %v261_v0  ;;  %v516_v3 = vld [vmem:[#allocation2 + $0xbc0] sm:$0xff] }
  0x65   :  { %1149 = vmatprep.subr.mxu1 %v517_v1  ;;  %v253_v4 = vld [vmem:[#allocation2 + $0x388] sm:$0xff]  ;;  %1079 = vmatpush1.msra.mxu0 %v260_v2  ;;  %v252_v6 = vld [vmem:[#allocation2 + $0x380] sm:$0xff] }
  0x66   :  { %v509_v5 = vld [vmem:[#allocation2 + $0xb88] sm:$0xff]  ;;  %1150 = vmatpush1.msra.mxu1 %v516_v3  ;;  %v508_v7 = vld [vmem:[#allocation2 + $0xb80] sm:$0xff]  ;;  %1080 = vmatprep.subr.mxu0 %v253_v4 }
  0x67   :  { %v245_v8 = vld [vmem:[#allocation2 + $0x348] sm:$0xff]  ;;  %1151 = vmatprep.subr.mxu1 %v509_v5  ;;  %v244_v10 = vld [vmem:[#allocation2 + $0x340] sm:$0xff]  ;;  %1081 = vmatpush1.msra.mxu0 %v252_v6 }
  0x68   :  { %v501_v9 = vld [vmem:[#allocation2 + $0xb48] sm:$0xff]  ;;  %v500_v11 = vld [vmem:[#allocation2 + $0xb40] sm:$0xff]  ;;  %1152 = vmatpush1.msra.mxu1 %v508_v7  ;;  %1082 = vmatprep.subr.mxu0 %v245_v8 }
  0x69   :  { %v237_v12 = vld [vmem:[#allocation2 + $0x308] sm:$0xff]  ;;  %1153 = vmatprep.subr.mxu1 %v501_v9  ;;  %v236_v14 = vld [vmem:[#allocation2 + $0x300] sm:$0xff]  ;;  %1083 = vmatpush1.msra.mxu0 %v244_v10 }
  0x6a   :  { %v493_v13 = vld [vmem:[#allocation2 + $0xb08] sm:$0xff]  ;;  %v492_v15 = vld [vmem:[#allocation2 + $0xb00] sm:$0xff]  ;;  %1154 = vmatpush1.msra.mxu1 %v500_v11  ;;  %1084 = vmatprep.subr.mxu0 %v237_v12 }
  0x6b   :  { %v229_v16 = vld [vmem:[#allocation2 + $0x2c8] sm:$0xff]  ;;  %1155 = vmatprep.subr.mxu1 %v493_v13  ;;  %v228_v18 = vld [vmem:[#allocation2 + $0x2c0] sm:$0xff]  ;;  %1085 = vmatpush1.msra.mxu0 %v236_v14 }
  0x6c   :  { %v485_v17 = vld [vmem:[#allocation2 + $0xac8] sm:$0xff]  ;;  %v484_v19 = vld [vmem:[#allocation2 + $0xac0] sm:$0xff]  ;;  %1156 = vmatpush1.msra.mxu1 %v492_v15  ;;  %1086 = vmatprep.subr.mxu0 %v229_v16 }
  0x6d   :  { %v221_v20 = vld [vmem:[#allocation2 + $0x288] sm:$0xff]  ;;  %1157 = vmatprep.subr.mxu1 %v485_v17  ;;  %v220_v22 = vld [vmem:[#allocation2 + $0x280] sm:$0xff]  ;;  %1087 = vmatpush1.msra.mxu0 %v228_v18 }
  0x6e   :  { %v477_v21 = vld [vmem:[#allocation2 + $0xa88] sm:$0xff]  ;;  %v476_v23 = vld [vmem:[#allocation2 + $0xa80] sm:$0xff]  ;;  %1158 = vmatpush1.msra.mxu1 %v484_v19  ;;  %1088 = vmatprep.subr.mxu0 %v221_v20 }
  0x6f   :  { %v213_v24 = vld [vmem:[#allocation2 + $0x248] sm:$0xff]  ;;  %1159 = vmatprep.subr.mxu1 %v477_v21  ;;  %v212_v26 = vld [vmem:[#allocation2 + $0x240] sm:$0xff]  ;;  %1089 = vmatpush1.msra.mxu0 %v220_v22 }
  0x70   :  { %v469_v25 = vld [vmem:[#allocation2 + $0xa48] sm:$0xff]  ;;  %v468_v27 = vld [vmem:[#allocation2 + $0xa40] sm:$0xff]  ;;  %1160 = vmatpush1.msra.mxu1 %v476_v23  ;;  %1090 = vmatprep.subr.mxu0 %v213_v24 }
  0x71   :  { %v205_v28 = vld [vmem:[#allocation2 + $0x208] sm:$0xff]  ;;  %1161 = vmatprep.subr.mxu1 %v469_v25  ;;  %v204_v30 = vld [vmem:[#allocation2 + $0x200] sm:$0xff]  ;;  %1091 = vmatpush1.msra.mxu0 %v212_v26 }
  0x72   :  { %v461_v29 = vld [vmem:[#allocation2 + $0xa08] sm:$0xff]  ;;  %v460_v31 = vld [vmem:[#allocation2 + $0xa00] sm:$0xff]  ;;  %1162 = vmatpush1.msra.mxu1 %v468_v27  ;;  %1092 = vmatprep.subr.mxu0 %v205_v28 }
  0x73   :  { %v197_v32 = vld [vmem:[#allocation2 + $0x1c8] sm:$0xff]  ;;  %1163 = vmatprep.subr.mxu1 %v461_v29  ;;  %v196_v34 = vld [vmem:[#allocation2 + $0x1c0] sm:$0xff]  ;;  %1093 = vmatpush1.msra.mxu0 %v204_v30 }
  0x74   :  { %v453_v33 = vld [vmem:[#allocation2 + $0x9c8] sm:$0xff]  ;;  %v452_v35 = vld [vmem:[#allocation2 + $0x9c0] sm:$0xff]  ;;  %1164 = vmatpush1.msra.mxu1 %v460_v31  ;;  %1094 = vmatprep.subr.mxu0 %v197_v32 }
  0x75   :  { %v189_v36 = vld [vmem:[#allocation2 + $0x188] sm:$0xff]  ;;  %1165 = vmatprep.subr.mxu1 %v453_v33  ;;  %v188_v38 = vld [vmem:[#allocation2 + $0x180] sm:$0xff]  ;;  %1095 = vmatpush1.msra.mxu0 %v196_v34 }
  0x76   :  { %v445_v37 = vld [vmem:[#allocation2 + $0x988] sm:$0xff]  ;;  %v444_v39 = vld [vmem:[#allocation2 + $0x980] sm:$0xff]  ;;  %1166 = vmatpush1.msra.mxu1 %v452_v35  ;;  %1096 = vmatprep.subr.mxu0 %v189_v36 }
  0x77   :  { %v181_v40 = vld [vmem:[#allocation2 + $0x148] sm:$0xff]  ;;  %1167 = vmatprep.subr.mxu1 %v445_v37  ;;  %v180_v42 = vld [vmem:[#allocation2 + $0x140] sm:$0xff]  ;;  %1097 = vmatpush1.msra.mxu0 %v188_v38 }
  0x78   :  { %v437_v41 = vld [vmem:[#allocation2 + $0x948] sm:$0xff]  ;;  %v436_v43 = vld [vmem:[#allocation2 + $0x940] sm:$0xff]  ;;  %1168 = vmatpush1.msra.mxu1 %v444_v39  ;;  %1098 = vmatprep.subr.mxu0 %v181_v40 }
  0x79   :  { %v173_v44 = vld [vmem:[#allocation2 + $0x108] sm:$0xff]  ;;  %1169 = vmatprep.subr.mxu1 %v437_v41  ;;  %v172_v46 = vld [vmem:[#allocation2 + $0x100] sm:$0xff]  ;;  %1099 = vmatpush1.msra.mxu0 %v180_v42 }
  0x7a   :  { %v429_v45 = vld [vmem:[#allocation2 + $0x908] sm:$0xff]  ;;  %v428_v47 = vld [vmem:[#allocation2 + $0x900] sm:$0xff]  ;;  %1170 = vmatpush1.msra.mxu1 %v436_v43  ;;  %1100 = vmatprep.subr.mxu0 %v173_v44 }
  0x7b   :  { %v165_v48 = vld [vmem:[#allocation2 + $0xc8] sm:$0xff]  ;;  %1171 = vmatprep.subr.mxu1 %v429_v45  ;;  %v164_v50 = vld [vmem:[#allocation2 + $0xc0] sm:$0xff]  ;;  %1101 = vmatpush1.msra.mxu0 %v172_v46 }
  0x7c   :  { %v421_v49 = vld [vmem:[#allocation2 + $0x8c8] sm:$0xff]  ;;  %v420_v51 = vld [vmem:[#allocation2 + $0x8c0] sm:$0xff]  ;;  %1172 = vmatpush1.msra.mxu1 %v428_v47  ;;  %1102 = vmatprep.subr.mxu0 %v165_v48 }
  0x7d   :  { %v157_v52 = vld [vmem:[#allocation2 + $0x88] sm:$0xff]  ;;  %1173 = vmatprep.subr.mxu1 %v421_v49  ;;  %v156_v54 = vld [vmem:[#allocation2 + $0x80] sm:$0xff]  ;;  %1103 = vmatpush1.msra.mxu0 %v164_v50 }
  0x7e   :  { %v413_v53 = vld [vmem:[#allocation2 + $0x888] sm:$0xff]  ;;  %v412_v55 = vld [vmem:[#allocation2 + $0x880] sm:$0xff]  ;;  %1174 = vmatpush1.msra.mxu1 %v420_v51  ;;  %1104 = vmatprep.subr.mxu0 %v157_v52 }
  0x7f   :  { %v149_v56 = vld [vmem:[#allocation2 + $0x48] sm:$0xff]  ;;  %1175 = vmatprep.subr.mxu1 %v413_v53  ;;  %v148_v58 = vld [vmem:[#allocation2 + $0x40] sm:$0xff]  ;;  %1105 = vmatpush1.msra.mxu0 %v156_v54 }
  0x80   :  { %v405_v57 = vld [vmem:[#allocation2 + $0x848] sm:$0xff]  ;;  %v404_v59 = vld [vmem:[#allocation2 + $0x840] sm:$0xff]  ;;  %1176 = vmatpush1.msra.mxu1 %v412_v55  ;;  %1106 = vmatprep.subr.mxu0 %v149_v56 }
  0x81   :  { %v141_v60 = vld [vmem:[#allocation2 + $0x8] sm:$0xff]  ;;  %1177 = vmatprep.subr.mxu1 %v405_v57  ;;  %v140_v62 = vld [vmem:[#allocation2] sm:$0xff]  ;;  %1107 = vmatpush1.msra.mxu0 %v148_v58 }
  0x82   :  { %v397_v61 = vld [vmem:[#allocation2 + $0x808] sm:$0xff]  ;;  %v396_v63 = vld [vmem:[#allocation2 + $0x800] sm:$0xff]  ;;  %1178 = vmatpush1.msra.mxu1 %v404_v59  ;;  %1108 = vmatprep.subr.mxu0 %v141_v60 }
  0x83   :  { %v389_v0 = vld [vmem:[#allocation2 + $0x7c8] sm:$0xff]  ;;  %1179 = vmatprep.subr.mxu1 %v397_v61  ;;  %v388_v2 = vld [vmem:[#allocation2 + $0x7c0] sm:$0xff]  ;;  %1109 = vmatpush1.msra.mxu0 %v140_v62 }
  0x84   :  { %v645_v1 = vld [vmem:[#allocation2 + $0xfc8] sm:$0xff]  ;;  %v644_v3 = vld [vmem:[#allocation2 + $0xfc0] sm:$0xff]  ;;  %1180 = vmatpush1.msra.mxu1 %v396_v63  ;;  %1110 = vmatprep.subr.mxu0 %v389_v0 }
  0x85   :  { %v381_v4 = vld [vmem:[#allocation2 + $0x788] sm:$0xff]  ;;  %1181 = vmatprep.subr.mxu1 %v645_v1  ;;  %v380_v6 = vld [vmem:[#allocation2 + $0x780] sm:$0xff]  ;;  %1111 = vmatpush2.msra.mxu0 %v388_v2  ;;  %v136_v1 = vld [vmem:[%s4727_s0 + $0x18] sm:$0xff] }
  0x86   :  { %v637_v5 = vld [vmem:[#allocation2 + $0xf88] sm:$0xff]  ;;  %v636_v7 = vld [vmem:[#allocation2 + $0xf80] sm:$0xff]  ;;  %1182 = vmatpush2.msra.mxu1 %v644_v3  ;;  %1112 = vmatprep.subr.mxu0 %v381_v4  ;;  %v135_v3 = vld [vmem:[%s4727_s0 + $0x10] sm:$0xff] }
  0x87   :  { %v373_v8 = vld [vmem:[#allocation2 + $0x748] sm:$0xff]  ;;  %1183 = vmatprep.subr.mxu1 %v637_v5  ;;  %v372_v10 = vld [vmem:[#allocation2 + $0x740] sm:$0xff]  ;;  %1113 = vmatpush2.msra.mxu0 %v380_v6 }
  0x88   :  { %v629_v9 = vld [vmem:[#allocation2 + $0xf48] sm:$0xff]  ;;  %v628_v11 = vld [vmem:[#allocation2 + $0xf40] sm:$0xff]  ;;  %1184 = vmatpush2.msra.mxu1 %v636_v7  ;;  %1114 = vmatprep.subr.mxu0 %v373_v8 }
  0x89   :  { %v365_v12 = vld [vmem:[#allocation2 + $0x708] sm:$0xff]  ;;  %1185 = vmatprep.subr.mxu1 %v629_v9  ;;  %v364_v14 = vld [vmem:[#allocation2 + $0x700] sm:$0xff]  ;;  %1115 = vmatpush2.msra.mxu0 %v372_v10 }
  0x8a   :  { %v621_v13 = vld [vmem:[#allocation2 + $0xf08] sm:$0xff]  ;;  %v620_v15 = vld [vmem:[#allocation2 + $0xf00] sm:$0xff]  ;;  %1186 = vmatpush2.msra.mxu1 %v628_v11  ;;  %1116 = vmatprep.subr.mxu0 %v365_v12 }
  0x8b   :  { %v357_v16 = vld [vmem:[#allocation2 + $0x6c8] sm:$0xff]  ;;  %1187 = vmatprep.subr.mxu1 %v621_v13  ;;  %v356_v18 = vld [vmem:[#allocation2 + $0x6c0] sm:$0xff]  ;;  %1117 = vmatpush2.msra.mxu0 %v364_v14 }
  0x8c   :  { %v613_v17 = vld [vmem:[#allocation2 + $0xec8] sm:$0xff]  ;;  %v612_v19 = vld [vmem:[#allocation2 + $0xec0] sm:$0xff]  ;;  %1188 = vmatpush2.msra.mxu1 %v620_v15  ;;  %1118 = vmatprep.subr.mxu0 %v357_v16 }
  0x8d   :  { %v349_v20 = vld [vmem:[#allocation2 + $0x688] sm:$0xff]  ;;  %1189 = vmatprep.subr.mxu1 %v613_v17  ;;  %v348_v22 = vld [vmem:[#allocation2 + $0x680] sm:$0xff]  ;;  %1119 = vmatpush2.msra.mxu0 %v356_v18 }
  0x8e   :  { %v605_v21 = vld [vmem:[#allocation2 + $0xe88] sm:$0xff]  ;;  %v604_v23 = vld [vmem:[#allocation2 + $0xe80] sm:$0xff]  ;;  %1190 = vmatpush2.msra.mxu1 %v612_v19  ;;  %1120 = vmatprep.subr.mxu0 %v349_v20 }
  0x8f   :  { %v341_v24 = vld [vmem:[#allocation2 + $0x648] sm:$0xff]  ;;  %1191 = vmatprep.subr.mxu1 %v605_v21  ;;  %v340_v26 = vld [vmem:[#allocation2 + $0x640] sm:$0xff]  ;;  %1121 = vmatpush2.msra.mxu0 %v348_v22 }
  0x90   :  { %v597_v25 = vld [vmem:[#allocation2 + $0xe48] sm:$0xff]  ;;  %v596_v27 = vld [vmem:[#allocation2 + $0xe40] sm:$0xff]  ;;  %1192 = vmatpush2.msra.mxu1 %v604_v23  ;;  %1122 = vmatprep.subr.mxu0 %v341_v24 }
  0x91   :  { %v333_v28 = vld [vmem:[#allocation2 + $0x608] sm:$0xff]  ;;  %1193 = vmatprep.subr.mxu1 %v597_v25  ;;  %v332_v30 = vld [vmem:[#allocation2 + $0x600] sm:$0xff]  ;;  %1123 = vmatpush2.msra.mxu0 %v340_v26 }
  0x92   :  { %v589_v29 = vld [vmem:[#allocation2 + $0xe08] sm:$0xff]  ;;  %v588_v31 = vld [vmem:[#allocation2 + $0xe00] sm:$0xff]  ;;  %1194 = vmatpush2.msra.mxu1 %v596_v27  ;;  %1124 = vmatprep.subr.mxu0 %v333_v28 }
  0x93   :  { %v325_v32 = vld [vmem:[#allocation2 + $0x5c8] sm:$0xff]  ;;  %1195 = vmatprep.subr.mxu1 %v589_v29  ;;  %v324_v34 = vld [vmem:[#allocation2 + $0x5c0] sm:$0xff]  ;;  %1125 = vmatpush2.msra.mxu0 %v332_v30 }
  0x94   :  { %v581_v33 = vld [vmem:[#allocation2 + $0xdc8] sm:$0xff]  ;;  %v580_v35 = vld [vmem:[#allocation2 + $0xdc0] sm:$0xff]  ;;  %1196 = vmatpush2.msra.mxu1 %v588_v31  ;;  %1126 = vmatprep.subr.mxu0 %v325_v32 }
  0x95   :  { %v317_v36 = vld [vmem:[#allocation2 + $0x588] sm:$0xff]  ;;  %1197 = vmatprep.subr.mxu1 %v581_v33  ;;  %v316_v38 = vld [vmem:[#allocation2 + $0x580] sm:$0xff]  ;;  %1127 = vmatpush2.msra.mxu0 %v324_v34 }
  0x96   :  { %v573_v37 = vld [vmem:[#allocation2 + $0xd88] sm:$0xff]  ;;  %v572_v39 = vld [vmem:[#allocation2 + $0xd80] sm:$0xff]  ;;  %1198 = vmatpush2.msra.mxu1 %v580_v35  ;;  %1128 = vmatprep.subr.mxu0 %v317_v36 }
  0x97   :  { %v309_v40 = vld [vmem:[#allocation2 + $0x548] sm:$0xff]  ;;  %1199 = vmatprep.subr.mxu1 %v573_v37  ;;  %v308_v42 = vld [vmem:[#allocation2 + $0x540] sm:$0xff]  ;;  %1129 = vmatpush2.msra.mxu0 %v316_v38 }
  0x98   :  { %v565_v41 = vld [vmem:[#allocation2 + $0xd48] sm:$0xff]  ;;  %v564_v43 = vld [vmem:[#allocation2 + $0xd40] sm:$0xff]  ;;  %1200 = vmatpush2.msra.mxu1 %v572_v39  ;;  %1130 = vmatprep.subr.mxu0 %v309_v40 }
  0x99   :  { %v301_v44 = vld [vmem:[#allocation2 + $0x508] sm:$0xff]  ;;  %1201 = vmatprep.subr.mxu1 %v565_v41  ;;  %v300_v46 = vld [vmem:[#allocation2 + $0x500] sm:$0xff]  ;;  %1131 = vmatpush2.msra.mxu0 %v308_v42 }
  0x9a   :  { %v557_v45 = vld [vmem:[#allocation2 + $0xd08] sm:$0xff]  ;;  %v556_v47 = vld [vmem:[#allocation2 + $0xd00] sm:$0xff]  ;;  %1202 = vmatpush2.msra.mxu1 %v564_v43  ;;  %1132 = vmatprep.subr.mxu0 %v301_v44 }
  0x9b   :  { %v293_v48 = vld [vmem:[#allocation2 + $0x4c8] sm:$0xff]  ;;  %1203 = vmatprep.subr.mxu1 %v557_v45  ;;  %v292_v50 = vld [vmem:[#allocation2 + $0x4c0] sm:$0xff]  ;;  %1133 = vmatpush2.msra.mxu0 %v300_v46 }
  0x9c   :  { %v549_v49 = vld [vmem:[#allocation2 + $0xcc8] sm:$0xff]  ;;  %v548_v51 = vld [vmem:[#allocation2 + $0xcc0] sm:$0xff]  ;;  %1204 = vmatpush2.msra.mxu1 %v556_v47  ;;  %1134 = vmatprep.subr.mxu0 %v293_v48 }
  0x9d   :  { %v285_v52 = vld [vmem:[#allocation2 + $0x488] sm:$0xff]  ;;  %1205 = vmatprep.subr.mxu1 %v549_v49  ;;  %v284_v54 = vld [vmem:[#allocation2 + $0x480] sm:$0xff]  ;;  %1135 = vmatpush2.msra.mxu0 %v292_v50 }
  0x9e   :  { %v541_v53 = vld [vmem:[#allocation2 + $0xc88] sm:$0xff]  ;;  %v540_v55 = vld [vmem:[#allocation2 + $0xc80] sm:$0xff]  ;;  %1206 = vmatpush2.msra.mxu1 %v548_v51  ;;  %1136 = vmatprep.subr.mxu0 %v285_v52 }
  0x9f   :  { %v277_v56 = vld [vmem:[#allocation2 + $0x448] sm:$0xff]  ;;  %1207 = vmatprep.subr.mxu1 %v541_v53  ;;  %v276_v58 = vld [vmem:[#allocation2 + $0x440] sm:$0xff]  ;;  %1137 = vmatpush2.msra.mxu0 %v284_v54 }
  0xa0   :  { %v533_v57 = vld [vmem:[#allocation2 + $0xc48] sm:$0xff]  ;;  %v532_v59 = vld [vmem:[#allocation2 + $0xc40] sm:$0xff]  ;;  %1208 = vmatpush2.msra.mxu1 %v540_v55  ;;  %1138 = vmatprep.subr.mxu0 %v277_v56 }
  0xa1   :  { %v269_v60 = vld [vmem:[#allocation2 + $0x408] sm:$0xff]  ;;  %1209 = vmatprep.subr.mxu1 %v533_v57  ;;  %v268_v62 = vld [vmem:[#allocation2 + $0x400] sm:$0xff]  ;;  %1139 = vmatpush2.msra.mxu0 %v276_v58 }
  0xa2   :  { %v525_v61 = vld [vmem:[#allocation2 + $0xc08] sm:$0xff]  ;;  %1210 = vmatpush2.msra.mxu1 %v532_v59  ;;  %v524_v0 = vld [vmem:[#allocation2 + $0xc00] sm:$0xff]  ;;  %1140 = vmatprep.subr.mxu0 %v269_v60 }
  0xa3   :  { %v4475_v63 = vld [vmem:[%s4727_s0 + $0x8] sm:$0xff]  ;;  %1211 = vmatprep.subr.mxu1 %v525_v61  ;;  %v4483_v2 = vld [vmem:[%s4727_s0] sm:$0xff]  ;;  %1141 = vmatpush2.msra.mxu0 %v268_v62 }
  0xa4   :  { %1142 = vmatprep.mubr.f32.mxu0 %v4475_v63  ;;  %v773_v4 = vld [vmem:[#allocation2 + $0x13c8] sm:$0xff]  ;;  %1212 = vmatpush2.msra.mxu1 %v524_v0  ;;  %v772_v6 = vld [vmem:[#allocation2 + $0x13c0] sm:$0xff] }
  0xa5   :  { %v1029_v5 = vld [vmem:[#allocation2 + $0x1bc8] sm:$0xff]  ;;  %1213 = vmatprep.mubr.f32.mxu1 %v136_v1  ;;  %v1028_v7 = vld [vmem:[#allocation2 + $0x1bc0] sm:$0xff]  ;;  %1143 = vmatmul.mubr.f32.vlgmr.msra.gmra.mxu0 %v4483_v2 }
  0xa6   :  { %1214 = vmatmul.mubr.f32.vlgmr.msra.gmra.mxu1 %v135_v3  ;;  %v765_v8 = vld [vmem:[#allocation2 + $0x1388] sm:$0xff]  ;;  %1220 = vmatprep.subr.mxu0 %v773_v4  ;;  %v764_v10 = vld [vmem:[#allocation2 + $0x1380] sm:$0xff] }
  0xa7   :  { %v1021_v9 = vld [vmem:[#allocation2 + $0x1b88] sm:$0xff]  ;;  %1291 = vmatprep.subr.mxu1 %v1029_v5  ;;  %v1020_v11 = vld [vmem:[#allocation2 + $0x1b80] sm:$0xff]  ;;  %1221 = vmatpush1.msra.mxu0 %v772_v6 }
  0xa8   :  { %1292 = vmatpush1.msra.mxu1 %v1028_v7  ;;  %v757_v12 = vld [vmem:[#allocation2 + $0x1348] sm:$0xff]  ;;  %1222 = vmatprep.subr.mxu0 %v765_v8  ;;  %v756_v14 = vld [vmem:[#allocation2 + $0x1340] sm:$0xff]  ;;  %v139_v7 = vld [vmem:[%s4727_s0 + $0x30] sm:$0xff] }
  0xa9   :  { %v1013_v13 = vld [vmem:[#allocation2 + $0x1b48] sm:$0xff]  ;;  %1293 = vmatprep.subr.mxu1 %v1021_v9  ;;  %v1012_v15 = vld [vmem:[#allocation2 + $0x1b40] sm:$0xff]  ;;  %1223 = vmatpush1.msra.mxu0 %v764_v10  ;;  %v263_v8 = vld [vmem:[#allocation2 + $0x3d8] sm:$0xff] }
  0xaa   :  { %1294 = vmatpush1.msra.mxu1 %v1020_v11  ;;  %v749_v16 = vld [vmem:[#allocation2 + $0x1308] sm:$0xff]  ;;  %1224 = vmatprep.subr.mxu0 %v757_v12  ;;  %v748_v18 = vld [vmem:[#allocation2 + $0x1300] sm:$0xff]  ;;  %v262_v10 = vld [vmem:[#allocation2 + $0x3d0] sm:$0xff]  ;;  %v4397_v11 = vmov 0.0  }
  0xab   :  { %v1005_v17 = vld [vmem:[#allocation2 + $0x1b08] sm:$0xff]  ;;  %1295 = vmatprep.subr.mxu1 %v1013_v13  ;;  %v1004_v19 = vld [vmem:[#allocation2 + $0x1b00] sm:$0xff]  ;;  %1225 = vmatpush1.msra.mxu0 %v756_v14  ;;  %v255_v13 = vld [vmem:[#allocation2 + $0x398] sm:$0xff] }
  0xac   :  { %1296 = vmatpush1.msra.mxu1 %v1012_v15  ;;  %v741_v20 = vld [vmem:[#allocation2 + $0x12c8] sm:$0xff]  ;;  %1226 = vmatprep.subr.mxu0 %v749_v16  ;;  %v740_v22 = vld [vmem:[#allocation2 + $0x12c0] sm:$0xff]  ;;  %v254_v15 = vld [vmem:[#allocation2 + $0x390] sm:$0xff] }
  0xad   :  { %v997_v21 = vld [vmem:[#allocation2 + $0x1ac8] sm:$0xff]  ;;  %1297 = vmatprep.subr.mxu1 %v1005_v17  ;;  %v996_v23 = vld [vmem:[#allocation2 + $0x1ac0] sm:$0xff]  ;;  %1227 = vmatpush1.msra.mxu0 %v748_v18  ;;  %v247_v17 = vld [vmem:[#allocation2 + $0x358] sm:$0xff] }
  0xae   :  { %1298 = vmatpush1.msra.mxu1 %v1004_v19  ;;  %v733_v24 = vld [vmem:[#allocation2 + $0x1288] sm:$0xff]  ;;  %1228 = vmatprep.subr.mxu0 %v741_v20  ;;  %v732_v26 = vld [vmem:[#allocation2 + $0x1280] sm:$0xff]  ;;  %v246_v19 = vld [vmem:[#allocation2 + $0x350] sm:$0xff] }
  0xaf   :  { %v989_v25 = vld [vmem:[#allocation2 + $0x1a88] sm:$0xff]  ;;  %1299 = vmatprep.subr.mxu1 %v997_v21  ;;  %v988_v27 = vld [vmem:[#allocation2 + $0x1a80] sm:$0xff]  ;;  %1229 = vmatpush1.msra.mxu0 %v740_v22  ;;  %v239_v21 = vld [vmem:[#allocation2 + $0x318] sm:$0xff] }
  0xb0   :  { %1300 = vmatpush1.msra.mxu1 %v996_v23  ;;  %v725_v28 = vld [vmem:[#allocation2 + $0x1248] sm:$0xff]  ;;  %1230 = vmatprep.subr.mxu0 %v733_v24  ;;  %v724_v30 = vld [vmem:[#allocation2 + $0x1240] sm:$0xff]  ;;  %v238_v23 = vld [vmem:[#allocation2 + $0x310] sm:$0xff] }
  0xb1   :  { %v981_v29 = vld [vmem:[#allocation2 + $0x1a48] sm:$0xff]  ;;  %1301 = vmatprep.subr.mxu1 %v989_v25  ;;  %v980_v31 = vld [vmem:[#allocation2 + $0x1a40] sm:$0xff]  ;;  %1231 = vmatpush1.msra.mxu0 %v732_v26  ;;  %v231_v25 = vld [vmem:[#allocation2 + $0x2d8] sm:$0xff] }
  0xb2   :  { %1302 = vmatpush1.msra.mxu1 %v988_v27  ;;  %v717_v32 = vld [vmem:[#allocation2 + $0x1208] sm:$0xff]  ;;  %1232 = vmatprep.subr.mxu0 %v725_v28  ;;  %v716_v34 = vld [vmem:[#allocation2 + $0x1200] sm:$0xff]  ;;  %v230_v27 = vld [vmem:[#allocation2 + $0x2d0] sm:$0xff] }
  0xb3   :  { %v973_v33 = vld [vmem:[#allocation2 + $0x1a08] sm:$0xff]  ;;  %1303 = vmatprep.subr.mxu1 %v981_v29  ;;  %v972_v35 = vld [vmem:[#allocation2 + $0x1a00] sm:$0xff]  ;;  %1233 = vmatpush1.msra.mxu0 %v724_v30  ;;  %v223_v29 = vld [vmem:[#allocation2 + $0x298] sm:$0xff] }
  0xb4   :  { %1304 = vmatpush1.msra.mxu1 %v980_v31  ;;  %v709_v36 = vld [vmem:[#allocation2 + $0x11c8] sm:$0xff]  ;;  %1234 = vmatprep.subr.mxu0 %v717_v32  ;;  %v708_v38 = vld [vmem:[#allocation2 + $0x11c0] sm:$0xff]  ;;  %v222_v31 = vld [vmem:[#allocation2 + $0x290] sm:$0xff] }
  0xb5   :  { %v965_v37 = vld [vmem:[#allocation2 + $0x19c8] sm:$0xff]  ;;  %1305 = vmatprep.subr.mxu1 %v973_v33  ;;  %v964_v39 = vld [vmem:[#allocation2 + $0x19c0] sm:$0xff]  ;;  %1235 = vmatpush1.msra.mxu0 %v716_v34  ;;  %v215_v33 = vld [vmem:[#allocation2 + $0x258] sm:$0xff] }
  0xb6   :  { %1306 = vmatpush1.msra.mxu1 %v972_v35  ;;  %v701_v40 = vld [vmem:[#allocation2 + $0x1188] sm:$0xff]  ;;  %1236 = vmatprep.subr.mxu0 %v709_v36  ;;  %v700_v42 = vld [vmem:[#allocation2 + $0x1180] sm:$0xff]  ;;  %v214_v35 = vld [vmem:[#allocation2 + $0x250] sm:$0xff] }
  0xb7   :  { %v957_v41 = vld [vmem:[#allocation2 + $0x1988] sm:$0xff]  ;;  %1307 = vmatprep.subr.mxu1 %v965_v37  ;;  %v956_v43 = vld [vmem:[#allocation2 + $0x1980] sm:$0xff]  ;;  %1237 = vmatpush1.msra.mxu0 %v708_v38  ;;  %v207_v37 = vld [vmem:[#allocation2 + $0x218] sm:$0xff] }
  0xb8   :  { %1308 = vmatpush1.msra.mxu1 %v964_v39  ;;  %v693_v44 = vld [vmem:[#allocation2 + $0x1148] sm:$0xff]  ;;  %1238 = vmatprep.subr.mxu0 %v701_v40  ;;  %v692_v46 = vld [vmem:[#allocation2 + $0x1140] sm:$0xff]  ;;  %v206_v39 = vld [vmem:[#allocation2 + $0x210] sm:$0xff] }
  0xb9   :  { %v949_v45 = vld [vmem:[#allocation2 + $0x1948] sm:$0xff]  ;;  %1309 = vmatprep.subr.mxu1 %v957_v41  ;;  %v948_v47 = vld [vmem:[#allocation2 + $0x1940] sm:$0xff]  ;;  %1239 = vmatpush1.msra.mxu0 %v700_v42  ;;  %v199_v41 = vld [vmem:[#allocation2 + $0x1d8] sm:$0xff] }
  0xba   :  { %1310 = vmatpush1.msra.mxu1 %v956_v43  ;;  %v685_v48 = vld [vmem:[#allocation2 + $0x1108] sm:$0xff]  ;;  %1240 = vmatprep.subr.mxu0 %v693_v44  ;;  %v684_v50 = vld [vmem:[#allocation2 + $0x1100] sm:$0xff]  ;;  %v198_v43 = vld [vmem:[#allocation2 + $0x1d0] sm:$0xff] }
  0xbb   :  { %v941_v49 = vld [vmem:[#allocation2 + $0x1908] sm:$0xff]  ;;  %1311 = vmatprep.subr.mxu1 %v949_v45  ;;  %v940_v51 = vld [vmem:[#allocation2 + $0x1900] sm:$0xff]  ;;  %1241 = vmatpush1.msra.mxu0 %v692_v46  ;;  %v191_v45 = vld [vmem:[#allocation2 + $0x198] sm:$0xff] }
  0xbc   :  { %1312 = vmatpush1.msra.mxu1 %v948_v47  ;;  %v677_v52 = vld [vmem:[#allocation2 + $0x10c8] sm:$0xff]  ;;  %1242 = vmatprep.subr.mxu0 %v685_v48  ;;  %v676_v54 = vld [vmem:[#allocation2 + $0x10c0] sm:$0xff]  ;;  %v190_v47 = vld [vmem:[#allocation2 + $0x190] sm:$0xff] }
  0xbd   :  { %v933_v53 = vld [vmem:[#allocation2 + $0x18c8] sm:$0xff]  ;;  %1313 = vmatprep.subr.mxu1 %v941_v49  ;;  %v932_v55 = vld [vmem:[#allocation2 + $0x18c0] sm:$0xff]  ;;  %1243 = vmatpush1.msra.mxu0 %v684_v50  ;;  %v183_v49 = vld [vmem:[#allocation2 + $0x158] sm:$0xff] }
  0xbe   :  { %1314 = vmatpush1.msra.mxu1 %v940_v51  ;;  %v669_v56 = vld [vmem:[#allocation2 + $0x1088] sm:$0xff]  ;;  %1244 = vmatprep.subr.mxu0 %v677_v52  ;;  %v668_v58 = vld [vmem:[#allocation2 + $0x1080] sm:$0xff]  ;;  %v182_v51 = vld [vmem:[#allocation2 + $0x150] sm:$0xff] }
  0xbf   :  { %v925_v57 = vld [vmem:[#allocation2 + $0x1888] sm:$0xff]  ;;  %1315 = vmatprep.subr.mxu1 %v933_v53  ;;  %v924_v59 = vld [vmem:[#allocation2 + $0x1880] sm:$0xff]  ;;  %1245 = vmatpush1.msra.mxu0 %v676_v54  ;;  %v175_v53 = vld [vmem:[#allocation2 + $0x118] sm:$0xff] }
  0xc0   :  { %1316 = vmatpush1.msra.mxu1 %v932_v55  ;;  %v661_v60 = vld [vmem:[#allocation2 + $0x1048] sm:$0xff]  ;;  %1246 = vmatprep.subr.mxu0 %v669_v56  ;;  %v660_v62 = vld [vmem:[#allocation2 + $0x1040] sm:$0xff]  ;;  %v174_v55 = vld [vmem:[#allocation2 + $0x110] sm:$0xff] }
  0xc1   :  { %v917_v61 = vld [vmem:[#allocation2 + $0x1848] sm:$0xff]  ;;  %1317 = vmatprep.subr.mxu1 %v925_v57  ;;  %v916_v0 = vld [vmem:[#allocation2 + $0x1840] sm:$0xff]  ;;  %1247 = vmatpush1.msra.mxu0 %v668_v58  ;;  %v167_v57 = vld [vmem:[#allocation2 + $0xd8] sm:$0xff] }
  0xc2   :  { %1318 = vmatpush1.msra.mxu1 %v924_v59  ;;  %v653_v1 = vld [vmem:[#allocation2 + $0x1008] sm:$0xff]  ;;  %1248 = vmatprep.subr.mxu0 %v661_v60  ;;  %v652_v4 = vld [vmem:[#allocation2 + $0x1000] sm:$0xff]  ;;  %v166_v59 = vld [vmem:[#allocation2 + $0xd0] sm:$0xff] }
  0xc3   :  { %v909_v3 = vld [vmem:[#allocation2 + $0x1808] sm:$0xff]  ;;  %1319 = vmatprep.subr.mxu1 %v917_v61  ;;  %v908_v5 = vld [vmem:[#allocation2 + $0x1800] sm:$0xff]  ;;  %1249 = vmatpush1.msra.mxu0 %v660_v62  ;;  %v159_v61 = vld [vmem:[#allocation2 + $0x98] sm:$0xff] }
  0xc4   :  { %1320 = vmatpush1.msra.mxu1 %v916_v0  ;;  %v901_v6 = vld [vmem:[#allocation2 + $0x17c8] sm:$0xff]  ;;  %1250 = vmatprep.subr.mxu0 %v653_v1  ;;  %v900_v9 = vld [vmem:[#allocation2 + $0x17c0] sm:$0xff]  ;;  %v158_v0 = vld [vmem:[#allocation2 + $0x90] sm:$0xff] }
  0xc5   :  { %1321 = vmatprep.subr.mxu1 %v909_v3  ;;  %1251 = vmatpush1.msra.mxu0 %v652_v4  ;;  %v893_v12 = vld [vmem:[#allocation2 + $0x1788] sm:$0xff]  ;;  %v892_v14 = vld [vmem:[#allocation2 + $0x1780] sm:$0xff]  ;;  %v151_v3 = vld [vmem:[#allocation2 + $0x58] sm:$0xff] }
  0xc6   :  { %1322 = vmatpush1.msra.mxu1 %v908_v5  ;;  %1355 = vmatprep.mubr.f32.mxu1 %v4397_v11  ;;  %v885_v16 = vld [vmem:[#allocation2 + $0x1748] sm:$0xff]  ;;  %v884_v18 = vld [vmem:[#allocation2 + $0x1740] sm:$0xff]  ;;  %v150_v5 = vld [vmem:[#allocation2 + $0x50] sm:$0xff] }
  0xc7   :  { %1252 = vmatprep.subr.mxu0 %v901_v6  ;;  %1356 = vmatmul.mubr.f32.vlgmr.msra.gmra.mxu1 %v139_v7  ;;  %v877_v20 = vld [vmem:[#allocation2 + $0x1708] sm:$0xff]  ;;  %v876_v22 = vld [vmem:[#allocation2 + $0x1700] sm:$0xff]  ;;  %v143_v7 = vld [vmem:[#allocation2 + $0x18] sm:$0xff] }
  0xc8   :  { %1362 = vmatprep.subr.mxu1 %v263_v8  ;;  %1253 = vmatpush2.msra.mxu0 %v900_v9  ;;  %v869_v24 = vld [vmem:[#allocation2 + $0x16c8] sm:$0xff]  ;;  %v868_v26 = vld [vmem:[#allocation2 + $0x16c0] sm:$0xff] }
  0xc9   :  { %1363 = vmatpush1.msra.mxu1 %v262_v10  ;;  %1254 = vmatprep.subr.mxu0 %v893_v12  ;;  %v861_v28 = vld [vmem:[#allocation2 + $0x1688] sm:$0xff]  ;;  %v860_v30 = vld [vmem:[#allocation2 + $0x1680] sm:$0xff]  ;;  %v142_v10 = vld [vmem:[#allocation2 + $0x10] sm:$0xff] }
  0xca   :  { %1364 = vmatprep.subr.mxu1 %v255_v13  ;;  %1255 = vmatpush2.msra.mxu0 %v892_v14  ;;  %v853_v32 = vld [vmem:[#allocation2 + $0x1648] sm:$0xff]  ;;  %v852_v34 = vld [vmem:[#allocation2 + $0x1640] sm:$0xff]  ;;  %v391_v13 = vld [vmem:[#allocation2 + $0x7d8] sm:$0xff] }
  0xcb   :  { %1365 = vmatpush1.msra.mxu1 %v254_v15  ;;  %1256 = vmatprep.subr.mxu0 %v885_v16  ;;  %v845_v36 = vld [vmem:[#allocation2 + $0x1608] sm:$0xff]  ;;  %v844_v38 = vld [vmem:[#allocation2 + $0x1600] sm:$0xff]  ;;  %v519_v14 = vld [vmem:[#allocation2 + $0xbd8] sm:$0xff] }
  0xcc   :  { %1366 = vmatprep.subr.mxu1 %v247_v17  ;;  %1257 = vmatpush2.msra.mxu0 %v884_v18  ;;  %v837_v40 = vld [vmem:[#allocation2 + $0x15c8] sm:$0xff]  ;;  %v836_v42 = vld [vmem:[#allocation2 + $0x15c0] sm:$0xff]  ;;  %v390_v15 = vld [vmem:[#allocation2 + $0x7d0] sm:$0xff] }
  0xcd   :  { %1367 = vmatpush1.msra.mxu1 %v246_v19  ;;  %1258 = vmatprep.subr.mxu0 %v877_v20  ;;  %v829_v44 = vld [vmem:[#allocation2 + $0x1588] sm:$0xff]  ;;  %v828_v46 = vld [vmem:[#allocation2 + $0x1580] sm:$0xff]  ;;  %v518_v16 = vld [vmem:[#allocation2 + $0xbd0] sm:$0xff] }
  0xce   :  { %1368 = vmatprep.subr.mxu1 %v239_v21  ;;  %1259 = vmatpush2.msra.mxu0 %v876_v22  ;;  %v821_v48 = vld [vmem:[#allocation2 + $0x1548] sm:$0xff]  ;;  %v820_v50 = vld [vmem:[#allocation2 + $0x1540] sm:$0xff]  ;;  %v383_v17 = vld [vmem:[#allocation2 + $0x798] sm:$0xff] }
  0xcf   :  { %1369 = vmatpush1.msra.mxu1 %v238_v23  ;;  %1260 = vmatprep.subr.mxu0 %v869_v24  ;;  %v813_v52 = vld [vmem:[#allocation2 + $0x1508] sm:$0xff]  ;;  %v812_v54 = vld [vmem:[#allocation2 + $0x1500] sm:$0xff]  ;;  %v511_v18 = vld [vmem:[#allocation2 + $0xb98] sm:$0xff] }
  0xd0   :  { %1370 = vmatprep.subr.mxu1 %v231_v25  ;;  %1261 = vmatpush2.msra.mxu0 %v868_v26  ;;  %v805_v56 = vld [vmem:[#allocation2 + $0x14c8] sm:$0xff]  ;;  %v804_v58 = vld [vmem:[#allocation2 + $0x14c0] sm:$0xff]  ;;  %v382_v19 = vld [vmem:[#allocation2 + $0x790] sm:$0xff] }
  0xd1   :  { %1371 = vmatpush1.msra.mxu1 %v230_v27  ;;  %1262 = vmatprep.subr.mxu0 %v861_v28  ;;  %v797_v60 = vld [vmem:[#allocation2 + $0x1488] sm:$0xff]  ;;  %v796_v62 = vld [vmem:[#allocation2 + $0x1480] sm:$0xff]  ;;  %v510_v20 = vld [vmem:[#allocation2 + $0xb90] sm:$0xff] }
  0xd2   :  { %1372 = vmatprep.subr.mxu1 %v223_v29  ;;  %1263 = vmatpush2.msra.mxu0 %v860_v30  ;;  %v789_v1 = vld [vmem:[#allocation2 + $0x1448] sm:$0xff]  ;;  %v788_v4 = vld [vmem:[#allocation2 + $0x1440] sm:$0xff]  ;;  %v375_v21 = vld [vmem:[#allocation2 + $0x758] sm:$0xff] }
  0xd3   :  { %1373 = vmatpush1.msra.mxu1 %v222_v31  ;;  %1264 = vmatprep.subr.mxu0 %v853_v32  ;;  %v781_v6 = vld [vmem:[#allocation2 + $0x1408] sm:$0xff]  ;;  %v780_v8 = vld [vmem:[#allocation2 + $0x1400] sm:$0xff]  ;;  %v503_v22 = vld [vmem:[#allocation2 + $0xb58] sm:$0xff] }
  0xd4   :  { %1374 = vmatprep.subr.mxu1 %v215_v33  ;;  %1265 = vmatpush2.msra.mxu0 %v852_v34  ;;  %v4497_v9 = vld [vmem:[%s4727_s0 + $0x28] sm:$0xff]  ;;  %v4502_v12 = vld [vmem:[%s4727_s0 + $0x20] sm:$0xff]  ;;  %v374_v23 = vld [vmem:[#allocation2 + $0x750] sm:$0xff] }
  0xd5   :  { %1375 = vmatpush1.msra.mxu1 %v214_v35  ;;  %1266 = vmatprep.subr.mxu0 %v845_v36  ;;  %v502_v24 = vld [vmem:[#allocation2 + $0xb50] sm:$0xff]  ;;  %v367_v25 = vld [vmem:[#allocation2 + $0x718] sm:$0xff] }
  0xd6   :  { %1376 = vmatprep.subr.mxu1 %v207_v37  ;;  %1267 = vmatpush2.msra.mxu0 %v844_v38  ;;  %v495_v26 = vld [vmem:[#allocation2 + $0xb18] sm:$0xff]  ;;  %v366_v27 = vld [vmem:[#allocation2 + $0x710] sm:$0xff] }
  0xd7   :  { %1377 = vmatpush1.msra.mxu1 %v206_v39  ;;  %1268 = vmatprep.subr.mxu0 %v837_v40  ;;  %v494_v28 = vld [vmem:[#allocation2 + $0xb10] sm:$0xff]  ;;  %v359_v29 = vld [vmem:[#allocation2 + $0x6d8] sm:$0xff] }
  0xd8   :  { %1378 = vmatprep.subr.mxu1 %v199_v41  ;;  %1269 = vmatpush2.msra.mxu0 %v836_v42  ;;  %v487_v30 = vld [vmem:[#allocation2 + $0xad8] sm:$0xff]  ;;  %v358_v31 = vld [vmem:[#allocation2 + $0x6d0] sm:$0xff] }
  0xd9   :  { %1379 = vmatpush1.msra.mxu1 %v198_v43  ;;  %1270 = vmatprep.subr.mxu0 %v829_v44  ;;  %v486_v32 = vld [vmem:[#allocation2 + $0xad0] sm:$0xff]  ;;  %v351_v33 = vld [vmem:[#allocation2 + $0x698] sm:$0xff] }
  0xda   :  { %1380 = vmatprep.subr.mxu1 %v191_v45  ;;  %1271 = vmatpush2.msra.mxu0 %v828_v46  ;;  %v479_v34 = vld [vmem:[#allocation2 + $0xa98] sm:$0xff]  ;;  %v350_v35 = vld [vmem:[#allocation2 + $0x690] sm:$0xff] }
  0xdb   :  { %1381 = vmatpush1.msra.mxu1 %v190_v47  ;;  %1272 = vmatprep.subr.mxu0 %v821_v48  ;;  %v478_v36 = vld [vmem:[#allocation2 + $0xa90] sm:$0xff]  ;;  %v343_v37 = vld [vmem:[#allocation2 + $0x658] sm:$0xff] }
  0xdc   :  { %1382 = vmatprep.subr.mxu1 %v183_v49  ;;  %1273 = vmatpush2.msra.mxu0 %v820_v50  ;;  %v471_v38 = vld [vmem:[#allocation2 + $0xa58] sm:$0xff]  ;;  %v342_v39 = vld [vmem:[#allocation2 + $0x650] sm:$0xff] }
  0xdd   :  { %1383 = vmatpush1.msra.mxu1 %v182_v51  ;;  %1274 = vmatprep.subr.mxu0 %v813_v52  ;;  %v470_v40 = vld [vmem:[#allocation2 + $0xa50] sm:$0xff]  ;;  %v335_v41 = vld [vmem:[#allocation2 + $0x618] sm:$0xff] }
  0xde   :  { %1384 = vmatprep.subr.mxu1 %v175_v53  ;;  %1275 = vmatpush2.msra.mxu0 %v812_v54  ;;  %v463_v42 = vld [vmem:[#allocation2 + $0xa18] sm:$0xff]  ;;  %v334_v43 = vld [vmem:[#allocation2 + $0x610] sm:$0xff] }
  0xdf   :  { %1385 = vmatpush1.msra.mxu1 %v174_v55  ;;  %1276 = vmatprep.subr.mxu0 %v805_v56  ;;  %v462_v44 = vld [vmem:[#allocation2 + $0xa10] sm:$0xff]  ;;  %v327_v45 = vld [vmem:[#allocation2 + $0x5d8] sm:$0xff] }
  0xe0   :  { %1386 = vmatprep.subr.mxu1 %v167_v57  ;;  %1277 = vmatpush2.msra.mxu0 %v804_v58  ;;  %v455_v46 = vld [vmem:[#allocation2 + $0x9d8] sm:$0xff]  ;;  %v326_v47 = vld [vmem:[#allocation2 + $0x5d0] sm:$0xff] }
  0xe1   :  { %1387 = vmatpush1.msra.mxu1 %v166_v59  ;;  %1278 = vmatprep.subr.mxu0 %v797_v60  ;;  %v454_v48 = vld [vmem:[#allocation2 + $0x9d0] sm:$0xff]  ;;  %v319_v49 = vld [vmem:[#allocation2 + $0x598] sm:$0xff] }
  0xe2   :  { %1388 = vmatprep.subr.mxu1 %v159_v61  ;;  %1279 = vmatpush2.msra.mxu0 %v796_v62  ;;  %v447_v50 = vld [vmem:[#allocation2 + $0x998] sm:$0xff]  ;;  %v318_v51 = vld [vmem:[#allocation2 + $0x590] sm:$0xff] }
  0xe3   :  { %1389 = vmatpush1.msra.mxu1 %v158_v0  ;;  %1280 = vmatprep.subr.mxu0 %v789_v1  ;;  %v446_v52 = vld [vmem:[#allocation2 + $0x990] sm:$0xff]  ;;  %v311_v53 = vld [vmem:[#allocation2 + $0x558] sm:$0xff] }
  0xe4   :  { %1390 = vmatprep.subr.mxu1 %v151_v3  ;;  %1281 = vmatpush2.msra.mxu0 %v788_v4  ;;  %v439_v54 = vld [vmem:[#allocation2 + $0x958] sm:$0xff]  ;;  %v310_v55 = vld [vmem:[#allocation2 + $0x550] sm:$0xff] }
  0xe5   :  { %1391 = vmatpush1.msra.mxu1 %v150_v5  ;;  %1282 = vmatprep.subr.mxu0 %v781_v6  ;;  %v438_v56 = vld [vmem:[#allocation2 + $0x950] sm:$0xff]  ;;  %v303_v57 = vld [vmem:[#allocation2 + $0x518] sm:$0xff] }
  0xe6   :  { %1392 = vmatprep.subr.mxu1 %v143_v7  ;;  %1283 = vmatpush2.msra.mxu0 %v780_v8  ;;  %v431_v58 = vld [vmem:[#allocation2 + $0x918] sm:$0xff]  ;;  %v302_v59 = vld [vmem:[#allocation2 + $0x510] sm:$0xff] }
  0xe7   :  { %1284 = vmatprep.mubr.f32.mxu0 %v4497_v9  ;;  %1393 = vmatpush1.msra.mxu1 %v142_v10  ;;  %v430_v60 = vld [vmem:[#allocation2 + $0x910] sm:$0xff]  ;;  %v295_v61 = vld [vmem:[#allocation2 + $0x4d8] sm:$0xff] }
  0xe8   :  { %1285 = vmatmul.mubr.f32.vlgmr.msra.gmra.mxu0 %v4502_v12  ;;  %1394 = vmatprep.subr.mxu1 %v391_v13  ;;  %v423_v62 = vld [vmem:[#allocation2 + $0x8d8] sm:$0xff]  ;;  %v294_v0 = vld [vmem:[#allocation2 + $0x4d0] sm:$0xff] }
  0xe9   :  { %1433 = vmatprep.subr.mxu0 %v519_v14  ;;  %1395 = vmatpush2.msra.mxu1 %v390_v15  ;;  %v422_v1 = vld [vmem:[#allocation2 + $0x8d0] sm:$0xff]  ;;  %v287_v3 = vld [vmem:[#allocation2 + $0x498] sm:$0xff] }
  0xea   :  { %1434 = vmatpush1.msra.mxu0 %v518_v16  ;;  %1396 = vmatprep.subr.mxu1 %v383_v17  ;;  %v415_v4 = vld [vmem:[#allocation2 + $0x898] sm:$0xff]  ;;  %v286_v5 = vld [vmem:[#allocation2 + $0x490] sm:$0xff] }
  0xeb   :  { %1435 = vmatprep.subr.mxu0 %v511_v18  ;;  %1397 = vmatpush2.msra.mxu1 %v382_v19  ;;  %v414_v6 = vld [vmem:[#allocation2 + $0x890] sm:$0xff]  ;;  %v279_v7 = vld [vmem:[#allocation2 + $0x458] sm:$0xff] }
  0xec   :  { %1436 = vmatpush1.msra.mxu0 %v510_v20  ;;  %1398 = vmatprep.subr.mxu1 %v375_v21  ;;  %v407_v8 = vld [vmem:[#allocation2 + $0x858] sm:$0xff]  ;;  %v278_v10 = vld [vmem:[#allocation2 + $0x450] sm:$0xff] }
  0xed   :  { %1437 = vmatprep.subr.mxu0 %v503_v22  ;;  %1399 = vmatpush2.msra.mxu1 %v374_v23  ;;  %v406_v13 = vld [vmem:[#allocation2 + $0x850] sm:$0xff]  ;;  %v271_v14 = vld [vmem:[#allocation2 + $0x418] sm:$0xff] }
  0xee   :  { %1438 = vmatpush1.msra.mxu0 %v502_v24  ;;  %1400 = vmatprep.subr.mxu1 %v367_v25  ;;  %v399_v15 = vld [vmem:[#allocation2 + $0x818] sm:$0xff]  ;;  %v270_v16 = vld [vmem:[#allocation2 + $0x410] sm:$0xff] }
  0xef   :  { %1439 = vmatprep.subr.mxu0 %v495_v26  ;;  %1401 = vmatpush2.msra.mxu1 %v366_v27  ;;  %v398_v17 = vld [vmem:[#allocation2 + $0x810] sm:$0xff]  ;;  %v647_v18 = vld [vmem:[#allocation2 + $0xfd8] sm:$0xff] }
  0xf0   :  { %1440 = vmatpush1.msra.mxu0 %v494_v28  ;;  %1402 = vmatprep.subr.mxu1 %v359_v29  ;;  %v775_v19 = vld [vmem:[#allocation2 + $0x13d8] sm:$0xff]  ;;  %v646_v20 = vld [vmem:[#allocation2 + $0xfd0] sm:$0xff] }
  0xf1   :  { %1441 = vmatprep.subr.mxu0 %v487_v30  ;;  %1403 = vmatpush2.msra.mxu1 %v358_v31  ;;  %v774_v21 = vld [vmem:[#allocation2 + $0x13d0] sm:$0xff]  ;;  %v639_v22 = vld [vmem:[#allocation2 + $0xf98] sm:$0xff] }
  0xf2   :  { %1442 = vmatpush1.msra.mxu0 %v486_v32  ;;  %1404 = vmatprep.subr.mxu1 %v351_v33  ;;  %v767_v23 = vld [vmem:[#allocation2 + $0x1398] sm:$0xff]  ;;  %v638_v24 = vld [vmem:[#allocation2 + $0xf90] sm:$0xff] }
  0xf3   :  { %1443 = vmatprep.subr.mxu0 %v479_v34  ;;  %1405 = vmatpush2.msra.mxu1 %v350_v35  ;;  %v766_v25 = vld [vmem:[#allocation2 + $0x1390] sm:$0xff]  ;;  %v631_v26 = vld [vmem:[#allocation2 + $0xf58] sm:$0xff] }
  0xf4   :  { %1444 = vmatpush1.msra.mxu0 %v478_v36  ;;  %1406 = vmatprep.subr.mxu1 %v343_v37  ;;  %v759_v27 = vld [vmem:[#allocation2 + $0x1358] sm:$0xff]  ;;  %v630_v28 = vld [vmem:[#allocation2 + $0xf50] sm:$0xff] }
  0xf5   :  { %1445 = vmatprep.subr.mxu0 %v471_v38  ;;  %1407 = vmatpush2.msra.mxu1 %v342_v39  ;;  %v758_v29 = vld [vmem:[#allocation2 + $0x1350] sm:$0xff]  ;;  %v751_v30 = vld [vmem:[#allocation2 + $0x1318] sm:$0xff] }
  0xf6   :  { %1446 = vmatpush1.msra.mxu0 %v470_v40  ;;  %1408 = vmatprep.subr.mxu1 %v335_v41  ;;  %v750_v31 = vld [vmem:[#allocation2 + $0x1310] sm:$0xff]  ;;  %v615_v32 = vld [vmem:[#allocation2 + $0xed8] sm:$0xff] }
  0xf7   :  { %1447 = vmatprep.subr.mxu0 %v463_v42  ;;  %1409 = vmatpush2.msra.mxu1 %v334_v43  ;;  %v743_v33 = vld [vmem:[#allocation2 + $0x12d8] sm:$0xff]  ;;  %v614_v34 = vld [vmem:[#allocation2 + $0xed0] sm:$0xff] }
  0xf8   :  { %1448 = vmatpush1.msra.mxu0 %v462_v44  ;;  %1410 = vmatprep.subr.mxu1 %v327_v45  ;;  %v742_v35 = vld [vmem:[#allocation2 + $0x12d0] sm:$0xff]  ;;  %v607_v36 = vld [vmem:[#allocation2 + $0xe98] sm:$0xff] }
  0xf9   :  { %1449 = vmatprep.subr.mxu0 %v455_v46  ;;  %1411 = vmatpush2.msra.mxu1 %v326_v47  ;;  %v735_v37 = vld [vmem:[#allocation2 + $0x1298] sm:$0xff]  ;;  %v606_v38 = vld [vmem:[#allocation2 + $0xe90] sm:$0xff] }
  0xfa   :  { %1450 = vmatpush1.msra.mxu0 %v454_v48  ;;  %1412 = vmatprep.subr.mxu1 %v319_v49  ;;  %v734_v39 = vld [vmem:[#allocation2 + $0x1290] sm:$0xff]  ;;  %v599_v40 = vld [vmem:[#allocation2 + $0xe58] sm:$0xff] }
  0xfb   :  { %1451 = vmatprep.subr.mxu0 %v447_v50  ;;  %1413 = vmatpush2.msra.mxu1 %v318_v51  ;;  %v727_v41 = vld [vmem:[#allocation2 + $0x1258] sm:$0xff]  ;;  %v598_v42 = vld [vmem:[#allocation2 + $0xe50] sm:$0xff] }
  0xfc   :  { %1452 = vmatpush1.msra.mxu0 %v446_v52  ;;  %1414 = vmatprep.subr.mxu1 %v311_v53  ;;  %v726_v43 = vld [vmem:[#allocation2 + $0x1250] sm:$0xff]  ;;  %v591_v44 = vld [vmem:[#allocation2 + $0xe18] sm:$0xff] }
  0xfd   :  { %1453 = vmatprep.subr.mxu0 %v439_v54  ;;  %1415 = vmatpush2.msra.mxu1 %v310_v55  ;;  %v719_v45 = vld [vmem:[#allocation2 + $0x1218] sm:$0xff]  ;;  %v590_v46 = vld [vmem:[#allocation2 + $0xe10] sm:$0xff] }
  0xfe   :  { %1454 = vmatpush1.msra.mxu0 %v438_v56  ;;  %1416 = vmatprep.subr.mxu1 %v303_v57  ;;  %v718_v47 = vld [vmem:[#allocation2 + $0x1210] sm:$0xff]  ;;  %v583_v48 = vld [vmem:[#allocation2 + $0xdd8] sm:$0xff] }
  0xff   :  { %1455 = vmatprep.subr.mxu0 %v431_v58  ;;  %1417 = vmatpush2.msra.mxu1 %v302_v59  ;;  %v711_v49 = vld [vmem:[#allocation2 + $0x11d8] sm:$0xff]  ;;  %v582_v50 = vld [vmem:[#allocation2 + $0xdd0] sm:$0xff] }
 0x100   :  { %1456 = vmatpush1.msra.mxu0 %v430_v60  ;;  %1418 = vmatprep.subr.mxu1 %v295_v61  ;;  %v710_v51 = vld [vmem:[#allocation2 + $0x11d0] sm:$0xff]  ;;  %v575_v52 = vld [vmem:[#allocation2 + $0xd98] sm:$0xff] }
 0x101   :  { %1457 = vmatprep.subr.mxu0 %v423_v62  ;;  %1419 = vmatpush2.msra.mxu1 %v294_v0  ;;  %v703_v53 = vld [vmem:[#allocation2 + $0x1198] sm:$0xff]  ;;  %v574_v54 = vld [vmem:[#allocation2 + $0xd90] sm:$0xff] }
 0x102   :  { %1458 = vmatpush1.msra.mxu0 %v422_v1  ;;  %1420 = vmatprep.subr.mxu1 %v287_v3  ;;  %v702_v55 = vld [vmem:[#allocation2 + $0x1190] sm:$0xff]  ;;  %v567_v56 = vld [vmem:[#allocation2 + $0xd58] sm:$0xff] }
 0x103   :  { %1459 = vmatprep.subr.mxu0 %v415_v4  ;;  %1421 = vmatpush2.msra.mxu1 %v286_v5  ;;  %v695_v57 = vld [vmem:[#allocation2 + $0x1158] sm:$0xff]  ;;  %v566_v58 = vld [vmem:[#allocation2 + $0xd50] sm:$0xff] }
 0x104   :  { %1460 = vmatpush1.msra.mxu0 %v414_v6  ;;  %1422 = vmatprep.subr.mxu1 %v279_v7  ;;  %v694_v59 = vld [vmem:[#allocation2 + $0x1150] sm:$0xff]  ;;  %v559_v60 = vld [vmem:[#allocation2 + $0xd18] sm:$0xff] }
 0x105   :  { %1461 = vmatprep.subr.mxu0 %v407_v8  ;;  %1423 = vmatpush2.msra.mxu1 %v278_v10  ;;  %v687_v61 = vld [vmem:[#allocation2 + $0x1118] sm:$0xff]  ;;  %v558_v62 = vld [vmem:[#allocation2 + $0xd10] sm:$0xff] }
 0x106   :  { %1462 = vmatpush1.msra.mxu0 %v406_v13  ;;  %1424 = vmatprep.subr.mxu1 %v271_v14  ;;  %v686_v0 = vld [vmem:[#allocation2 + $0x1110] sm:$0xff]  ;;  %v551_v1 = vld [vmem:[#allocation2 + $0xcd8] sm:$0xff] }
 0x107   :  { %1463 = vmatprep.subr.mxu0 %v399_v15  ;;  %1425 = vmatpush2.msra.mxu1 %v270_v16  ;;  %v679_v3 = vld [vmem:[#allocation2 + $0x10d8] sm:$0xff]  ;;  %v550_v4 = vld [vmem:[#allocation2 + $0xcd0] sm:$0xff] }
 0x108   :  { %1426 = vmatprep.mubr.f32.mxu1 %v4475_v63  ;;  %1464 = vmatpush1.msra.mxu0 %v398_v17  ;;  %v623_v63 = vld [vmem:[#allocation2 + $0xf18] sm:$0xff]  ;;  %v678_v5 = vld [vmem:[#allocation2 + $0x10d0] sm:$0xff] }
 0x109   :  { %1427 = vmatmul.mubr.f32.vlgmr.msra.gmra.mxu1 %v4483_v2  ;;  %1465 = vmatprep.subr.mxu0 %v647_v18  ;;  %v622_v2 = vld [vmem:[#allocation2 + $0xf10] sm:$0xff]  ;;  %v543_v6 = vld [vmem:[#allocation2 + $0xc98] sm:$0xff] }
 0x10a   :  { %1504 = vmatprep.subr.mxu1 %v775_v19  ;;  %1466 = vmatpush2.msra.mxu0 %v646_v20  ;;  %v671_v7 = vld [vmem:[#allocation2 + $0x1098] sm:$0xff]  ;;  %v542_v8 = vld [vmem:[#allocation2 + $0xc90] sm:$0xff] }
 0x10b   :  { %1505 = vmatpush1.msra.mxu1 %v774_v21  ;;  %1467 = vmatprep.subr.mxu0 %v639_v22  ;;  %v670_v10 = vld [vmem:[#allocation2 + $0x1090] sm:$0xff]  ;;  %v535_v13 = vld [vmem:[#allocation2 + $0xc58] sm:$0xff] }
 0x10c   :  { %1506 = vmatprep.subr.mxu1 %v767_v23  ;;  %1468 = vmatpush2.msra.mxu0 %v638_v24  ;;  %v663_v14 = vld [vmem:[#allocation2 + $0x1058] sm:$0xff]  ;;  %v534_v15 = vld [vmem:[#allocation2 + $0xc50] sm:$0xff] }
 0x10d   :  { %1507 = vmatpush1.msra.mxu1 %v766_v25  ;;  %1469 = vmatprep.subr.mxu0 %v631_v26  ;;  %v662_v16 = vld [vmem:[#allocation2 + $0x1050] sm:$0xff]  ;;  %v527_v17 = vld [vmem:[#allocation2 + $0xc18] sm:$0xff] }
 0x10e   :  { %1508 = vmatprep.subr.mxu1 %v759_v27  ;;  %1470 = vmatpush2.msra.mxu0 %v630_v28  ;;  %v655_v18 = vld [vmem:[#allocation2 + $0x1018] sm:$0xff]  ;;  %v526_v19 = vld [vmem:[#allocation2 + $0xc10] sm:$0xff] }
 0x10f   :  { %1509 = vmatpush1.msra.mxu1 %v758_v29  ;;  %1471 = vmatprep.subr.mxu0 %v623_v63  ;;  %v654_v20 = vld [vmem:[#allocation2 + $0x1010] sm:$0xff]  ;;  %v903_v21 = vld [vmem:[#allocation2 + $0x17d8] sm:$0xff] }
 0x110   :  { %1510 = vmatprep.subr.mxu1 %v751_v30  ;;  %1472 = vmatpush2.msra.mxu0 %v622_v2  ;;  %v1031_v22 = vld [vmem:[#allocation2 + $0x1bd8] sm:$0xff]  ;;  %v902_v24 = vld [vmem:[#allocation2 + $0x17d0] sm:$0xff] }
 0x111   :  { %1511 = vmatpush1.msra.mxu1 %v750_v31  ;;  %1473 = vmatprep.subr.mxu0 %v615_v32  ;;  %v4511_v23 = vld [vmem:[%s4727_s0 + $0x18] sm:$0xff]  ;;  %v1030_v25 = vld [vmem:[#allocation2 + $0x1bd0] sm:$0xff] }
 0x112   :  { %1512 = vmatprep.subr.mxu1 %v743_v33  ;;  %1474 = vmatpush2.msra.mxu0 %v614_v34  ;;  %v4517_v26 = vld [vmem:[%s4727_s0 + $0x10] sm:$0xff]  ;;  %v895_v27 = vld [vmem:[#allocation2 + $0x1798] sm:$0xff] }
 0x113   :  { %1513 = vmatpush1.msra.mxu1 %v742_v35  ;;  %1475 = vmatprep.subr.mxu0 %v607_v36  ;;  %v1023_v28 = vld [vmem:[#allocation2 + $0x1b98] sm:$0xff]  ;;  %v894_v29 = vld [vmem:[#allocation2 + $0x1790] sm:$0xff] }
 0x114   :  { %1514 = vmatprep.subr.mxu1 %v735_v37  ;;  %1476 = vmatpush2.msra.mxu0 %v606_v38  ;;  %v1022_v63 = vld [vmem:[#allocation2 + $0x1b90] sm:$0xff]  ;;  %v887_v30 = vld [vmem:[#allocation2 + $0x1758] sm:$0xff] }
 0x115   :  { %1515 = vmatpush1.msra.mxu1 %v734_v39  ;;  %1477 = vmatprep.subr.mxu0 %v599_v40  ;;  %v1015_v2 = vld [vmem:[#allocation2 + $0x1b58] sm:$0xff]  ;;  %v886_v31 = vld [vmem:[#allocation2 + $0x1750] sm:$0xff] }
 0x116   :  { %1516 = vmatprep.subr.mxu1 %v727_v41  ;;  %1478 = vmatpush2.msra.mxu0 %v598_v42  ;;  %v1014_v32 = vld [vmem:[#allocation2 + $0x1b50] sm:$0xff]  ;;  %v879_v33 = vld [vmem:[#allocation2 + $0x1718] sm:$0xff] }
 0x117   :  { %1517 = vmatpush1.msra.mxu1 %v726_v43  ;;  %1479 = vmatprep.subr.mxu0 %v591_v44  ;;  %v1007_v34 = vld [vmem:[#allocation2 + $0x1b18] sm:$0xff]  ;;  %v878_v35 = vld [vmem:[#allocation2 + $0x1710] sm:$0xff] }
 0x118   :  { %1518 = vmatprep.subr.mxu1 %v719_v45  ;;  %1480 = vmatpush2.msra.mxu0 %v590_v46  ;;  %v1006_v36 = vld [vmem:[#allocation2 + $0x1b10] sm:$0xff]  ;;  %v871_v37 = vld [vmem:[#allocation2 + $0x16d8] sm:$0xff] }
 0x119   :  { %1519 = vmatpush1.msra.mxu1 %v718_v47  ;;  %1481 = vmatprep.subr.mxu0 %v583_v48  ;;  %v999_v38 = vld [vmem:[#allocation2 + $0x1ad8] sm:$0xff]  ;;  %v870_v39 = vld [vmem:[#allocation2 + $0x16d0] sm:$0xff] }
 0x11a   :  { %1520 = vmatprep.subr.mxu1 %v711_v49  ;;  %1482 = vmatpush2.msra.mxu0 %v582_v50  ;;  %v998_v40 = vld [vmem:[#allocation2 + $0x1ad0] sm:$0xff]  ;;  %v863_v41 = vld [vmem:[#allocation2 + $0x1698] sm:$0xff] }
 0x11b   :  { %1521 = vmatpush1.msra.mxu1 %v710_v51  ;;  %1483 = vmatprep.subr.mxu0 %v575_v52  ;;  %v991_v42 = vld [vmem:[#allocation2 + $0x1a98] sm:$0xff]  ;;  %v862_v43 = vld [vmem:[#allocation2 + $0x1690] sm:$0xff] }
 0x11c   :  { %1522 = vmatprep.subr.mxu1 %v703_v53  ;;  %1484 = vmatpush2.msra.mxu0 %v574_v54  ;;  %v990_v44 = vld [vmem:[#allocation2 + $0x1a90] sm:$0xff]  ;;  %v855_v45 = vld [vmem:[#allocation2 + $0x1658] sm:$0xff] }
 0x11d   :  { %1523 = vmatpush1.msra.mxu1 %v702_v55  ;;  %1485 = vmatprep.subr.mxu0 %v567_v56  ;;  %v983_v46 = vld [vmem:[#allocation2 + $0x1a58] sm:$0xff]  ;;  %v854_v47 = vld [vmem:[#allocation2 + $0x1650] sm:$0xff] }
 0x11e   :  { %1524 = vmatprep.subr.mxu1 %v695_v57  ;;  %1486 = vmatpush2.msra.mxu0 %v566_v58  ;;  %v982_v48 = vld [vmem:[#allocation2 + $0x1a50] sm:$0xff]  ;;  %v847_v49 = vld [vmem:[#allocation2 + $0x1618] sm:$0xff] }
 0x11f   :  { %1525 = vmatpush1.msra.mxu1 %v694_v59  ;;  %1487 = vmatprep.subr.mxu0 %v559_v60  ;;  %v975_v50 = vld [vmem:[#allocation2 + $0x1a18] sm:$0xff]  ;;  %v846_v51 = vld [vmem:[#allocation2 + $0x1610] sm:$0xff] }
 0x120   :  { %1526 = vmatprep.subr.mxu1 %v687_v61  ;;  %1488 = vmatpush2.msra.mxu0 %v558_v62  ;;  %v974_v52 = vld [vmem:[#allocation2 + $0x1a10] sm:$0xff]  ;;  %v839_v53 = vld [vmem:[#allocation2 + $0x15d8] sm:$0xff] }
 0x121   :  { %1527 = vmatpush1.msra.mxu1 %v686_v0  ;;  %1489 = vmatprep.subr.mxu0 %v551_v1  ;;  %v967_v54 = vld [vmem:[#allocation2 + $0x19d8] sm:$0xff]  ;;  %v838_v55 = vld [vmem:[#allocation2 + $0x15d0] sm:$0xff] }
 0x122   :  { %1528 = vmatprep.subr.mxu1 %v679_v3  ;;  %1490 = vmatpush2.msra.mxu0 %v550_v4  ;;  %v966_v56 = vld [vmem:[#allocation2 + $0x19d0] sm:$0xff]  ;;  %v831_v57 = vld [vmem:[#allocation2 + $0x1598] sm:$0xff] }
 0x123   :  { %1529 = vmatpush1.msra.mxu1 %v678_v5  ;;  %1491 = vmatprep.subr.mxu0 %v543_v6  ;;  %v959_v58 = vld [vmem:[#allocation2 + $0x1998] sm:$0xff]  ;;  %v830_v59 = vld [vmem:[#allocation2 + $0x1590] sm:$0xff] }
 0x124   :  { %1530 = vmatprep.subr.mxu1 %v671_v7  ;;  %1492 = vmatpush2.msra.mxu0 %v542_v8  ;;  %v958_v60 = vld [vmem:[#allocation2 + $0x1990] sm:$0xff]  ;;  %v823_v61 = vld [vmem:[#allocation2 + $0x1558] sm:$0xff] }
 0x125   :  { %1531 = vmatpush1.msra.mxu1 %v670_v10  ;;  %1493 = vmatprep.subr.mxu0 %v535_v13  ;;  %v951_v62 = vld [vmem:[#allocation2 + $0x1958] sm:$0xff]  ;;  %v822_v0 = vld [vmem:[#allocation2 + $0x1550] sm:$0xff] }
 0x126   :  { %1532 = vmatprep.subr.mxu1 %v663_v14  ;;  %1494 = vmatpush2.msra.mxu0 %v534_v15  ;;  %v950_v1 = vld [vmem:[#allocation2 + $0x1950] sm:$0xff]  ;;  %v815_v3 = vld [vmem:[#allocation2 + $0x1518] sm:$0xff] }
 0x127   :  { %1533 = vmatpush1.msra.mxu1 %v662_v16  ;;  %1495 = vmatprep.subr.mxu0 %v527_v17  ;;  %v943_v4 = vld [vmem:[#allocation2 + $0x1918] sm:$0xff]  ;;  %v814_v5 = vld [vmem:[#allocation2 + $0x1510] sm:$0xff] }
 0x128   :  { %1534 = vmatprep.subr.mxu1 %v655_v18  ;;  %1496 = vmatpush2.msra.mxu0 %v526_v19  ;;  %v942_v6 = vld [vmem:[#allocation2 + $0x1910] sm:$0xff]  ;;  %v807_v7 = vld [vmem:[#allocation2 + $0x14d8] sm:$0xff] }
 0x129   :  { %1497 = vmatprep.mubr.f32.mxu0 %v4511_v23  ;;  %1535 = vmatpush1.msra.mxu1 %v654_v20  ;;  %v935_v8 = vld [vmem:[#allocation2 + $0x18d8] sm:$0xff]  ;;  %v806_v10 = vld [vmem:[#allocation2 + $0x14d0] sm:$0xff] }
 0x12a   :  { %1498 = vmatmul.mubr.f32.vlgmr.msra.gmra.mxu0 %v4517_v26  ;;  %1536 = vmatprep.subr.mxu1 %v903_v21  ;;  %v934_v13 = vld [vmem:[#allocation2 + $0x18d0] sm:$0xff]  ;;  %v799_v14 = vld [vmem:[#allocation2 + $0x1498] sm:$0xff] }
 0x12b   :  { %1575 = vmatprep.subr.mxu0 %v1031_v22  ;;  %1537 = vmatpush2.msra.mxu1 %v902_v24  ;;  %v927_v15 = vld [vmem:[#allocation2 + $0x1898] sm:$0xff]  ;;  %v798_v16 = vld [vmem:[#allocation2 + $0x1490] sm:$0xff] }
 0x12c   :  { %1576 = vmatpush1.msra.mxu0 %v1030_v25  ;;  %1538 = vmatprep.subr.mxu1 %v895_v27  ;;  %v926_v17 = vld [vmem:[#allocation2 + $0x1890] sm:$0xff]  ;;  %v791_v18 = vld [vmem:[#allocation2 + $0x1458] sm:$0xff] }
 0x12d   :  { %1577 = vmatprep.subr.mxu0 %v1023_v28  ;;  %1539 = vmatpush2.msra.mxu1 %v894_v29  ;;  %v919_v19 = vld [vmem:[#allocation2 + $0x1858] sm:$0xff]  ;;  %v790_v20 = vld [vmem:[#allocation2 + $0x1450] sm:$0xff]  ;;  %v265_v28 = vld [vmem:[#allocation2 + $0x3e8] sm:$0xff] }
 0x12e   :  { %1578 = vmatpush1.msra.mxu0 %v1022_v63  ;;  %1540 = vmatprep.subr.mxu1 %v887_v30  ;;  %v918_v21 = vld [vmem:[#allocation2 + $0x1850] sm:$0xff]  ;;  %v783_v22 = vld [vmem:[#allocation2 + $0x1418] sm:$0xff]  ;;  %v521_v29 = vld [vmem:[#allocation2 + $0xbe8] sm:$0xff] }
 0x12f   :  { %1579 = vmatprep.subr.mxu0 %v1015_v2  ;;  %1541 = vmatpush2.msra.mxu1 %v886_v31  ;;  %v911_v24 = vld [vmem:[#allocation2 + $0x1818] sm:$0xff]  ;;  %v782_v25 = vld [vmem:[#allocation2 + $0x1410] sm:$0xff]  ;;  %v264_v63 = vld [vmem:[#allocation2 + $0x3e0] sm:$0xff] }
 0x130   :  { %1580 = vmatpush1.msra.mxu0 %v1014_v32  ;;  %1542 = vmatprep.subr.mxu1 %v879_v33  ;;  %v910_v27 = vld [vmem:[#allocation2 + $0x1810] sm:$0xff]  ;;  %v520_v30 = vld [vmem:[#allocation2 + $0xbe0] sm:$0xff]  ;;  %v257_v2 = vld [vmem:[#allocation2 + $0x3a8] sm:$0xff] }
 0x131   :  { %1581 = vmatprep.subr.mxu0 %v1007_v34  ;;  %1543 = vmatpush2.msra.mxu1 %v878_v35  ;;  %v513_v31 = vld [vmem:[#allocation2 + $0xba8] sm:$0xff]  ;;  %v4526_v32 = vld [vmem:[%s4727_s0 + $0x30] sm:$0xff]  ;;  %v512_v33 = vld [vmem:[#allocation2 + $0xba0] sm:$0xff] }
 0x132   :  { %1582 = vmatpush1.msra.mxu0 %v1006_v36  ;;  %1544 = vmatprep.subr.mxu1 %v871_v37  ;;  %v505_v34 = vld [vmem:[#allocation2 + $0xb68] sm:$0xff]  ;;  %v248_v35 = vld [vmem:[#allocation2 + $0x360] sm:$0xff] }
 0x133   :  { %1583 = vmatprep.subr.mxu0 %v999_v38  ;;  %1545 = vmatpush2.msra.mxu1 %v870_v39  ;;  %v504_v36 = vld [vmem:[#allocation2 + $0xb60] sm:$0xff]  ;;  %v241_v37 = vld [vmem:[#allocation2 + $0x328] sm:$0xff] }
 0x134   :  { %1584 = vmatpush1.msra.mxu0 %v998_v40  ;;  %1546 = vmatprep.subr.mxu1 %v863_v41  ;;  %v497_v38 = vld [vmem:[#allocation2 + $0xb28] sm:$0xff]  ;;  %v240_v39 = vld [vmem:[#allocation2 + $0x320] sm:$0xff] }
 0x135   :  { %1585 = vmatprep.subr.mxu0 %v991_v42  ;;  %1547 = vmatpush2.msra.mxu1 %v862_v43  ;;  %v496_v40 = vld [vmem:[#allocation2 + $0xb20] sm:$0xff]  ;;  %v233_v41 = vld [vmem:[#allocation2 + $0x2e8] sm:$0xff] }
 0x136   :  { %1586 = vmatpush1.msra.mxu0 %v990_v44  ;;  %1548 = vmatprep.subr.mxu1 %v855_v45  ;;  %v489_v42 = vld [vmem:[#allocation2 + $0xae8] sm:$0xff]  ;;  %v232_v43 = vld [vmem:[#allocation2 + $0x2e0] sm:$0xff] }
 0x137   :  { %1587 = vmatprep.subr.mxu0 %v983_v46  ;;  %1549 = vmatpush2.msra.mxu1 %v854_v47  ;;  %v488_v44 = vld [vmem:[#allocation2 + $0xae0] sm:$0xff]  ;;  %v225_v45 = vld [vmem:[#allocation2 + $0x2a8] sm:$0xff] }
 0x138   :  { %1588 = vmatpush1.msra.mxu0 %v982_v48  ;;  %1550 = vmatprep.subr.mxu1 %v847_v49  ;;  %v481_v46 = vld [vmem:[#allocation2 + $0xaa8] sm:$0xff]  ;;  %v224_v47 = vld [vmem:[#allocation2 + $0x2a0] sm:$0xff] }
 0x139   :  { %1589 = vmatprep.subr.mxu0 %v975_v50  ;;  %1551 = vmatpush2.msra.mxu1 %v846_v51  ;;  %v480_v48 = vld [vmem:[#allocation2 + $0xaa0] sm:$0xff]  ;;  %v217_v49 = vld [vmem:[#allocation2 + $0x268] sm:$0xff] }
 0x13a   :  { %1590 = vmatpush1.msra.mxu0 %v974_v52  ;;  %1552 = vmatprep.subr.mxu1 %v839_v53  ;;  %v473_v50 = vld [vmem:[#allocation2 + $0xa68] sm:$0xff]  ;;  %v216_v51 = vld [vmem:[#allocation2 + $0x260] sm:$0xff]  ;;  %v1038_v53 = vlaneseq }
 0x13b   :  { %1591 = vmatprep.subr.mxu0 %v967_v54  ;;  %1553 = vmatpush2.msra.mxu1 %v838_v55  ;;  %v472_v52 = vld [vmem:[#allocation2 + $0xa60] sm:$0xff]  ;;  %v209_v54 = vld [vmem:[#allocation2 + $0x228] sm:$0xff] }
 0x13c   :  { %1592 = vmatpush1.msra.mxu0 %v966_v56  ;;  %1554 = vmatprep.subr.mxu1 %v831_v57  ;;  %v465_v55 = vld [vmem:[#allocation2 + $0xa28] sm:$0xff]  ;;  %v208_v56 = vld [vmem:[#allocation2 + $0x220] sm:$0xff] }
 0x13d   :  { %1593 = vmatprep.subr.mxu0 %v959_v58  ;;  %1555 = vmatpush2.msra.mxu1 %v830_v59  ;;  %v464_v57 = vld [vmem:[#allocation2 + $0xa20] sm:$0xff]  ;;  %v201_v58 = vld [vmem:[#allocation2 + $0x1e8] sm:$0xff] }
 0x13e   :  { %1594 = vmatpush1.msra.mxu0 %v958_v60  ;;  %1556 = vmatprep.subr.mxu1 %v823_v61  ;;  %v457_v59 = vld [vmem:[#allocation2 + $0x9e8] sm:$0xff]  ;;  %v200_v60 = vld [vmem:[#allocation2 + $0x1e0] sm:$0xff] }
 0x13f   :  { %1595 = vmatprep.subr.mxu0 %v951_v62  ;;  %1557 = vmatpush2.msra.mxu1 %v822_v0  ;;  %v456_v61 = vld [vmem:[#allocation2 + $0x9e0] sm:$0xff]  ;;  %v4529_v62 = vshrl.u32 %v1038_v53, 7  ;;  %v193_v0 = vld [vmem:[#allocation2 + $0x1a8] sm:$0xff] }
 0x140   :  { %1596 = vmatpush1.msra.mxu0 %v950_v1  ;;  %1558 = vmatprep.subr.mxu1 %v815_v3  ;;  %v449_v1 = vld [vmem:[#allocation2 + $0x9a8] sm:$0xff]  ;;  %v192_v3 = vld [vmem:[#allocation2 + $0x1a0] sm:$0xff] }
 0x141   :  { %1597 = vmatprep.subr.mxu0 %v943_v4  ;;  %1559 = vmatpush2.msra.mxu1 %v814_v5  ;;  %v448_v4 = vld [vmem:[#allocation2 + $0x9a0] sm:$0xff]  ;;  %v185_v5 = vld [vmem:[#allocation2 + $0x168] sm:$0xff] }
 0x142   :  { %1598 = vmatpush1.msra.mxu0 %v942_v6  ;;  %1560 = vmatprep.subr.mxu1 %v807_v7  ;;  %v441_v6 = vld [vmem:[#allocation2 + $0x968] sm:$0xff]  ;;  %v184_v7 = vld [vmem:[#allocation2 + $0x160] sm:$0xff] }
 0x143   :  { %1599 = vmatprep.subr.mxu0 %v935_v8  ;;  %1561 = vmatpush2.msra.mxu1 %v806_v10  ;;  %v440_v8 = vld [vmem:[#allocation2 + $0x960] sm:$0xff]  ;;  %v4532_v10 = vsub.s32 0, %v4529_v62 }
 0x144   :  { %1600 = vmatpush1.msra.mxu0 %v934_v13  ;;  %1562 = vmatprep.subr.mxu1 %v799_v14  ;;  %v177_v13 = vld [vmem:[#allocation2 + $0x128] sm:$0xff]  ;;  %v624_v53 = vld [vmem:[#allocation2 + $0xf20] sm:$0xff] }
 0x145   :  { %1601 = vmatprep.subr.mxu0 %v927_v15  ;;  %1563 = vmatpush2.msra.mxu1 %v798_v16  ;;  %v433_v14 = vld [vmem:[#allocation2 + $0x928] sm:$0xff]  ;;  %v1036_v15 = vld [vmem:[#allocation4] sm:$0xff] }
 0x146   :  { %1602 = vmatpush1.msra.mxu0 %v926_v17  ;;  %1564 = vmatprep.subr.mxu1 %v791_v18  ;;  %v176_v16 = vld [vmem:[#allocation2 + $0x120] sm:$0xff]  ;;  %v169_v18 = vld [vmem:[#allocation2 + $0xe8] sm:$0xff] }
 0x147   :  { %1603 = vmatprep.subr.mxu0 %v919_v19  ;;  %1565 = vmatpush2.msra.mxu1 %v790_v20  ;;  %v432_v17 = vld [vmem:[#allocation2 + $0x920] sm:$0xff]  ;;  %v425_v19 = vld [vmem:[#allocation2 + $0x8e8] sm:$0xff] }
 0x148   :  { %1604 = vmatpush1.msra.mxu0 %v918_v21  ;;  %1566 = vmatprep.subr.mxu1 %v783_v22  ;;  %v168_v20 = vld [vmem:[#allocation2 + $0xe0] sm:$0xff]  ;;  %v1041_v22 = vrot.slane %v1036_v15, %v4532_v10 }
 0x149   :  { %1605 = vmatprep.subr.mxu0 %v911_v24  ;;  %1567 = vmatpush2.msra.mxu1 %v782_v25  ;;  %v424_v21 = vld [vmem:[#allocation2 + $0x8e0] sm:$0xff]  ;;  %v161_v24 = vld [vmem:[#allocation2 + $0xa8] sm:$0xff] }
 0x14a   :  { %1568 = vmatprep.mubr.f32.mxu1 %v4497_v9  ;;  %1606 = vmatpush1.msra.mxu0 %v910_v27  ;;  %v256_v9 = vld [vmem:[#allocation2 + $0x3a0] sm:$0xff]  ;;  %v417_v25 = vld [vmem:[#allocation2 + $0x8a8] sm:$0xff] }
 0x14b   :  { %1569 = vmatmul.mubr.f32.vlgmr.msra.gmra.mxu1 %v4502_v12  ;;  %1639 = vmatprep.mubr.f32.mxu0 %v4397_v11  ;;  %v249_v12 = vld [vmem:[#allocation2 + $0x368] sm:$0xff]  ;;  %v160_v27 = vld [vmem:[#allocation2 + $0xa0] sm:$0xff] }
 0x14c   :  { %1646 = vmatprep.subr.mxu0 %v265_v28  ;;  %1717 = vmatprep.subr.mxu1 %v521_v29  ;;  %v416_v28 = vld [vmem:[#allocation2 + $0x8a0] sm:$0xff]  ;;  %v153_v29 = vld [vmem:[#allocation2 + $0x68] sm:$0xff] }
 0x14d   :  { %1640 = vmatmul.mubr.f32.vlgmr.msra.gmra.mxu0 %v4526_v32  ;;  %1718 = vmatpush1.msra.mxu1 %v520_v30  ;;  %v328_v15 = vld [vmem:[#allocation2 + $0x5e0] sm:$0xff] }
 0x14e   :  { %1647 = vmatpush1.msra.mxu0 %v264_v63  ;;  %1719 = vmatprep.subr.mxu1 %v513_v31  ;;  %v409_v63 = vld [vmem:[#allocation2 + $0x868] sm:$0xff]  ;;  %v408_v31 = vld [vmem:[#allocation2 + $0x860] sm:$0xff] }
 0x14f   :  { %1648 = vmatprep.subr.mxu0 %v257_v2  ;;  %1720 = vmatpush1.msra.mxu1 %v512_v33  ;;  %v152_v2 = vld [vmem:[#allocation2 + $0x60] sm:$0xff]  ;;  %v145_v33 = vld [vmem:[#allocation2 + $0x28] sm:$0xff] }
 0x150   :  { %1649 = vmatpush1.msra.mxu0 %v256_v9  ;;  %1721 = vmatprep.subr.mxu1 %v505_v34 }
 0x151   :  { %1650 = vmatprep.subr.mxu0 %v249_v12  ;;  %1722 = vmatpush1.msra.mxu1 %v504_v36  ;;  %v401_v12 = vld [vmem:[#allocation2 + $0x828] sm:$0xff]  ;;  %v400_v36 = vld [vmem:[#allocation2 + $0x820] sm:$0xff] }
 0x152   :  { %1651 = vmatpush1.msra.mxu0 %v248_v35  ;;  %1723 = vmatprep.subr.mxu1 %v497_v38  ;;  %v144_v35 = vld [vmem:[#allocation2 + $0x20] sm:$0xff]  ;;  %v393_v38 = vld [vmem:[#allocation2 + $0x7e8] sm:$0xff] }
 0x153   :  { %1652 = vmatprep.subr.mxu0 %v241_v37  ;;  %1724 = vmatpush1.msra.mxu1 %v496_v40  ;;  %v392_v40 = vld [vmem:[#allocation2 + $0x7e0] sm:$0xff] }
 0x154   :  { %1653 = vmatpush1.msra.mxu0 %v240_v39  ;;  %1725 = vmatprep.subr.mxu1 %v489_v42  ;;  %v649_v39 = vld [vmem:[#allocation2 + $0xfe8] sm:$0xff] }
 0x155   :  { %1654 = vmatprep.subr.mxu0 %v233_v41  ;;  %1726 = vmatpush1.msra.mxu1 %v488_v44  ;;  %v648_v41 = vld [vmem:[#allocation2 + $0xfe0] sm:$0xff]  ;;  %v385_v42 = vld [vmem:[#allocation2 + $0x7a8] sm:$0xff] }
 0x156   :  { %1655 = vmatpush1.msra.mxu0 %v232_v43  ;;  %1727 = vmatprep.subr.mxu1 %v481_v46  ;;  %v641_v43 = vld [vmem:[#allocation2 + $0xfa8] sm:$0xff]  ;;  %v384_v44 = vld [vmem:[#allocation2 + $0x7a0] sm:$0xff] }
 0x157   :  { %1656 = vmatprep.subr.mxu0 %v225_v45  ;;  %1728 = vmatpush1.msra.mxu1 %v480_v48  ;;  %v640_v45 = vld [vmem:[#allocation2 + $0xfa0] sm:$0xff]  ;;  %v377_v46 = vld [vmem:[#allocation2 + $0x768] sm:$0xff] }
 0x158   :  { %1657 = vmatpush1.msra.mxu0 %v224_v47  ;;  %1729 = vmatprep.subr.mxu1 %v473_v50  ;;  %v633_v47 = vld [vmem:[#allocation2 + $0xf68] sm:$0xff]  ;;  %v376_v48 = vld [vmem:[#allocation2 + $0x760] sm:$0xff] }
 0x159   :  { %1658 = vmatprep.subr.mxu0 %v217_v49  ;;  %1730 = vmatpush1.msra.mxu1 %v472_v52  ;;  %v632_v49 = vld [vmem:[#allocation2 + $0xf60] sm:$0xff]  ;;  %v369_v50 = vld [vmem:[#allocation2 + $0x728] sm:$0xff] }
 0x15a   :  { %1659 = vmatpush1.msra.mxu0 %v216_v51  ;;  %1731 = vmatprep.subr.mxu1 %v465_v55  ;;  %v625_v51 = vld [vmem:[#allocation2 + $0xf28] sm:$0xff]  ;;  %v368_v52 = vld [vmem:[#allocation2 + $0x720] sm:$0xff] }
 0x15b   :  { %1660 = vmatprep.subr.mxu0 %v209_v54  ;;  %1732 = vmatpush1.msra.mxu1 %v464_v57  ;;  %v361_v54 = vld [vmem:[#allocation2 + $0x6e8] sm:$0xff]  ;;  %v616_v57 = vld [vmem:[#allocation2 + $0xee0] sm:$0xff] }
 0x15c   :  { %1661 = vmatpush1.msra.mxu0 %v208_v56  ;;  %1733 = vmatprep.subr.mxu1 %v457_v59  ;;  %v617_v55 = vld [vmem:[#allocation2 + $0xee8] sm:$0xff]  ;;  %v360_v56 = vld [vmem:[#allocation2 + $0x6e0] sm:$0xff] }
 0x15d   :  { %1662 = vmatprep.subr.mxu0 %v201_v58  ;;  %1734 = vmatpush1.msra.mxu1 %v456_v61  ;;  %v353_v58 = vld [vmem:[#allocation2 + $0x6a8] sm:$0xff]  ;;  %v608_v61 = vld [vmem:[#allocation2 + $0xea0] sm:$0xff] }
 0x15e   :  { %1663 = vmatpush1.msra.mxu0 %v200_v60  ;;  %1735 = vmatprep.subr.mxu1 %v449_v1  ;;  %v609_v59 = vld [vmem:[#allocation2 + $0xea8] sm:$0xff]  ;;  %v352_v60 = vld [vmem:[#allocation2 + $0x6a0] sm:$0xff] }
 0x15f   :  { %1664 = vmatprep.subr.mxu0 %v193_v0  ;;  %1736 = vmatpush1.msra.mxu1 %v448_v4  ;;  %v345_v0 = vld [vmem:[#allocation2 + $0x668] sm:$0xff]  ;;  %v600_v4 = vld [vmem:[#allocation2 + $0xe60] sm:$0xff] }
 0x160   :  { %1665 = vmatpush1.msra.mxu0 %v192_v3  ;;  %1737 = vmatprep.subr.mxu1 %v441_v6  ;;  %v601_v1 = vld [vmem:[#allocation2 + $0xe68] sm:$0xff]  ;;  %v344_v3 = vld [vmem:[#allocation2 + $0x660] sm:$0xff] }
 0x161   :  { %1666 = vmatprep.subr.mxu0 %v185_v5  ;;  %1738 = vmatpush1.msra.mxu1 %v440_v8  ;;  %v337_v5 = vld [vmem:[#allocation2 + $0x628] sm:$0xff]  ;;  %v592_v8 = vld [vmem:[#allocation2 + $0xe20] sm:$0xff] }
 0x162   :  { %1667 = vmatpush1.msra.mxu0 %v184_v7  ;;  %1739 = vmatprep.subr.mxu1 %v433_v14  ;;  %v593_v6 = vld [vmem:[#allocation2 + $0xe28] sm:$0xff]  ;;  %v336_v7 = vld [vmem:[#allocation2 + $0x620] sm:$0xff] }
 0x163   :  { %1668 = vmatprep.subr.mxu0 %v177_v13  ;;  %1740 = vmatpush1.msra.mxu1 %v432_v17  ;;  %v329_v13 = vld [vmem:[#allocation2 + $0x5e8] sm:$0xff] }
 0x164   :  { %1669 = vmatpush1.msra.mxu0 %v176_v16  ;;  %1741 = vmatprep.subr.mxu1 %v425_v19  ;;  %v585_v14 = vld [vmem:[#allocation2 + $0xde8] sm:$0xff]  ;;  %v584_v16 = vld [vmem:[#allocation2 + $0xde0] sm:$0xff] }
 0x165   :  { %1670 = vmatprep.subr.mxu0 %v169_v18  ;;  %1742 = vmatpush1.msra.mxu1 %v424_v21  ;;  %v1144_v30 = vpop.f32.mrf.mxu0  ;;  %v321_v17 = vld [vmem:[#allocation2 + $0x5a8] sm:$0xff]  ;;  %v320_v19 = vld [vmem:[#allocation2 + $0x5a0] sm:$0xff] }
 0x166   :  { %1671 = vmatpush1.msra.mxu0 %v168_v20  ;;  %1743 = vmatprep.subr.mxu1 %v417_v25  ;;  %v1145_v9 = vadd.f32 %v1144_v30, %v1041_v22  ;;  %v1215_v34 = vpop.f32.mrf.mxu1  ;;  %v577_v18 = vld [vmem:[#allocation2 + $0xda8] sm:$0xff]  ;;  %v576_v20 = vld [vmem:[#allocation2 + $0xda0] sm:$0xff] }
 0x167   :  { %1672 = vmatprep.subr.mxu0 %v161_v24  ;;  %1744 = vmatpush1.msra.mxu1 %v416_v28  ;;  %v313_v21 = vld [vmem:[#allocation2 + $0x568] sm:$0xff]  ;;  %v312_v24 = vld [vmem:[#allocation2 + $0x560] sm:$0xff] }
 0x168   :  { %1673 = vmatpush1.msra.mxu0 %v160_v27  ;;  %1745 = vmatprep.subr.mxu1 %v409_v63  ;;  %v4535_v37 = vadd.f32 %v1215_v34, %v1145_v9  ;;  %v569_v22 = vld [vmem:[#allocation2 + $0xd68] sm:$0xff]  ;;  %v568_v25 = vld [vmem:[#allocation2 + $0xd60] sm:$0xff] }
 0x169   :  { %1674 = vmatprep.subr.mxu0 %v153_v29  ;;  %1746 = vmatpush1.msra.mxu1 %v408_v31  ;;  %v305_v27 = vld [vmem:[#allocation2 + $0x528] sm:$0xff]  ;;  %v304_v29 = vld [vmem:[#allocation2 + $0x520] sm:$0xff] }
 0x16a   :  { %1675 = vmatpush1.msra.mxu0 %v152_v2  ;;  %1747 = vmatprep.subr.mxu1 %v401_v12  ;;  %v561_v28 = vld [vmem:[#allocation2 + $0xd28] sm:$0xff]  ;;  %v560_v63 = vld [vmem:[#allocation2 + $0xd20] sm:$0xff] }
 0x16b   :  { %1676 = vmatprep.subr.mxu0 %v145_v33  ;;  %1748 = vmatpush1.msra.mxu1 %v400_v36  ;;  %v297_v30 = vld [vmem:[#allocation2 + $0x4e8] sm:$0xff]  ;;  %v296_v31 = vld [vmem:[#allocation2 + $0x4e0] sm:$0xff] }
 0x16c   :  { %1677 = vmatpush1.msra.mxu0 %v144_v35  ;;  %1749 = vmatprep.subr.mxu1 %v649_v39  ;;  %v553_v2 = vld [vmem:[#allocation2 + $0xce8] sm:$0xff]  ;;  %v552_v9 = vld [vmem:[#allocation2 + $0xce0] sm:$0xff] }
 0x16d   :  { %1678 = vmatprep.subr.mxu0 %v393_v38  ;;  %1750 = vmatpush2.msra.mxu1 %v648_v41  ;;  %v289_v33 = vld [vmem:[#allocation2 + $0x4a8] sm:$0xff]  ;;  %v288_v34 = vld [vmem:[#allocation2 + $0x4a0] sm:$0xff] }
 0x16e   :  { %1679 = vmatpush2.msra.mxu0 %v392_v40  ;;  %1751 = vmatprep.subr.mxu1 %v641_v43  ;;  %v545_v12 = vld [vmem:[#allocation2 + $0xca8] sm:$0xff]  ;;  %v544_v35 = vld [vmem:[#allocation2 + $0xca0] sm:$0xff] }
 0x16f   :  { %1680 = vmatprep.subr.mxu0 %v385_v42  ;;  %1752 = vmatpush2.msra.mxu1 %v640_v45  ;;  %v281_v36 = vld [vmem:[#allocation2 + $0x468] sm:$0xff]  ;;  %v280_v39 = vld [vmem:[#allocation2 + $0x460] sm:$0xff] }
 0x170   :  { %1681 = vmatpush2.msra.mxu0 %v384_v44  ;;  %1753 = vmatprep.subr.mxu1 %v633_v47  ;;  %v537_v38 = vld [vmem:[#allocation2 + $0xc68] sm:$0xff]  ;;  %v536_v40 = vld [vmem:[#allocation2 + $0xc60] sm:$0xff] }
 0x171   :  { %1682 = vmatprep.subr.mxu0 %v377_v46  ;;  %1754 = vmatpush2.msra.mxu1 %v632_v49  ;;  %v273_v41 = vld [vmem:[#allocation2 + $0x428] sm:$0xff]  ;;  %v272_v43 = vld [vmem:[#allocation2 + $0x420] sm:$0xff] }
 0x172   :  { %1683 = vmatpush2.msra.mxu0 %v376_v48  ;;  %1755 = vmatprep.subr.mxu1 %v625_v51  ;;  %v529_v42 = vld [vmem:[#allocation2 + $0xc28] sm:$0xff]  ;;  %v528_v44 = vld [vmem:[#allocation2 + $0xc20] sm:$0xff] }
 0x173   :  { %1684 = vmatprep.subr.mxu0 %v369_v50  ;;  %1756 = vmatpush2.msra.mxu1 %v624_v53  ;;  %v4540_v45 = vld [vmem:[%s4727_s0 + $0x8] sm:$0xff]  ;;  %v776_v48 = vld [vmem:[#allocation2 + $0x13e0] sm:$0xff] }
 0x174   :  { %1685 = vmatpush2.msra.mxu0 %v368_v52  ;;  %1757 = vmatprep.subr.mxu1 %v617_v55  ;;  %v777_v46 = vld [vmem:[#allocation2 + $0x13e8] sm:$0xff]  ;;  %v1032_v49 = vld [vmem:[#allocation2 + $0x1be0] sm:$0xff] }
 0x175   :  { %1686 = vmatprep.subr.mxu0 %v361_v54  ;;  %1758 = vmatpush2.msra.mxu1 %v616_v57  ;;  %v1033_v47 = vld [vmem:[#allocation2 + $0x1be8] sm:$0xff]  ;;  %v4547_v50 = vld [vmem:[%s4727_s0] sm:$0xff] }
 0x176   :  { %1687 = vmatpush2.msra.mxu0 %v360_v56  ;;  %1759 = vmatprep.subr.mxu1 %v609_v59  ;;  %v769_v51 = vld [vmem:[#allocation2 + $0x13a8] sm:$0xff]  ;;  %v768_v53 = vld [vmem:[#allocation2 + $0x13a0] sm:$0xff] }
 0x177   :  { %1688 = vmatprep.subr.mxu0 %v353_v58  ;;  %1760 = vmatpush2.msra.mxu1 %v608_v61  ;;  %v1025_v52 = vld [vmem:[#allocation2 + $0x1ba8] sm:$0xff]  ;;  %v1024_v54 = vld [vmem:[#allocation2 + $0x1ba0] sm:$0xff] }
 0x178   :  { %1689 = vmatpush2.msra.mxu0 %v352_v60  ;;  %1761 = vmatprep.subr.mxu1 %v601_v1  ;;  %v1017_v55 = vld [vmem:[#allocation2 + $0x1b68] sm:$0xff]  ;;  %v760_v56 = vld [vmem:[#allocation2 + $0x1360] sm:$0xff] }
 0x179   :  { %1690 = vmatprep.subr.mxu0 %v345_v0  ;;  %1762 = vmatpush2.msra.mxu1 %v600_v4  ;;  %v1016_v57 = vld [vmem:[#allocation2 + $0x1b60] sm:$0xff]  ;;  %v753_v58 = vld [vmem:[#allocation2 + $0x1328] sm:$0xff] }
 0x17a   :  { %1691 = vmatpush2.msra.mxu0 %v344_v3  ;;  %1763 = vmatprep.subr.mxu1 %v593_v6  ;;  %v1009_v59 = vld [vmem:[#allocation2 + $0x1b28] sm:$0xff]  ;;  %v1008_v60 = vld [vmem:[#allocation2 + $0x1b20] sm:$0xff] }
 0x17b   :  { %1692 = vmatprep.subr.mxu0 %v337_v5  ;;  %1764 = vmatpush2.msra.mxu1 %v592_v8  ;;  %v745_v61 = vld [vmem:[#allocation2 + $0x12e8] sm:$0xff]  ;;  %v744_v1 = vld [vmem:[#allocation2 + $0x12e0] sm:$0xff] }
 0x17c   :  { %1693 = vmatpush2.msra.mxu0 %v336_v7  ;;  %1765 = vmatprep.subr.mxu1 %v585_v14  ;;  %v1001_v0 = vld [vmem:[#allocation2 + $0x1ae8] sm:$0xff]  ;;  %v1000_v3 = vld [vmem:[#allocation2 + $0x1ae0] sm:$0xff] }
 0x17d   :  { %1694 = vmatprep.subr.mxu0 %v329_v13  ;;  %1766 = vmatpush2.msra.mxu1 %v584_v16  ;;  %v737_v4 = vld [vmem:[#allocation2 + $0x12a8] sm:$0xff]  ;;  %v736_v6 = vld [vmem:[#allocation2 + $0x12a0] sm:$0xff] }
 0x17e   :  { %1695 = vmatpush2.msra.mxu0 %v328_v15  ;;  %1767 = vmatprep.subr.mxu1 %v577_v18  ;;  %v993_v5 = vld [vmem:[#allocation2 + $0x1aa8] sm:$0xff]  ;;  %v992_v7 = vld [vmem:[#allocation2 + $0x1aa0] sm:$0xff] }
 0x17f   :  { %1696 = vmatprep.subr.mxu0 %v321_v17  ;;  %1768 = vmatpush2.msra.mxu1 %v576_v20  ;;  %v729_v8 = vld [vmem:[#allocation2 + $0x1268] sm:$0xff]  ;;  %v728_v14 = vld [vmem:[#allocation2 + $0x1260] sm:$0xff] }
 0x180   :  { %1697 = vmatpush2.msra.mxu0 %v320_v19  ;;  %1769 = vmatprep.subr.mxu1 %v569_v22  ;;  %v985_v13 = vld [vmem:[#allocation2 + $0x1a68] sm:$0xff]  ;;  %v984_v15 = vld [vmem:[#allocation2 + $0x1a60] sm:$0xff] }
 0x181   :  { %1698 = vmatprep.subr.mxu0 %v313_v21  ;;  %1770 = vmatpush2.msra.mxu1 %v568_v25  ;;  %v721_v16 = vld [vmem:[#allocation2 + $0x1228] sm:$0xff]  ;;  %v720_v18 = vld [vmem:[#allocation2 + $0x1220] sm:$0xff] }
 0x182   :  { %1699 = vmatpush2.msra.mxu0 %v312_v24  ;;  %1771 = vmatprep.subr.mxu1 %v561_v28  ;;  %v977_v17 = vld [vmem:[#allocation2 + $0x1a28] sm:$0xff]  ;;  %v976_v19 = vld [vmem:[#allocation2 + $0x1a20] sm:$0xff] }
 0x183   :  { %1700 = vmatprep.subr.mxu0 %v305_v27  ;;  %1772 = vmatpush2.msra.mxu1 %v560_v63  ;;  %v713_v20 = vld [vmem:[#allocation2 + $0x11e8] sm:$0xff]  ;;  %v712_v22 = vld [vmem:[#allocation2 + $0x11e0] sm:$0xff] }
 0x184   :  { %1701 = vmatpush2.msra.mxu0 %v304_v29  ;;  %1773 = vmatprep.subr.mxu1 %v553_v2  ;;  %v969_v21 = vld [vmem:[#allocation2 + $0x19e8] sm:$0xff]  ;;  %v968_v24 = vld [vmem:[#allocation2 + $0x19e0] sm:$0xff] }
 0x185   :  { %1702 = vmatprep.subr.mxu0 %v297_v30  ;;  %1774 = vmatpush2.msra.mxu1 %v552_v9  ;;  %v705_v25 = vld [vmem:[#allocation2 + $0x11a8] sm:$0xff]  ;;  %v704_v28 = vld [vmem:[#allocation2 + $0x11a0] sm:$0xff] }
 0x186   :  { %1703 = vmatpush2.msra.mxu0 %v296_v31  ;;  %1775 = vmatprep.subr.mxu1 %v545_v12  ;;  %v961_v27 = vld [vmem:[#allocation2 + $0x19a8] sm:$0xff]  ;;  %v960_v29 = vld [vmem:[#allocation2 + $0x19a0] sm:$0xff] }
 0x187   :  { %1704 = vmatprep.subr.mxu0 %v289_v33  ;;  %1776 = vmatpush2.msra.mxu1 %v544_v35  ;;  %v697_v63 = vld [vmem:[#allocation2 + $0x1168] sm:$0xff]  ;;  %v696_v2 = vld [vmem:[#allocation2 + $0x1160] sm:$0xff] }
 0x188   :  { %1705 = vmatpush2.msra.mxu0 %v288_v34  ;;  %1777 = vmatprep.subr.mxu1 %v537_v38  ;;  %v953_v30 = vld [vmem:[#allocation2 + $0x1968] sm:$0xff]  ;;  %v952_v31 = vld [vmem:[#allocation2 + $0x1960] sm:$0xff] }
 0x189   :  { %1706 = vmatprep.subr.mxu0 %v281_v36  ;;  %1778 = vmatpush2.msra.mxu1 %v536_v40  ;;  %v689_v9 = vld [vmem:[#allocation2 + $0x1128] sm:$0xff]  ;;  %v688_v12 = vld [vmem:[#allocation2 + $0x1120] sm:$0xff]  ;;  %v4551_v40 = vpop.f32.mrf.mxu0 }
 0x18a   :  { %1707 = vmatpush2.msra.mxu0 %v280_v39  ;;  %1779 = vmatprep.subr.mxu1 %v529_v42  ;;  %v945_v33 = vld [vmem:[#allocation2 + $0x1928] sm:$0xff]  ;;  %v944_v34 = vld [vmem:[#allocation2 + $0x1920] sm:$0xff] }
 0x18b   :  { %1708 = vmatprep.subr.mxu0 %v273_v41  ;;  %1710 = vmatprep.mubr.f32.mxu0 %v4540_v45  ;;  %v681_v35 = vld [vmem:[#allocation2 + $0x10e8] sm:$0xff]  ;;  %v680_v38 = vld [vmem:[#allocation2 + $0x10e0] sm:$0xff] }
 0x18c   :  { %1709 = vmatpush2.msra.mxu0 %v272_v43  ;;  %1780 = vmatpush2.msra.mxu1 %v528_v44  ;;  %v937_v36 = vld [vmem:[#allocation2 + $0x18e8] sm:$0xff]  ;;  %v936_v39 = vld [vmem:[#allocation2 + $0x18e0] sm:$0xff] }
 0x18d   :  { %1781 = vmatprep.mubr.f32.mxu1 %v4511_v23  ;;  %1711 = vmatmul.mubr.f32.vlgmr.msra.gmra.mxu0 %v4547_v50  ;;  %v761_v23 = vld [vmem:[#allocation2 + $0x1368] sm:$0xff]  ;;  %v672_v43 = vld [vmem:[#allocation2 + $0x10a0] sm:$0xff] }
 0x18e   :  { %1782 = vmatmul.mubr.f32.vlgmr.msra.gmra.mxu1 %v4517_v26  ;;  %1788 = vmatprep.subr.mxu0 %v777_v46  ;;  %v752_v26 = vld [vmem:[#allocation2 + $0x1320] sm:$0xff]  ;;  %v673_v41 = vld [vmem:[#allocation2 + $0x10a8] sm:$0xff]  ;;  %v4553_v46 = vpop.f32.mrf.mxu1 }
 0x18f   :  { %1859 = vmatprep.subr.mxu1 %v1033_v47  ;;  %1789 = vmatpush1.msra.mxu0 %v776_v48  ;;  %v929_v42 = vld [vmem:[#allocation2 + $0x18a8] sm:$0xff]  ;;  %v928_v44 = vld [vmem:[#allocation2 + $0x18a0] sm:$0xff] }
 0x190   :  { %1860 = vmatpush1.msra.mxu1 %v1032_v49  ;;  %1790 = vmatprep.subr.mxu0 %v769_v51  ;;  %v665_v47 = vld [vmem:[#allocation2 + $0x1068] sm:$0xff]  ;;  %v664_v51 = vld [vmem:[#allocation2 + $0x1060] sm:$0xff] }
 0x191   :  { %1861 = vmatprep.subr.mxu1 %v1025_v52  ;;  %1791 = vmatpush1.msra.mxu0 %v768_v53  ;;  %v921_v48 = vld [vmem:[#allocation2 + $0x1868] sm:$0xff]  ;;  %v920_v52 = vld [vmem:[#allocation2 + $0x1860] sm:$0xff] }
 0x192   :  { %1862 = vmatpush1.msra.mxu1 %v1024_v54  ;;  %1792 = vmatprep.subr.mxu0 %v761_v23  ;;  %v1357_v54 = vpop.f32.mrf.mxu1  ;;  %v657_v23 = vld [vmem:[#allocation2 + $0x1028] sm:$0xff] }
 0x193   :  { %1863 = vmatprep.subr.mxu1 %v1017_v55  ;;  %1793 = vmatpush1.msra.mxu0 %v760_v56  ;;  %v913_v55 = vld [vmem:[#allocation2 + $0x1828] sm:$0xff]  ;;  %v656_v56 = vld [vmem:[#allocation2 + $0x1020] sm:$0xff] }
 0x194   :  { %1864 = vmatpush1.msra.mxu1 %v1016_v57  ;;  %1794 = vmatprep.subr.mxu0 %v753_v58  ;;  %v912_v57 = vld [vmem:[#allocation2 + $0x1820] sm:$0xff] }
 0x195   :  { %1865 = vmatprep.subr.mxu1 %v1009_v59  ;;  %1795 = vmatpush1.msra.mxu0 %v752_v26  ;;  %v905_v59 = vld [vmem:[#allocation2 + $0x17e8] sm:$0xff]  ;;  %v267_v26 = vld [vmem:[#allocation2 + $0x3f8] sm:$0xff] }
 0x196   :  { %1866 = vmatpush1.msra.mxu1 %v1008_v60  ;;  %1796 = vmatprep.subr.mxu0 %v745_v61  ;;  %v266_v60 = vld [vmem:[#allocation2 + $0x3f0] sm:$0xff]  ;;  %v897_v61 = vld [vmem:[#allocation2 + $0x17a8] sm:$0xff] }
 0x197   :  { %1867 = vmatprep.subr.mxu1 %v1001_v0  ;;  %1797 = vmatpush1.msra.mxu0 %v744_v1  ;;  %v259_v0 = vld [vmem:[#allocation2 + $0x3b8] sm:$0xff]  ;;  %v896_v1 = vld [vmem:[#allocation2 + $0x17a0] sm:$0xff] }
 0x198   :  { %1868 = vmatpush1.msra.mxu1 %v1000_v3  ;;  %1798 = vmatprep.subr.mxu0 %v737_v4  ;;  %v258_v3 = vld [vmem:[#allocation2 + $0x3b0] sm:$0xff]  ;;  %v889_v4 = vld [vmem:[#allocation2 + $0x1768] sm:$0xff] }
 0x199   :  { %1869 = vmatprep.subr.mxu1 %v993_v5  ;;  %1799 = vmatpush1.msra.mxu0 %v736_v6  ;;  %v251_v5 = vld [vmem:[#allocation2 + $0x378] sm:$0xff]  ;;  %v888_v6 = vld [vmem:[#allocation2 + $0x1760] sm:$0xff] }
 0x19a   :  { %1870 = vmatpush1.msra.mxu1 %v992_v7  ;;  %1800 = vmatprep.subr.mxu0 %v729_v8  ;;  %v250_v7 = vld [vmem:[#allocation2 + $0x370] sm:$0xff]  ;;  %v881_v8 = vld [vmem:[#allocation2 + $0x1728] sm:$0xff] }
 0x19b   :  { %1871 = vmatprep.subr.mxu1 %v985_v13  ;;  %1801 = vmatpush1.msra.mxu0 %v728_v14  ;;  %v243_v13 = vld [vmem:[#allocation2 + $0x338] sm:$0xff]  ;;  %v880_v14 = vld [vmem:[#allocation2 + $0x1720] sm:$0xff] }
 0x19c   :  { %1872 = vmatpush1.msra.mxu1 %v984_v15  ;;  %1802 = vmatprep.subr.mxu0 %v721_v16  ;;  %v242_v15 = vld [vmem:[#allocation2 + $0x330] sm:$0xff]  ;;  %v235_v16 = vld [vmem:[#allocation2 + $0x2f8] sm:$0xff] }
 0x19d   :  { %1873 = vmatprep.subr.mxu1 %v977_v17  ;;  %1803 = vmatpush1.msra.mxu0 %v720_v18  ;;  %v872_v17 = vld [vmem:[#allocation2 + $0x16e0] sm:$0xff]  ;;  %v234_v18 = vld [vmem:[#allocation2 + $0x2f0] sm:$0xff] }
 0x19e   :  { %1874 = vmatpush1.msra.mxu1 %v976_v19  ;;  %1804 = vmatprep.subr.mxu0 %v713_v20  ;;  %v865_v19 = vld [vmem:[#allocation2 + $0x16a8] sm:$0xff]  ;;  %v227_v20 = vld [vmem:[#allocation2 + $0x2b8] sm:$0xff] }
 0x19f   :  { %1875 = vmatprep.subr.mxu1 %v969_v21  ;;  %1805 = vmatpush1.msra.mxu0 %v712_v22  ;;  %v864_v21 = vld [vmem:[#allocation2 + $0x16a0] sm:$0xff]  ;;  %v226_v22 = vld [vmem:[#allocation2 + $0x2b0] sm:$0xff] }
 0x1a0   :  { %1876 = vmatpush1.msra.mxu1 %v968_v24  ;;  %1806 = vmatprep.subr.mxu0 %v705_v25  ;;  %v857_v24 = vld [vmem:[#allocation2 + $0x1668] sm:$0xff]  ;;  %v219_v25 = vld [vmem:[#allocation2 + $0x278] sm:$0xff] }
 0x1a1   :  { %1877 = vmatprep.subr.mxu1 %v961_v27  ;;  %1807 = vmatpush1.msra.mxu0 %v704_v28  ;;  %v856_v27 = vld [vmem:[#allocation2 + $0x1660] sm:$0xff]  ;;  %v218_v28 = vld [vmem:[#allocation2 + $0x270] sm:$0xff] }
 0x1a2   :  { %1878 = vmatpush1.msra.mxu1 %v960_v29  ;;  %1808 = vmatprep.subr.mxu0 %v697_v63  ;;  %v849_v29 = vld [vmem:[#allocation2 + $0x1628] sm:$0xff]  ;;  %v211_v63 = vld [vmem:[#allocation2 + $0x238] sm:$0xff] }
 0x1a3   :  { %1879 = vmatprep.subr.mxu1 %v953_v30  ;;  %1809 = vmatpush1.msra.mxu0 %v696_v2  ;;  %v848_v30 = vld [vmem:[#allocation2 + $0x1620] sm:$0xff]  ;;  %v210_v2 = vld [vmem:[#allocation2 + $0x230] sm:$0xff] }
 0x1a4   :  { %1880 = vmatpush1.msra.mxu1 %v952_v31  ;;  %1810 = vmatprep.subr.mxu0 %v689_v9  ;;  %v841_v31 = vld [vmem:[#allocation2 + $0x15e8] sm:$0xff]  ;;  %v203_v9 = vld [vmem:[#allocation2 + $0x1f8] sm:$0xff] }
 0x1a5   :  { %1881 = vmatprep.subr.mxu1 %v945_v33  ;;  %1811 = vmatpush1.msra.mxu0 %v688_v12  ;;  %v840_v33 = vld [vmem:[#allocation2 + $0x15e0] sm:$0xff]  ;;  %v202_v12 = vld [vmem:[#allocation2 + $0x1f0] sm:$0xff] }
 0x1a6   :  { %1882 = vmatpush1.msra.mxu1 %v944_v34  ;;  %1812 = vmatprep.subr.mxu0 %v681_v35  ;;  %v833_v34 = vld [vmem:[#allocation2 + $0x15a8] sm:$0xff]  ;;  %v195_v35 = vld [vmem:[#allocation2 + $0x1b8] sm:$0xff] }
 0x1a7   :  { %1883 = vmatprep.subr.mxu1 %v937_v36  ;;  %1813 = vmatpush1.msra.mxu0 %v680_v38  ;;  %v832_v36 = vld [vmem:[#allocation2 + $0x15a0] sm:$0xff]  ;;  %v194_v38 = vld [vmem:[#allocation2 + $0x1b0] sm:$0xff] }
 0x1a8   :  { %1884 = vmatpush1.msra.mxu1 %v936_v39  ;;  %v1286_v49 = vpop.f32.mrf.mxu0  ;;  %1814 = vmatprep.subr.mxu0 %v673_v41  ;;  %v825_v39 = vld [vmem:[#allocation2 + $0x1568] sm:$0xff]  ;;  %v187_v41 = vld [vmem:[#allocation2 + $0x178] sm:$0xff] }
 0x1a9   :  { %1885 = vmatprep.subr.mxu1 %v929_v42  ;;  %v1287_v53 = vadd.f32 %v1286_v49, %v4535_v37  ;;  %1815 = vmatpush1.msra.mxu0 %v672_v43  ;;  %v904_v37 = vld [vmem:[#allocation2 + $0x17e0] sm:$0xff]  ;;  %v186_v43 = vld [vmem:[#allocation2 + $0x170] sm:$0xff] }
 0x1aa   :  { %1886 = vmatpush1.msra.mxu1 %v928_v44  ;;  %1816 = vmatprep.subr.mxu0 %v665_v47  ;;  %v824_v42 = vld [vmem:[#allocation2 + $0x1560] sm:$0xff]  ;;  %v817_v44 = vld [vmem:[#allocation2 + $0x1528] sm:$0xff]  ;;  %v179_v47 = vld [vmem:[#allocation2 + $0x138] sm:$0xff] }
 0x1ab   :  { %1887 = vmatprep.subr.mxu1 %v921_v48  ;;  %v4556_v58 = vadd.f32 %v1357_v54, %v1287_v53  ;;  %1817 = vmatpush1.msra.mxu0 %v664_v51  ;;  %v816_v48 = vld [vmem:[#allocation2 + $0x1520] sm:$0xff]  ;;  %v178_v49 = vld [vmem:[#allocation2 + $0x130] sm:$0xff]  ;;  %v809_v51 = vld [vmem:[#allocation2 + $0x14e8] sm:$0xff] }
 0x1ac   :  { %1888 = vmatpush1.msra.mxu1 %v920_v52  ;;  %1818 = vmatprep.subr.mxu0 %v657_v23  ;;  %v171_v52 = vld [vmem:[#allocation2 + $0xf8] sm:$0xff]  ;;  %v808_v53 = vld [vmem:[#allocation2 + $0x14e0] sm:$0xff]  ;;  %v170_v54 = vld [vmem:[#allocation2 + $0xf0] sm:$0xff] }
 0x1ad   :  { %1889 = vmatprep.subr.mxu1 %v913_v55  ;;  %1819 = vmatpush1.msra.mxu0 %v656_v56  ;;  %v801_v23 = vld [vmem:[#allocation2 + $0x14a8] sm:$0xff]  ;;  %v163_v55 = vld [vmem:[#allocation2 + $0xb8] sm:$0xff]  ;;  %v800_v56 = vld [vmem:[#allocation2 + $0x14a0] sm:$0xff] }
 0x1ae   :  { %1890 = vmatpush1.msra.mxu1 %v912_v57  ;;  %1923 = vmatprep.mubr.f32.mxu1 %v4397_v11  ;;  %v162_v57 = vld [vmem:[#allocation2 + $0xb0] sm:$0xff] }
 0x1af   :  { %1820 = vmatprep.subr.mxu0 %v905_v59  ;;  %1924 = vmatmul.mubr.f32.vlgmr.msra.gmra.mxu1 %v4526_v32  ;;  %v873_v32 = vld [vmem:[#allocation2 + $0x16e8] sm:$0xff] }
 0x1b0   :  { %1930 = vmatprep.subr.mxu1 %v267_v26  ;;  %1821 = vmatpush2.msra.mxu0 %v904_v37  ;;  %v793_v59 = vld [vmem:[#allocation2 + $0x1468] sm:$0xff]  ;;  %v155_v26 = vld [vmem:[#allocation2 + $0x78] sm:$0xff]  ;;  %v792_v37 = vld [vmem:[#allocation2 + $0x1460] sm:$0xff] }
 0x1b1   :  { %1931 = vmatpush1.msra.mxu1 %v266_v60  ;;  %1822 = vmatprep.subr.mxu0 %v897_v61  ;;  %v154_v60 = vld [vmem:[#allocation2 + $0x70] sm:$0xff]  ;;  %v785_v61 = vld [vmem:[#allocation2 + $0x1428] sm:$0xff] }
 0x1b2   :  { %1932 = vmatprep.subr.mxu1 %v259_v0  ;;  %1823 = vmatpush2.msra.mxu0 %v896_v1  ;;  %v147_v0 = vld [vmem:[#allocation2 + $0x38] sm:$0xff]  ;;  %v784_v1 = vld [vmem:[#allocation2 + $0x1420] sm:$0xff] }
 0x1b3   :  { %1933 = vmatpush1.msra.mxu1 %v258_v3  ;;  %1824 = vmatprep.subr.mxu0 %v889_v4  ;;  %v146_v3 = vld [vmem:[#allocation2 + $0x30] sm:$0xff]  ;;  %v395_v4 = vld [vmem:[#allocation2 + $0x7f8] sm:$0xff] }
 0x1b4   :  { %1934 = vmatprep.subr.mxu1 %v251_v5  ;;  %1825 = vmatpush2.msra.mxu0 %v888_v6  ;;  %v523_v5 = vld [vmem:[#allocation2 + $0xbf8] sm:$0xff]  ;;  %v4563_v6 = vld [vmem:[%s4727_s0 + $0x28] sm:$0xff] }
 0x1b5   :  { %1935 = vmatpush1.msra.mxu1 %v250_v7  ;;  %1826 = vmatprep.subr.mxu0 %v881_v8  ;;  %v394_v7 = vld [vmem:[#allocation2 + $0x7f0] sm:$0xff] }
 0x1b6   :  { %1936 = vmatprep.subr.mxu1 %v243_v13  ;;  %1827 = vmatpush2.msra.mxu0 %v880_v14  ;;  %v522_v8 = vld [vmem:[#allocation2 + $0xbf0] sm:$0xff]  ;;  %v4569_v13 = vld [vmem:[%s4727_s0 + $0x20] sm:$0xff]  ;;  %v387_v14 = vld [vmem:[#allocation2 + $0x7b8] sm:$0xff] }
 0x1b7   :  { %1937 = vmatpush1.msra.mxu1 %v242_v15  ;;  %1828 = vmatprep.subr.mxu0 %v873_v32  ;;  %v515_v15 = vld [vmem:[#allocation2 + $0xbb8] sm:$0xff]  ;;  %v386_v32 = vld [vmem:[#allocation2 + $0x7b0] sm:$0xff] }
 0x1b8   :  { %1938 = vmatprep.subr.mxu1 %v235_v16  ;;  %1829 = vmatpush2.msra.mxu0 %v872_v17  ;;  %v514_v16 = vld [vmem:[#allocation2 + $0xbb0] sm:$0xff]  ;;  %v379_v17 = vld [vmem:[#allocation2 + $0x778] sm:$0xff] }
 0x1b9   :  { %1939 = vmatpush1.msra.mxu1 %v234_v18  ;;  %1830 = vmatprep.subr.mxu0 %v865_v19  ;;  %v507_v18 = vld [vmem:[#allocation2 + $0xb78] sm:$0xff]  ;;  %v378_v19 = vld [vmem:[#allocation2 + $0x770] sm:$0xff] }
 0x1ba   :  { %1940 = vmatprep.subr.mxu1 %v227_v20  ;;  %1831 = vmatpush2.msra.mxu0 %v864_v21  ;;  %v506_v20 = vld [vmem:[#allocation2 + $0xb70] sm:$0xff]  ;;  %v371_v21 = vld [vmem:[#allocation2 + $0x738] sm:$0xff] }
 0x1bb   :  { %1941 = vmatpush1.msra.mxu1 %v226_v22  ;;  %1832 = vmatprep.subr.mxu0 %v857_v24  ;;  %v499_v22 = vld [vmem:[#allocation2 + $0xb38] sm:$0xff]  ;;  %v370_v24 = vld [vmem:[#allocation2 + $0x730] sm:$0xff] }
 0x1bc   :  { %1942 = vmatprep.subr.mxu1 %v219_v25  ;;  %1833 = vmatpush2.msra.mxu0 %v856_v27  ;;  %v498_v25 = vld [vmem:[#allocation2 + $0xb30] sm:$0xff]  ;;  %v363_v27 = vld [vmem:[#allocation2 + $0x6f8] sm:$0xff] }
 0x1bd   :  { %1943 = vmatpush1.msra.mxu1 %v218_v28  ;;  %1834 = vmatprep.subr.mxu0 %v849_v29  ;;  %v491_v28 = vld [vmem:[#allocation2 + $0xaf8] sm:$0xff]  ;;  %v362_v29 = vld [vmem:[#allocation2 + $0x6f0] sm:$0xff] }
 0x1be   :  { %1944 = vmatprep.subr.mxu1 %v211_v63  ;;  %1835 = vmatpush2.msra.mxu0 %v848_v30  ;;  %v490_v63 = vld [vmem:[#allocation2 + $0xaf0] sm:$0xff]  ;;  %v355_v30 = vld [vmem:[#allocation2 + $0x6b8] sm:$0xff] }
 0x1bf   :  { %1945 = vmatpush1.msra.mxu1 %v210_v2  ;;  %1836 = vmatprep.subr.mxu0 %v841_v31  ;;  %v483_v2 = vld [vmem:[#allocation2 + $0xab8] sm:$0xff]  ;;  %v354_v31 = vld [vmem:[#allocation2 + $0x6b0] sm:$0xff] }
 0x1c0   :  { %1946 = vmatprep.subr.mxu1 %v203_v9  ;;  %1837 = vmatpush2.msra.mxu0 %v840_v33  ;;  %v482_v9 = vld [vmem:[#allocation2 + $0xab0] sm:$0xff]  ;;  %v347_v33 = vld [vmem:[#allocation2 + $0x678] sm:$0xff] }
 0x1c1   :  { %1947 = vmatpush1.msra.mxu1 %v202_v12  ;;  %1838 = vmatprep.subr.mxu0 %v833_v34  ;;  %v475_v12 = vld [vmem:[#allocation2 + $0xa78] sm:$0xff]  ;;  %v346_v34 = vld [vmem:[#allocation2 + $0x670] sm:$0xff] }
 0x1c2   :  { %1948 = vmatprep.subr.mxu1 %v195_v35  ;;  %1839 = vmatpush2.msra.mxu0 %v832_v36  ;;  %v474_v35 = vld [vmem:[#allocation2 + $0xa70] sm:$0xff]  ;;  %v339_v36 = vld [vmem:[#allocation2 + $0x638] sm:$0xff] }
 0x1c3   :  { %1949 = vmatpush1.msra.mxu1 %v194_v38  ;;  %1840 = vmatprep.subr.mxu0 %v825_v39  ;;  %v467_v38 = vld [vmem:[#allocation2 + $0xa38] sm:$0xff]  ;;  %v338_v39 = vld [vmem:[#allocation2 + $0x630] sm:$0xff] }
 0x1c4   :  { %1950 = vmatprep.subr.mxu1 %v187_v41  ;;  %1841 = vmatpush2.msra.mxu0 %v824_v42  ;;  %v466_v41 = vld [vmem:[#allocation2 + $0xa30] sm:$0xff]  ;;  %v331_v42 = vld [vmem:[#allocation2 + $0x5f8] sm:$0xff] }
 0x1c5   :  { %1951 = vmatpush1.msra.mxu1 %v186_v43  ;;  %1842 = vmatprep.subr.mxu0 %v817_v44  ;;  %v459_v43 = vld [vmem:[#allocation2 + $0x9f8] sm:$0xff]  ;;  %v330_v44 = vld [vmem:[#allocation2 + $0x5f0] sm:$0xff] }
 0x1c6   :  { %1952 = vmatprep.subr.mxu1 %v179_v47  ;;  %1843 = vmatpush2.msra.mxu0 %v816_v48  ;;  %v458_v47 = vld [vmem:[#allocation2 + $0x9f0] sm:$0xff]  ;;  %v323_v48 = vld [vmem:[#allocation2 + $0x5b8] sm:$0xff] }
 0x1c7   :  { %1953 = vmatpush1.msra.mxu1 %v178_v49  ;;  %1844 = vmatprep.subr.mxu0 %v809_v51  ;;  %v451_v49 = vld [vmem:[#allocation2 + $0x9b8] sm:$0xff]  ;;  %v4573_v51 = vsub.s32 2, %v4529_v62 }
 0x1c8   :  { %1954 = vmatprep.subr.mxu1 %v171_v52  ;;  %1845 = vmatpush2.msra.mxu0 %v808_v53  ;;  %v322_v52 = vld [vmem:[#allocation2 + $0x5b0] sm:$0xff] }
 0x1c9   :  { %1955 = vmatpush1.msra.mxu1 %v170_v54  ;;  %1846 = vmatprep.subr.mxu0 %v801_v23  ;;  %v450_v53 = vld [vmem:[#allocation2 + $0x9b0] sm:$0xff]  ;;  %v315_v54 = vld [vmem:[#allocation2 + $0x578] sm:$0xff] }
 0x1ca   :  { %1956 = vmatprep.subr.mxu1 %v163_v55  ;;  %1847 = vmatpush2.msra.mxu0 %v800_v56  ;;  %v443_v23 = vld [vmem:[#allocation2 + $0x978] sm:$0xff]  ;;  %v314_v55 = vld [vmem:[#allocation2 + $0x570] sm:$0xff] }
 0x1cb   :  { %1957 = vmatpush1.msra.mxu1 %v162_v57  ;;  %1848 = vmatprep.subr.mxu0 %v793_v59  ;;  %v442_v56 = vld [vmem:[#allocation2 + $0x970] sm:$0xff]  ;;  %v4575_v57 = vpop.f32.mrf.mxu1  ;;  %v307_v59 = vld [vmem:[#allocation2 + $0x538] sm:$0xff] }
 0x1cc   :  { %1958 = vmatprep.subr.mxu1 %v155_v26  ;;  %1849 = vmatpush2.msra.mxu0 %v792_v37  ;;  %v435_v26 = vld [vmem:[#allocation2 + $0x938] sm:$0xff]  ;;  %v4577_v37 = vld [vmem:[#allocation4] sm:$0xff] }
 0x1cd   :  { %1959 = vmatpush1.msra.mxu1 %v154_v60  ;;  %1850 = vmatprep.subr.mxu0 %v785_v61  ;;  %v1049_v60 = vrot.slane %v4577_v37, %v4573_v51  ;;  %v306_v61 = vld [vmem:[#allocation2 + $0x530] sm:$0xff] }
 0x1ce   :  { %1960 = vmatprep.subr.mxu1 %v147_v0  ;;  %1851 = vmatpush2.msra.mxu0 %v784_v1  ;;  %v434_v0 = vld [vmem:[#allocation2 + $0x930] sm:$0xff]  ;;  %v1428_v1 = vpop.f32.mrf.mxu1 }
 0x1cf   :  { %1852 = vmatprep.mubr.f32.mxu0 %v4563_v6  ;;  %1961 = vmatpush1.msra.mxu1 %v146_v3  ;;  %v299_v3 = vld [vmem:[#allocation2 + $0x4f8] sm:$0xff] }
 0x1d0   :  { %1853 = vmatmul.mubr.f32.vlgmr.msra.gmra.mxu0 %v4569_v13  ;;  %1962 = vmatprep.subr.mxu1 %v395_v4  ;;  %v427_v4 = vld [vmem:[#allocation2 + $0x8f8] sm:$0xff] }
 0x1d1   :  { %2001 = vmatprep.subr.mxu0 %v523_v5  ;;  %1963 = vmatpush2.msra.mxu1 %v394_v7  ;;  %v298_v5 = vld [vmem:[#allocation2 + $0x4f0] sm:$0xff] }
 0x1d2   :  { %2002 = vmatpush1.msra.mxu0 %v522_v8  ;;  %1964 = vmatprep.subr.mxu1 %v387_v14  ;;  %v426_v7 = vld [vmem:[#allocation2 + $0x8f0] sm:$0xff]  ;;  %v4581_v8 = vpop.f32.mrf.mxu0  ;;  %v291_v14 = vld [vmem:[#allocation2 + $0x4b8] sm:$0xff] }
 0x1d3   :  { %2003 = vmatprep.subr.mxu0 %v515_v15  ;;  %1965 = vmatpush2.msra.mxu1 %v386_v32  ;;  %v419_v15 = vld [vmem:[#allocation2 + $0x8b8] sm:$0xff]  ;;  %v1429_v32 = vadd.f32 %v1428_v1, %v1049_v60 }
 0x1d4   :  { %2004 = vmatpush1.msra.mxu0 %v514_v16  ;;  %1966 = vmatprep.subr.mxu1 %v379_v17  ;;  %v290_v16 = vld [vmem:[#allocation2 + $0x4b0] sm:$0xff]  ;;  %v723_v60 = vld [vmem:[#allocation2 + $0x1238] sm:$0xff] }
 0x1d5   :  { %2005 = vmatprep.subr.mxu0 %v507_v18  ;;  %1967 = vmatpush2.msra.mxu1 %v378_v19  ;;  %v418_v17 = vld [vmem:[#allocation2 + $0x8b0] sm:$0xff]  ;;  %v283_v18 = vld [vmem:[#allocation2 + $0x478] sm:$0xff] }
 0x1d6   :  { %2006 = vmatpush1.msra.mxu0 %v506_v20  ;;  %1968 = vmatprep.subr.mxu1 %v371_v21  ;;  %v411_v19 = vld [vmem:[#allocation2 + $0x878] sm:$0xff]  ;;  %v282_v21 = vld [vmem:[#allocation2 + $0x470] sm:$0xff] }
 0x1d7   :  { %2007 = vmatprep.subr.mxu0 %v499_v22  ;;  %1969 = vmatpush2.msra.mxu1 %v370_v24  ;;  %v410_v22 = vld [vmem:[#allocation2 + $0x870] sm:$0xff]  ;;  %v587_v1 = vld [vmem:[#allocation2 + $0xdf8] sm:$0xff] }
 0x1d8   :  { %2008 = vmatpush1.msra.mxu0 %v498_v25  ;;  %1970 = vmatprep.subr.mxu1 %v363_v27  ;;  %v275_v25 = vld [vmem:[#allocation2 + $0x438] sm:$0xff] }
 0x1d9   :  { %2009 = vmatprep.subr.mxu0 %v491_v28  ;;  %1971 = vmatpush2.msra.mxu1 %v362_v29  ;;  %v403_v27 = vld [vmem:[#allocation2 + $0x838] sm:$0xff]  ;;  %v274_v28 = vld [vmem:[#allocation2 + $0x430] sm:$0xff] }
 0x1da   :  { %2010 = vmatpush1.msra.mxu0 %v490_v63  ;;  %1972 = vmatprep.subr.mxu1 %v355_v30  ;;  %v402_v29 = vld [vmem:[#allocation2 + $0x830] sm:$0xff]  ;;  %v651_v63 = vld [vmem:[#allocation2 + $0xff8] sm:$0xff] }
 0x1db   :  { %2011 = vmatprep.subr.mxu0 %v483_v2  ;;  %1973 = vmatpush2.msra.mxu1 %v354_v31  ;;  %v779_v30 = vld [vmem:[#allocation2 + $0x13f8] sm:$0xff]  ;;  %v650_v2 = vld [vmem:[#allocation2 + $0xff0] sm:$0xff] }
 0x1dc   :  { %2012 = vmatpush1.msra.mxu0 %v482_v9  ;;  %1974 = vmatprep.subr.mxu1 %v347_v33  ;;  %v778_v31 = vld [vmem:[#allocation2 + $0x13f0] sm:$0xff]  ;;  %v643_v9 = vld [vmem:[#allocation2 + $0xfb8] sm:$0xff] }
 0x1dd   :  { %2013 = vmatprep.subr.mxu0 %v475_v12  ;;  %1975 = vmatpush2.msra.mxu1 %v346_v34  ;;  %v771_v33 = vld [vmem:[#allocation2 + $0x13b8] sm:$0xff]  ;;  %v642_v12 = vld [vmem:[#allocation2 + $0xfb0] sm:$0xff] }
 0x1de   :  { %2014 = vmatpush1.msra.mxu0 %v474_v35  ;;  %1976 = vmatprep.subr.mxu1 %v339_v36  ;;  %v770_v34 = vld [vmem:[#allocation2 + $0x13b0] sm:$0xff]  ;;  %v635_v35 = vld [vmem:[#allocation2 + $0xf78] sm:$0xff] }
 0x1df   :  { %2015 = vmatprep.subr.mxu0 %v467_v38  ;;  %1977 = vmatpush2.msra.mxu1 %v338_v39  ;;  %v763_v36 = vld [vmem:[#allocation2 + $0x1378] sm:$0xff]  ;;  %v634_v38 = vld [vmem:[#allocation2 + $0xf70] sm:$0xff] }
 0x1e0   :  { %2016 = vmatpush1.msra.mxu0 %v466_v41  ;;  %1978 = vmatprep.subr.mxu1 %v331_v42  ;;  %v762_v39 = vld [vmem:[#allocation2 + $0x1370] sm:$0xff]  ;;  %v755_v41 = vld [vmem:[#allocation2 + $0x1338] sm:$0xff] }
 0x1e1   :  { %2017 = vmatprep.subr.mxu0 %v459_v43  ;;  %1979 = vmatpush2.msra.mxu1 %v330_v44  ;;  %v754_v42 = vld [vmem:[#allocation2 + $0x1330] sm:$0xff]  ;;  %v619_v43 = vld [vmem:[#allocation2 + $0xef8] sm:$0xff] }
 0x1e2   :  { %2018 = vmatpush1.msra.mxu0 %v458_v47  ;;  %1980 = vmatprep.subr.mxu1 %v323_v48  ;;  %v747_v44 = vld [vmem:[#allocation2 + $0x12f8] sm:$0xff]  ;;  %v618_v47 = vld [vmem:[#allocation2 + $0xef0] sm:$0xff] }
 0x1e3   :  { %2019 = vmatprep.subr.mxu0 %v451_v49  ;;  %1981 = vmatpush2.msra.mxu1 %v322_v52  ;;  %v746_v48 = vld [vmem:[#allocation2 + $0x12f0] sm:$0xff]  ;;  %v611_v49 = vld [vmem:[#allocation2 + $0xeb8] sm:$0xff] }
 0x1e4   :  { %2020 = vmatpush1.msra.mxu0 %v450_v53  ;;  %1982 = vmatprep.subr.mxu1 %v315_v54  ;;  %v739_v52 = vld [vmem:[#allocation2 + $0x12b8] sm:$0xff]  ;;  %v610_v53 = vld [vmem:[#allocation2 + $0xeb0] sm:$0xff] }
 0x1e5   :  { %2021 = vmatprep.subr.mxu0 %v443_v23  ;;  %1983 = vmatpush2.msra.mxu1 %v314_v55  ;;  %v738_v54 = vld [vmem:[#allocation2 + $0x12b0] sm:$0xff]  ;;  %v603_v23 = vld [vmem:[#allocation2 + $0xe78] sm:$0xff] }
 0x1e6   :  { %2022 = vmatpush1.msra.mxu0 %v442_v56  ;;  %1984 = vmatprep.subr.mxu1 %v307_v59  ;;  %v731_v55 = vld [vmem:[#allocation2 + $0x1278] sm:$0xff]  ;;  %v602_v56 = vld [vmem:[#allocation2 + $0xe70] sm:$0xff] }
 0x1e7   :  { %2023 = vmatprep.subr.mxu0 %v435_v26  ;;  %1985 = vmatpush2.msra.mxu1 %v306_v61  ;;  %v730_v59 = vld [vmem:[#allocation2 + $0x1270] sm:$0xff]  ;;  %v595_v26 = vld [vmem:[#allocation2 + $0xe38] sm:$0xff] }
 0x1e8   :  { %2024 = vmatpush1.msra.mxu0 %v434_v0  ;;  %1986 = vmatprep.subr.mxu1 %v299_v3  ;;  %v594_v61 = vld [vmem:[#allocation2 + $0xe30] sm:$0xff]  ;;  %v715_v3 = vld [vmem:[#allocation2 + $0x11f8] sm:$0xff] }
 0x1e9   :  { %2025 = vmatprep.subr.mxu0 %v427_v4  ;;  %1987 = vmatpush2.msra.mxu1 %v298_v5  ;;  %v722_v0 = vld [vmem:[#allocation2 + $0x1230] sm:$0xff] }
 0x1ea   :  { %2026 = vmatpush1.msra.mxu0 %v426_v7  ;;  %v1499_v20 = vpop.f32.mrf.mxu0  ;;  %1988 = vmatprep.subr.mxu1 %v291_v14  ;;  %v586_v4 = vld [vmem:[#allocation2 + $0xdf0] sm:$0xff]  ;;  %v579_v7 = vld [vmem:[#allocation2 + $0xdb8] sm:$0xff] }
 0x1eb   :  { %2027 = vmatprep.subr.mxu0 %v419_v15  ;;  %v4583_v24 = vadd.f32 %v1499_v20, %v1429_v32  ;;  %1989 = vmatpush2.msra.mxu1 %v290_v16  ;;  %v714_v5 = vld [vmem:[#allocation2 + $0x11f0] sm:$0xff]  ;;  %v707_v14 = vld [vmem:[#allocation2 + $0x11b8] sm:$0xff] }
 0x1ec   :  { %2028 = vmatpush1.msra.mxu0 %v418_v17  ;;  %1990 = vmatprep.subr.mxu1 %v283_v18  ;;  %v578_v15 = vld [vmem:[#allocation2 + $0xdb0] sm:$0xff]  ;;  %v571_v16 = vld [vmem:[#allocation2 + $0xd78] sm:$0xff] }
 0x1ed   :  { %2029 = vmatprep.subr.mxu0 %v411_v19  ;;  %1991 = vmatpush2.msra.mxu1 %v282_v21  ;;  %v706_v32 = vld [vmem:[#allocation2 + $0x11b0] sm:$0xff]  ;;  %v699_v17 = vld [vmem:[#allocation2 + $0x1178] sm:$0xff] }
 0x1ee   :  { %2030 = vmatpush1.msra.mxu0 %v410_v22  ;;  %1992 = vmatprep.subr.mxu1 %v275_v25  ;;  %v570_v18 = vld [vmem:[#allocation2 + $0xd70] sm:$0xff]  ;;  %v563_v20 = vld [vmem:[#allocation2 + $0xd38] sm:$0xff] }
 0x1ef   :  { %2031 = vmatprep.subr.mxu0 %v403_v27  ;;  %1993 = vmatpush2.msra.mxu1 %v274_v28  ;;  %v698_v19 = vld [vmem:[#allocation2 + $0x1170] sm:$0xff]  ;;  %v691_v21 = vld [vmem:[#allocation2 + $0x1138] sm:$0xff] }
 0x1f0   :  { %1994 = vmatprep.mubr.f32.mxu1 %v4540_v45  ;;  %2032 = vmatpush1.msra.mxu0 %v402_v29  ;;  %v627_v45 = vld [vmem:[#allocation2 + $0xf38] sm:$0xff]  ;;  %v562_v22 = vld [vmem:[#allocation2 + $0xd30] sm:$0xff] }
 0x1f1   :  { %1995 = vmatmul.mubr.f32.vlgmr.msra.gmra.mxu1 %v4547_v50  ;;  %2033 = vmatprep.subr.mxu0 %v651_v63  ;;  %v626_v50 = vld [vmem:[#allocation2 + $0xf30] sm:$0xff]  ;;  %v555_v27 = vld [vmem:[#allocation2 + $0xcf8] sm:$0xff] }
 0x1f2   :  { %2072 = vmatprep.subr.mxu1 %v779_v30  ;;  %2034 = vmatpush2.msra.mxu0 %v650_v2  ;;  %v690_v25 = vld [vmem:[#allocation2 + $0x1130] sm:$0xff]  ;;  %v683_v28 = vld [vmem:[#allocation2 + $0x10f8] sm:$0xff]  ;;  %v4587_v30 = vpop.f32.mrf.mxu1 }
 0x1f3   :  { %2073 = vmatpush1.msra.mxu1 %v778_v31  ;;  %2035 = vmatprep.subr.mxu0 %v643_v9  ;;  %v554_v29 = vld [vmem:[#allocation2 + $0xcf0] sm:$0xff]  ;;  %v547_v2 = vld [vmem:[#allocation2 + $0xcb8] sm:$0xff] }
 0x1f4   :  { %2074 = vmatprep.subr.mxu1 %v771_v33  ;;  %2036 = vmatpush2.msra.mxu0 %v642_v12  ;;  %v682_v63 = vld [vmem:[#allocation2 + $0x10f0] sm:$0xff]  ;;  %v675_v31 = vld [vmem:[#allocation2 + $0x10b8] sm:$0xff]  ;;  %v4589_v12 = vpop.f32.mrf.mxu0 }
 0x1f5   :  { %2075 = vmatpush1.msra.mxu1 %v770_v34  ;;  %2037 = vmatprep.subr.mxu0 %v635_v35  ;;  %v546_v9 = vld [vmem:[#allocation2 + $0xcb0] sm:$0xff]  ;;  %v539_v34 = vld [vmem:[#allocation2 + $0xc78] sm:$0xff] }
 0x1f6   :  { %2076 = vmatprep.subr.mxu1 %v763_v36  ;;  %2038 = vmatpush2.msra.mxu0 %v634_v38  ;;  %v674_v33 = vld [vmem:[#allocation2 + $0x10b0] sm:$0xff]  ;;  %v667_v35 = vld [vmem:[#allocation2 + $0x1078] sm:$0xff] }
 0x1f7   :  { %2077 = vmatpush1.msra.mxu1 %v762_v39  ;;  %2039 = vmatprep.subr.mxu0 %v627_v45  ;;  %v538_v38 = vld [vmem:[#allocation2 + $0xc70] sm:$0xff] }
 0x1f8   :  { %2078 = vmatprep.subr.mxu1 %v755_v41  ;;  %2040 = vmatpush2.msra.mxu0 %v626_v50  ;;  %v666_v39 = vld [vmem:[#allocation2 + $0x1070] sm:$0xff]  ;;  %v531_v41 = vld [vmem:[#allocation2 + $0xc38] sm:$0xff] }
 0x1f9   :  { %2079 = vmatpush1.msra.mxu1 %v754_v42  ;;  %2041 = vmatprep.subr.mxu0 %v619_v43  ;;  %v659_v50 = vld [vmem:[#allocation2 + $0x1038] sm:$0xff]  ;;  %v530_v43 = vld [vmem:[#allocation2 + $0xc30] sm:$0xff] }
 0x1fa   :  { %2080 = vmatprep.subr.mxu1 %v747_v44  ;;  %2042 = vmatpush2.msra.mxu0 %v618_v47  ;;  %v658_v47 = vld [vmem:[#allocation2 + $0x1030] sm:$0xff] }
 0x1fb   :  { %2081 = vmatpush1.msra.mxu1 %v746_v48  ;;  %2043 = vmatprep.subr.mxu0 %v611_v49  ;;  %v907_v48 = vld [vmem:[#allocation2 + $0x17f8] sm:$0xff] }
 0x1fc   :  { %2082 = vmatprep.subr.mxu1 %v739_v52  ;;  %2044 = vmatpush2.msra.mxu0 %v610_v53  ;;  %v1035_v49 = vld [vmem:[#allocation2 + $0x1bf8] sm:$0xff]  ;;  %v906_v52 = vld [vmem:[#allocation2 + $0x17f0] sm:$0xff] }
 0x1fd   :  { %2083 = vmatpush1.msra.mxu1 %v738_v54  ;;  %2045 = vmatprep.subr.mxu0 %v603_v23  ;;  %v1034_v53 = vld [vmem:[#allocation2 + $0x1bf0] sm:$0xff]  ;;  %v899_v23 = vld [vmem:[#allocation2 + $0x17b8] sm:$0xff] }
 0x1fe   :  { %2084 = vmatprep.subr.mxu1 %v731_v55  ;;  %2046 = vmatpush2.msra.mxu0 %v602_v56  ;;  %v4210_v54 = vld [vmem:[%s4727_s0 + $0x10] sm:$0xff]  ;;  %v1027_v55 = vld [vmem:[#allocation2 + $0x1bb8] sm:$0xff] }
 0x1ff   :  { %2085 = vmatpush1.msra.mxu1 %v730_v59  ;;  %2047 = vmatprep.subr.mxu0 %v595_v26  ;;  %v898_v56 = vld [vmem:[#allocation2 + $0x17b0] sm:$0xff]  ;;  %v891_v26 = vld [vmem:[#allocation2 + $0x1778] sm:$0xff] }
 0x200   :  { %2086 = vmatprep.subr.mxu1 %v723_v60  ;;  %2048 = vmatpush2.msra.mxu0 %v594_v61  ;;  %v1026_v59 = vld [vmem:[#allocation2 + $0x1bb0] sm:$0xff]  ;;  %v1019_v60 = vld [vmem:[#allocation2 + $0x1b78] sm:$0xff] }
 0x201   :  { %2087 = vmatpush1.msra.mxu1 %v722_v0  ;;  %2049 = vmatprep.subr.mxu0 %v587_v1  ;;  %v890_v61 = vld [vmem:[#allocation2 + $0x1770] sm:$0xff]  ;;  %v883_v1 = vld [vmem:[#allocation2 + $0x1738] sm:$0xff] }
 0x202   :  { %2088 = vmatprep.subr.mxu1 %v715_v3  ;;  %2050 = vmatpush2.msra.mxu0 %v586_v4  ;;  %v1018_v0 = vld [vmem:[#allocation2 + $0x1b70] sm:$0xff]  ;;  %v1011_v3 = vld [vmem:[#allocation2 + $0x1b38] sm:$0xff] }
 0x203   :  { %2089 = vmatpush1.msra.mxu1 %v714_v5  ;;  %2051 = vmatprep.subr.mxu0 %v579_v7  ;;  %v882_v4 = vld [vmem:[#allocation2 + $0x1730] sm:$0xff]  ;;  %v875_v7 = vld [vmem:[#allocation2 + $0x16f8] sm:$0xff] }
 0x204   :  { %2090 = vmatprep.subr.mxu1 %v707_v14  ;;  %2052 = vmatpush2.msra.mxu0 %v578_v15  ;;  %v1010_v5 = vld [vmem:[#allocation2 + $0x1b30] sm:$0xff]  ;;  %v1003_v14 = vld [vmem:[#allocation2 + $0x1af8] sm:$0xff] }
 0x205   :  { %2091 = vmatpush1.msra.mxu1 %v706_v32  ;;  %2053 = vmatprep.subr.mxu0 %v571_v16  ;;  %v874_v15 = vld [vmem:[#allocation2 + $0x16f0] sm:$0xff]  ;;  %v867_v16 = vld [vmem:[#allocation2 + $0x16b8] sm:$0xff] }
 0x206   :  { %2092 = vmatprep.subr.mxu1 %v699_v17  ;;  %2054 = vmatpush2.msra.mxu0 %v570_v18  ;;  %v1002_v32 = vld [vmem:[#allocation2 + $0x1af0] sm:$0xff]  ;;  %v995_v17 = vld [vmem:[#allocation2 + $0x1ab8] sm:$0xff] }
 0x207   :  { %2093 = vmatpush1.msra.mxu1 %v698_v19  ;;  %2055 = vmatprep.subr.mxu0 %v563_v20  ;;  %v866_v18 = vld [vmem:[#allocation2 + $0x16b0] sm:$0xff]  ;;  %v859_v20 = vld [vmem:[#allocation2 + $0x1678] sm:$0xff] }
 0x208   :  { %2094 = vmatprep.subr.mxu1 %v691_v21  ;;  %2056 = vmatpush2.msra.mxu0 %v562_v22  ;;  %v994_v19 = vld [vmem:[#allocation2 + $0x1ab0] sm:$0xff]  ;;  %v987_v21 = vld [vmem:[#allocation2 + $0x1a78] sm:$0xff] }
 0x209   :  { %2095 = vmatpush1.msra.mxu1 %v690_v25  ;;  %2057 = vmatprep.subr.mxu0 %v555_v27  ;;  %v858_v22 = vld [vmem:[#allocation2 + $0x1670] sm:$0xff]  ;;  %v4601_v27 = vsub.s32 1, %v4529_v62 }
 0x20a   :  { %2096 = vmatprep.subr.mxu1 %v683_v28  ;;  %2058 = vmatpush2.msra.mxu0 %v554_v29  ;;  %v986_v25 = vld [vmem:[#allocation2 + $0x1a70] sm:$0xff]  ;;  %v851_v28 = vld [vmem:[#allocation2 + $0x1638] sm:$0xff] }
 0x20b   :  { %2097 = vmatpush1.msra.mxu1 %v682_v63  ;;  %v1570_v36 = vpop.f32.mrf.mxu1  ;;  %2059 = vmatprep.subr.mxu0 %v547_v2  ;;  %v979_v29 = vld [vmem:[#allocation2 + $0x1a38] sm:$0xff]  ;;  %v850_v63 = vld [vmem:[#allocation2 + $0x1630] sm:$0xff] }
 0x20c   :  { %2098 = vmatprep.subr.mxu1 %v675_v31  ;;  %v1571_v45 = vadd.f32 %v1570_v36, %v4583_v24  ;;  %2060 = vmatpush2.msra.mxu0 %v546_v9  ;;  %v4209_v24 = vld [vmem:[%s4727_s0 + $0x18] sm:$0xff]  ;;  %v978_v2 = vld [vmem:[#allocation2 + $0x1a30] sm:$0xff]  ;;  %v1045_v36 = vrot.slane %v4577_v37, %v4601_v27 }
 0x20d   :  { %2099 = vmatpush1.msra.mxu1 %v674_v33  ;;  %v1641_v42 = vpop.f32.mrf.mxu0  ;;  %2061 = vmatprep.subr.mxu0 %v539_v34  ;;  %v843_v31 = vld [vmem:[#allocation2 + $0x15f8] sm:$0xff]  ;;  %v4604_v33 = vsub.s32 3, %v4529_v62  ;;  %v842_v34 = vld [vmem:[#allocation2 + $0x15f0] sm:$0xff] }
 0x20e   :  { %2100 = vmatprep.subr.mxu1 %v667_v35  ;;  %v4592_v44 = vadd.f32 %v1641_v42, %v1571_v45  ;;  %2062 = vmatpush2.msra.mxu0 %v538_v38  ;;  %v971_v9 = vld [vmem:[#allocation2 + $0x19f8] sm:$0xff]  ;;  %v970_v35 = vld [vmem:[#allocation2 + $0x19f0] sm:$0xff] }
 0x20f   :  { %2101 = vmatpush1.msra.mxu1 %v666_v39  ;;  %2063 = vmatprep.subr.mxu0 %v531_v41  ;;  %v835_v38 = vld [vmem:[#allocation2 + $0x15b8] sm:$0xff]  ;;  %v834_v45 = vld [vmem:[#allocation2 + $0x15b0] sm:$0xff] }
 0x210   :  { %2102 = vmatprep.subr.mxu1 %v659_v50  ;;  %2064 = vmatpush2.msra.mxu0 %v530_v43  ;;  %v963_v39 = vld [vmem:[#allocation2 + $0x19b8] sm:$0xff]  ;;  %v962_v41 = vld [vmem:[#allocation2 + $0x19b0] sm:$0xff]  ;;  %v1053_v43 = vrot.slane %v4577_v37, %v4604_v33 }
 0x211   :  { %2065 = vmatprep.mubr.f32.mxu0 %v4209_v24  ;;  %2103 = vmatpush1.msra.mxu1 %v658_v47  ;;  %v827_v50 = vld [vmem:[#allocation2 + $0x1578] sm:$0xff]  ;;  %v826_v47 = vld [vmem:[#allocation2 + $0x1570] sm:$0xff] }
 0x212   :  { %2066 = vmatmul.mubr.f32.vlgmr.msra.gmra.mxu0 %v4210_v54  ;;  %2104 = vmatprep.subr.mxu1 %v907_v48  ;;  %v955_v42 = vld [vmem:[#allocation2 + $0x1978] sm:$0xff]  ;;  %v954_v48 = vld [vmem:[#allocation2 + $0x1970] sm:$0xff]  ;;  %v1431_v37 = vadd.f32 %v4587_v30, %v1053_v43 }
 0x213   :  { %2143 = vmatprep.subr.mxu0 %v1035_v49  ;;  %2105 = vmatpush2.msra.mxu1 %v906_v52  ;;  %v1147_v49 = vadd.f32 %v4551_v40, %v1045_v36  ;;  %v819_v24 = vld [vmem:[#allocation2 + $0x1538] sm:$0xff]  ;;  %v946_v54 = vld [vmem:[#allocation2 + $0x1930] sm:$0xff]  ;;  %v2270_v36 = vld [vmem:[#allocation6 + $0x180] sm:$0xff] }
 0x214   :  { %2144 = vmatpush1.msra.mxu0 %v1034_v53  ;;  %2106 = vmatprep.subr.mxu1 %v899_v23  ;;  %v947_v52 = vld [vmem:[#allocation2 + $0x1938] sm:$0xff]  ;;  %v818_v53 = vld [vmem:[#allocation2 + $0x1530] sm:$0xff] }
 0x215   :  { %2145 = vmatprep.subr.mxu0 %v1027_v55  ;;  %2107 = vmatpush2.msra.mxu1 %v898_v56  ;;  %v811_v23 = vld [vmem:[#allocation2 + $0x14f8] sm:$0xff]  ;;  %v810_v56 = vld [vmem:[#allocation2 + $0x14f0] sm:$0xff]  ;;  %v1218_v40 = vadd.f32 %v4553_v46, %v1147_v49 }
 0x216   :  { %2146 = vmatpush1.msra.mxu0 %v1026_v59  ;;  %2108 = vmatprep.subr.mxu1 %v891_v26  ;;  %v939_v55 = vld [vmem:[#allocation2 + $0x18f8] sm:$0xff]  ;;  %v938_v59 = vld [vmem:[#allocation2 + $0x18f0] sm:$0xff]  ;;  %v1572_v26 = vpop.f32.mrf.mxu1 }
 0x217   :  { %2147 = vmatprep.subr.mxu0 %v1019_v60  ;;  %2109 = vmatpush2.msra.mxu1 %v890_v61  ;;  %v803_v60 = vld [vmem:[#allocation2 + $0x14b8] sm:$0xff]  ;;  %v794_v46 = vld [vmem:[#allocation2 + $0x1470] sm:$0xff] }
 0x218   :  { %2148 = vmatpush1.msra.mxu0 %v1018_v0  ;;  %2110 = vmatprep.subr.mxu1 %v883_v1  ;;  %v931_v61 = vld [vmem:[#allocation2 + $0x18b8] sm:$0xff]  ;;  %v1502_v0 = vadd.f32 %v4589_v12, %v1431_v37  ;;  %v802_v1 = vld [vmem:[#allocation2 + $0x14b0] sm:$0xff]  ;;  %v2382_v37 = vld [vmem:[#allocation6 + $0x500] sm:$0xff] }
 0x219   :  { %2149 = vmatprep.subr.mxu0 %v1011_v3  ;;  %2111 = vmatpush2.msra.mxu1 %v882_v4  ;;  %v930_v3 = vld [vmem:[#allocation2 + $0x18b0] sm:$0xff]  ;;  %v1289_v4 = vadd.f32 %v4581_v8, %v1218_v40  ;;  %v795_v30 = vld [vmem:[#allocation2 + $0x1478] sm:$0xff]  ;;  %v2250_v40 = vld [vmem:[#allocation6 + $0xe0] sm:$0xff] }
 0x21a   :  { %2150 = vmatpush1.msra.mxu0 %v1010_v5  ;;  %2112 = vmatprep.subr.mxu1 %v875_v7  ;;  %v923_v5 = vld [vmem:[#allocation2 + $0x1878] sm:$0xff]  ;;  %v1573_v7 = vadd.f32 %v1572_v26, %v1502_v0  ;;  %v914_v8 = vld [vmem:[#allocation2 + $0x1830] sm:$0xff]  ;;  %v2378_v26 = vld [vmem:[#allocation6 + $0x4e0] sm:$0xff] }
 0x21b   :  { %2151 = vmatprep.subr.mxu0 %v1003_v14  ;;  %2113 = vmatpush2.msra.mxu1 %v874_v15  ;;  %v922_v14 = vld [vmem:[#allocation2 + $0x1870] sm:$0xff]  ;;  %v1643_v15 = vpop.f32.mrf.mxu0  ;;  %v915_v12 = vld [vmem:[#allocation2 + $0x1838] sm:$0xff]  ;;  %v2246_v0 = vld [vmem:[#allocation6 + $0xc0] sm:$0xff] }
 0x21c   :  { %2152 = vmatpush1.msra.mxu0 %v1002_v32  ;;  %2114 = vmatprep.subr.mxu1 %v867_v16  ;;  %v787_v32 = vld [vmem:[#allocation2 + $0x1438] sm:$0xff]  ;;  %v786_v16 = vld [vmem:[#allocation2 + $0x1430] sm:$0xff] }
 0x21d   :  { %2153 = vmatprep.subr.mxu0 %v995_v17  ;;  %2115 = vmatpush2.msra.mxu1 %v866_v18  ;;  %v4616_v17 = vadd.f32 %v4575_v57, %v1289_v4  ;;  %v4618_v18 = vadd.f32 %v1643_v15, %v1573_v7  ;;  %v4211_v57 = vld [vmem:[%s4727_s0 + $0x30] sm:$0xff]  ;;  %v2366_v15 = vld [vmem:[#allocation6 + $0x480] sm:$0xff] }
 0x21e   :  { %2154 = vmatpush1.msra.mxu0 %v994_v19  ;;  %2116 = vmatprep.subr.mxu1 %v859_v20  ;;  %v2283_v19 = vld [vmem:[#allocation6 + $0x1e8] sm:$0xff] }
 0x21f   :  { %2155 = vmatprep.subr.mxu0 %v987_v21  ;;  %2117 = vmatpush2.msra.mxu1 %v858_v22  ;;  %v2411_v20 = vld [vmem:[#allocation6 + $0x5e8] sm:$0xff]  ;;  %v2282_v21 = vld [vmem:[#allocation6 + $0x1e0] sm:$0xff]  ;;  %v2215_v22 = vmax.f32 %v4616_v17, 0.0  ;;  %v2261_v17 = vld [vmem:[#allocation6 + $0x138] sm:$0xff] }
 0x220   :  { %2156 = vmatpush1.msra.mxu0 %v986_v25  ;;  %2118 = vmatprep.subr.mxu1 %v851_v28  ;;  %v2410_v25 = vld [vmem:[#allocation6 + $0x5e0] sm:$0xff]  ;;  %v2217_v28 = vmax.f32 %v4618_v18, 0.0  ;;  %v2391_v43 = vld [vmem:[#allocation6 + $0x548] sm:$0xff]  ;;  %v2505_v18 = vld [vmem:[#allocation6 + $0x8d8] sm:$0xff] }
 0x221   :  { %2157 = vmatprep.subr.mxu0 %v979_v29  ;;  %2119 = vmatpush2.msra.mxu1 %v850_v63  ;;  %v2407_v29 = vld [vmem:[#allocation6 + $0x5c8] sm:$0xff]  ;;  %v2406_v63 = vld [vmem:[#allocation6 + $0x5c0] sm:$0xff] }
 0x222   :  { %2158 = vmatpush1.msra.mxu0 %v978_v2  ;;  %2120 = vmatprep.subr.mxu1 %v843_v31  ;;  %v2403_v2 = vld [vmem:[#allocation6 + $0x5a8] sm:$0xff]  ;;  %v2274_v31 = vld [vmem:[#allocation6 + $0x1a0] sm:$0xff] }
 0x223   :  { %2159 = vmatprep.subr.mxu0 %v971_v9  ;;  %2121 = vmatpush2.msra.mxu1 %v842_v34  ;;  %v2402_v9 = vld [vmem:[#allocation6 + $0x5a0] sm:$0xff]  ;;  %v2271_v34 = vld [vmem:[#allocation6 + $0x188] sm:$0xff] }
 0x224   :  { %2160 = vmatpush1.msra.mxu0 %v970_v35  ;;  %2122 = vmatprep.subr.mxu1 %v835_v38  ;;  %v2399_v35 = vld [vmem:[#allocation6 + $0x588] sm:$0xff]  ;;  %v2398_v38 = vld [vmem:[#allocation6 + $0x580] sm:$0xff] }
 0x225   :  { %2161 = vmatprep.subr.mxu0 %v963_v39  ;;  %2123 = vmatpush2.msra.mxu1 %v834_v45  ;;  %v2267_v39 = vld [vmem:[#allocation6 + $0x168] sm:$0xff] }
 0x226   :  { %2162 = vmatpush1.msra.mxu0 %v962_v41  ;;  %2124 = vmatprep.subr.mxu1 %v827_v50  ;;  %v2395_v45 = vld [vmem:[#allocation6 + $0x568] sm:$0xff]  ;;  %v2266_v41 = vld [vmem:[#allocation6 + $0x160] sm:$0xff] }
 0x227   :  { %2163 = vmatprep.subr.mxu0 %v955_v42  ;;  %2125 = vmatpush2.msra.mxu1 %v826_v47  ;;  %v2394_v50 = vld [vmem:[#allocation6 + $0x560] sm:$0xff]  ;;  %v2263_v42 = vld [vmem:[#allocation6 + $0x148] sm:$0xff] }
 0x228   :  { %2164 = vmatpush1.msra.mxu0 %v954_v48  ;;  %2126 = vmatprep.subr.mxu1 %v819_v24  ;;  %v2262_v47 = vld [vmem:[#allocation6 + $0x140] sm:$0xff]  ;;  %v2259_v49 = vld [vmem:[#allocation6 + $0x128] sm:$0xff] }
 0x229   :  { %2165 = vmatprep.subr.mxu0 %v947_v52  ;;  %2127 = vmatpush2.msra.mxu1 %v818_v53  ;;  %v2390_v48 = vld [vmem:[#allocation6 + $0x540] sm:$0xff]  ;;  %v2387_v24 = vld [vmem:[#allocation6 + $0x528] sm:$0xff] }
 0x22a   :  { %2166 = vmatpush1.msra.mxu0 %v946_v54  ;;  %2128 = vmatprep.subr.mxu1 %v811_v23  ;;  %v2258_v52 = vld [vmem:[#allocation6 + $0x120] sm:$0xff]  ;;  %v2255_v54 = vld [vmem:[#allocation6 + $0x108] sm:$0xff] }
 0x22b   :  { %2167 = vmatprep.subr.mxu0 %v939_v55  ;;  %2129 = vmatpush2.msra.mxu1 %v810_v56  ;;  %v2386_v53 = vld [vmem:[#allocation6 + $0x520] sm:$0xff]  ;;  %v2383_v23 = vld [vmem:[#allocation6 + $0x508] sm:$0xff] }
 0x22c   :  { %2168 = vmatpush1.msra.mxu0 %v938_v59  ;;  %2130 = vmatprep.subr.mxu1 %v803_v60  ;;  %v2254_v55 = vld [vmem:[#allocation6 + $0x100] sm:$0xff]  ;;  %v2251_v56 = vld [vmem:[#allocation6 + $0xe8] sm:$0xff] }
 0x22d   :  { %2169 = vmatprep.subr.mxu0 %v931_v61  ;;  %2131 = vmatpush2.msra.mxu1 %v802_v1  ;;  %v2379_v59 = vld [vmem:[#allocation6 + $0x4e8] sm:$0xff]  ;;  %v2374_v1 = vld [vmem:[#allocation6 + $0x4c0] sm:$0xff] }
 0x22e   :  { %2170 = vmatpush1.msra.mxu0 %v930_v3  ;;  %2132 = vmatprep.subr.mxu1 %v795_v30  ;;  %v2247_v60 = vld [vmem:[#allocation6 + $0xc8] sm:$0xff]  ;;  %v2242_v30 = vld [vmem:[#allocation6 + $0xa0] sm:$0xff] }
 0x22f   :  { %2171 = vmatprep.subr.mxu0 %v923_v5  ;;  %2133 = vmatpush2.msra.mxu1 %v794_v46  ;;  %v2375_v61 = vld [vmem:[#allocation6 + $0x4c8] sm:$0xff]  ;;  %v2370_v5 = vld [vmem:[#allocation6 + $0x4a0] sm:$0xff] }
 0x230   :  { %2172 = vmatpush1.msra.mxu0 %v922_v14  ;;  %2134 = vmatprep.subr.mxu1 %v787_v32  ;;  %v2243_v3 = vld [vmem:[#allocation6 + $0xa8] sm:$0xff]  ;;  %v2238_v14 = vld [vmem:[#allocation6 + $0x80] sm:$0xff] }
 0x231   :  { %2173 = vmatprep.subr.mxu0 %v915_v12  ;;  %2135 = vmatpush2.msra.mxu1 %v786_v16  ;;  %v2371_v4 = vld [vmem:[#allocation6 + $0x4a8] sm:$0xff]  ;;  %v2234_v16 = vld [vmem:[#allocation6 + $0x60] sm:$0xff] }
 0x232   :  { %2136 = vmatprep.mubr.f32.mxu1 %v4563_v6  ;;  %2174 = vmatpush1.msra.mxu0 %v914_v8  ;;  %v2279_v6 = vld [vmem:[#allocation6 + $0x1c8] sm:$0xff]  ;;  %v2362_v8 = vld [vmem:[#allocation6 + $0x460] sm:$0xff] }
 0x233   :  { %2207 = vmatprep.mubr.f32.mxu0 %v4397_v11  ;;  %2137 = vmatmul.mubr.f32.vlgmr.msra.gmra.mxu1 %v4569_v13  ;;  %v2278_v11 = vld [vmem:[#allocation6 + $0x1c0] sm:$0xff]  ;;  %v2275_v13 = vld [vmem:[#allocation6 + $0x1a8] sm:$0xff] }
 0x234   :  { %2208 = vmatmul.mubr.f32.vlgmr.msra.gmra.mxu0 %v4211_v57  ;;  %2756 = vmatprep.subr.mxu0 %v2283_v19  ;;  %v2239_v7 = vld [vmem:[#allocation6 + $0x88] sm:$0xff]  ;;  %v2358_v57 = vld [vmem:[#allocation6 + $0x440] sm:$0xff] }
 0x235   :  { %2827 = vmatprep.subr.mxu1 %v2411_v20  ;;  %2757 = vmatpush1.msra.mxu0 %v2282_v21  ;;  %v2367_v46 = vld [vmem:[#allocation6 + $0x488] sm:$0xff]  ;;  %v2230_v21 = vld [vmem:[#allocation6 + $0x40] sm:$0xff] }
 0x236   :  { %2820 = vmatprep.mubr.f32.mxu0 %v2215_v22  ;;  %2828 = vmatpush1.msra.mxu1 %v2410_v25  ;;  %v2235_v32 = vld [vmem:[#allocation6 + $0x68] sm:$0xff] }
 0x237   :  { %2891 = vmatprep.mubr.f32.mxu1 %v2217_v28  ;;  %2758 = vmatprep.subr.mxu0 %v2279_v6  ;;  %v2363_v12 = vld [vmem:[#allocation6 + $0x468] sm:$0xff] }
 0x238   :  { %2829 = vmatprep.subr.mxu1 %v2407_v29  ;;  %2759 = vmatpush1.msra.mxu0 %v2278_v11  ;;  %v2231_v19 = vld [vmem:[#allocation6 + $0x48] sm:$0xff]  ;;  %v2226_v29 = vld [vmem:[#allocation6 + $0x20] sm:$0xff] }
 0x239   :  { %2830 = vmatpush1.msra.mxu1 %v2406_v63  ;;  %2760 = vmatprep.subr.mxu0 %v2275_v13  ;;  %v2359_v20 = vld [vmem:[#allocation6 + $0x448] sm:$0xff]  ;;  %v2354_v11 = vld [vmem:[#allocation6 + $0x420] sm:$0xff] }
 0x23a   :  { %2831 = vmatprep.subr.mxu1 %v2403_v2  ;;  %2761 = vmatpush1.msra.mxu0 %v2274_v31  ;;  %v2227_v25 = vld [vmem:[#allocation6 + $0x28] sm:$0xff]  ;;  %v2222_v2 = vld [vmem:[#allocation6] sm:$0xff] }
 0x23b   :  { %2832 = vmatpush1.msra.mxu1 %v2402_v9  ;;  %2762 = vmatprep.subr.mxu0 %v2271_v34  ;;  %v2355_v6 = vld [vmem:[#allocation6 + $0x428] sm:$0xff]  ;;  %v2350_v31 = vld [vmem:[#allocation6 + $0x400] sm:$0xff] }
 0x23c   :  { %2833 = vmatprep.subr.mxu1 %v2399_v35  ;;  %2763 = vmatpush1.msra.mxu0 %v2270_v36  ;;  %v2223_v63 = vld [vmem:[#allocation6 + $0x8] sm:$0xff]  ;;  %v2346_v35 = vld [vmem:[#allocation6 + $0x3e0] sm:$0xff] }
 0x23d   :  { %2834 = vmatpush1.msra.mxu1 %v2398_v38  ;;  %2764 = vmatprep.subr.mxu0 %v2267_v39  ;;  %v2351_v13 = vld [vmem:[#allocation6 + $0x408] sm:$0xff]  ;;  %v2474_v36 = vld [vmem:[#allocation6 + $0x7e0] sm:$0xff] }
 0x23e   :  { %2835 = vmatprep.subr.mxu1 %v2395_v45  ;;  %2765 = vmatpush1.msra.mxu0 %v2266_v41  ;;  %v2347_v9 = vld [vmem:[#allocation6 + $0x3e8] sm:$0xff]  ;;  %v2342_v45 = vld [vmem:[#allocation6 + $0x3c0] sm:$0xff] }
 0x23f   :  { %2836 = vmatpush1.msra.mxu1 %v2394_v50  ;;  %2766 = vmatprep.subr.mxu0 %v2263_v42  ;;  %v2475_v34 = vld [vmem:[#allocation6 + $0x7e8] sm:$0xff]  ;;  %v2470_v41 = vld [vmem:[#allocation6 + $0x7c0] sm:$0xff] }
 0x240   :  { %2837 = vmatprep.subr.mxu1 %v2391_v43  ;;  %2767 = vmatpush1.msra.mxu0 %v2262_v47  ;;  %v2343_v38 = vld [vmem:[#allocation6 + $0x3c8] sm:$0xff]  ;;  %v2338_v43 = vld [vmem:[#allocation6 + $0x3a0] sm:$0xff] }
 0x241   :  { %2838 = vmatpush1.msra.mxu1 %v2390_v48  ;;  %2768 = vmatprep.subr.mxu0 %v2259_v49  ;;  %v2471_v39 = vld [vmem:[#allocation6 + $0x7c8] sm:$0xff]  ;;  %v2466_v47 = vld [vmem:[#allocation6 + $0x7a0] sm:$0xff] }
 0x242   :  { %2839 = vmatprep.subr.mxu1 %v2387_v24  ;;  %2769 = vmatpush1.msra.mxu0 %v2258_v52  ;;  %v2339_v50 = vld [vmem:[#allocation6 + $0x3a8] sm:$0xff]  ;;  %v2334_v24 = vld [vmem:[#allocation6 + $0x380] sm:$0xff] }
 0x243   :  { %2840 = vmatpush1.msra.mxu1 %v2386_v53  ;;  %2770 = vmatprep.subr.mxu0 %v2255_v54  ;;  %v2467_v42 = vld [vmem:[#allocation6 + $0x7a8] sm:$0xff]  ;;  %v2462_v52 = vld [vmem:[#allocation6 + $0x780] sm:$0xff] }
 0x244   :  { %2841 = vmatprep.subr.mxu1 %v2383_v23  ;;  %2771 = vmatpush1.msra.mxu0 %v2254_v55  ;;  %v2335_v48 = vld [vmem:[#allocation6 + $0x388] sm:$0xff]  ;;  %v2330_v23 = vld [vmem:[#allocation6 + $0x360] sm:$0xff] }
 0x245   :  { %2842 = vmatpush1.msra.mxu1 %v2382_v37  ;;  %2772 = vmatprep.subr.mxu0 %v2251_v56  ;;  %v2463_v49 = vld [vmem:[#allocation6 + $0x788] sm:$0xff]  ;;  %v2458_v55 = vld [vmem:[#allocation6 + $0x760] sm:$0xff] }
 0x246   :  { %2843 = vmatprep.subr.mxu1 %v2379_v59  ;;  %2773 = vmatpush1.msra.mxu0 %v2250_v40  ;;  %v2331_v53 = vld [vmem:[#allocation6 + $0x368] sm:$0xff]  ;;  %v2326_v59 = vld [vmem:[#allocation6 + $0x340] sm:$0xff] }
 0x247   :  { %2844 = vmatpush1.msra.mxu1 %v2378_v26  ;;  %2774 = vmatprep.subr.mxu0 %v2247_v60  ;;  %v2459_v54 = vld [vmem:[#allocation6 + $0x768] sm:$0xff]  ;;  %v2454_v40 = vld [vmem:[#allocation6 + $0x740] sm:$0xff] }
 0x248   :  { %2845 = vmatprep.subr.mxu1 %v2375_v61  ;;  %2775 = vmatpush1.msra.mxu0 %v2246_v0  ;;  %v2327_v37 = vld [vmem:[#allocation6 + $0x348] sm:$0xff]  ;;  %v2322_v61 = vld [vmem:[#allocation6 + $0x320] sm:$0xff] }
 0x249   :  { %2846 = vmatpush1.msra.mxu1 %v2374_v1  ;;  %2776 = vmatprep.subr.mxu0 %v2243_v3  ;;  %v2455_v56 = vld [vmem:[#allocation6 + $0x748] sm:$0xff]  ;;  %v2450_v0 = vld [vmem:[#allocation6 + $0x720] sm:$0xff] }
 0x24a   :  { %2847 = vmatprep.subr.mxu1 %v2371_v4  ;;  %2777 = vmatpush1.msra.mxu0 %v2242_v30  ;;  %v2323_v26 = vld [vmem:[#allocation6 + $0x328] sm:$0xff]  ;;  %v2318_v4 = vld [vmem:[#allocation6 + $0x300] sm:$0xff] }
 0x24b   :  { %2848 = vmatpush1.msra.mxu1 %v2370_v5  ;;  %2778 = vmatprep.subr.mxu0 %v2239_v7  ;;  %v2451_v60 = vld [vmem:[#allocation6 + $0x728] sm:$0xff]  ;;  %v2446_v30 = vld [vmem:[#allocation6 + $0x700] sm:$0xff] }
 0x24c   :  { %2849 = vmatprep.subr.mxu1 %v2367_v46  ;;  %2779 = vmatpush1.msra.mxu0 %v2238_v14  ;;  %v2319_v1 = vld [vmem:[#allocation6 + $0x308] sm:$0xff]  ;;  %v2314_v46 = vld [vmem:[#allocation6 + $0x2e0] sm:$0xff] }
 0x24d   :  { %2850 = vmatpush1.msra.mxu1 %v2366_v15  ;;  %2780 = vmatprep.subr.mxu0 %v2235_v32  ;;  %v2447_v3 = vld [vmem:[#allocation6 + $0x708] sm:$0xff]  ;;  %v2442_v14 = vld [vmem:[#allocation6 + $0x6e0] sm:$0xff] }
 0x24e   :  { %2851 = vmatprep.subr.mxu1 %v2363_v12  ;;  %2781 = vmatpush1.msra.mxu0 %v2234_v16  ;;  %v2315_v5 = vld [vmem:[#allocation6 + $0x2e8] sm:$0xff]  ;;  %v2310_v12 = vld [vmem:[#allocation6 + $0x2c0] sm:$0xff] }
 0x24f   :  { %2852 = vmatpush1.msra.mxu1 %v2362_v8  ;;  %2782 = vmatprep.subr.mxu0 %v2231_v19  ;;  %v2443_v7 = vld [vmem:[#allocation6 + $0x6e8] sm:$0xff]  ;;  %v2438_v16 = vld [vmem:[#allocation6 + $0x6c0] sm:$0xff] }
 0x250   :  { %2853 = vmatprep.subr.mxu1 %v2359_v20  ;;  %2783 = vmatpush1.msra.mxu0 %v2230_v21  ;;  %v2311_v15 = vld [vmem:[#allocation6 + $0x2c8] sm:$0xff]  ;;  %v2306_v20 = vld [vmem:[#allocation6 + $0x2a0] sm:$0xff] }
 0x251   :  { %2854 = vmatpush1.msra.mxu1 %v2358_v57  ;;  %2784 = vmatprep.subr.mxu0 %v2227_v25  ;;  %v2439_v32 = vld [vmem:[#allocation6 + $0x6c8] sm:$0xff]  ;;  %v2434_v21 = vld [vmem:[#allocation6 + $0x6a0] sm:$0xff] }
 0x252   :  { %2855 = vmatprep.subr.mxu1 %v2355_v6  ;;  %2785 = vmatpush1.msra.mxu0 %v2226_v29  ;;  %v2307_v8 = vld [vmem:[#allocation6 + $0x2a8] sm:$0xff]  ;;  %v2302_v6 = vld [vmem:[#allocation6 + $0x280] sm:$0xff] }
 0x253   :  { %2856 = vmatpush1.msra.mxu1 %v2354_v11  ;;  %2786 = vmatprep.subr.mxu0 %v2223_v63  ;;  %v2435_v19 = vld [vmem:[#allocation6 + $0x6a8] sm:$0xff]  ;;  %v2430_v29 = vld [vmem:[#allocation6 + $0x680] sm:$0xff] }
 0x254   :  { %2857 = vmatprep.subr.mxu1 %v2351_v13  ;;  %2787 = vmatpush1.msra.mxu0 %v2222_v2  ;;  %v2303_v57 = vld [vmem:[#allocation6 + $0x288] sm:$0xff]  ;;  %v2298_v13 = vld [vmem:[#allocation6 + $0x260] sm:$0xff] }
 0x255   :  { %2858 = vmatpush1.msra.mxu1 %v2350_v31  ;;  %2788 = vmatprep.subr.mxu0 %v2347_v9  ;;  %v2431_v25 = vld [vmem:[#allocation6 + $0x688] sm:$0xff]  ;;  %v2426_v2 = vld [vmem:[#allocation6 + $0x660] sm:$0xff] }
 0x256   :  { %2859 = vmatprep.subr.mxu1 %v2475_v34  ;;  %2789 = vmatpush2.msra.mxu0 %v2346_v35  ;;  %v2299_v11 = vld [vmem:[#allocation6 + $0x268] sm:$0xff]  ;;  %v2294_v34 = vld [vmem:[#allocation6 + $0x240] sm:$0xff] }
 0x257   :  { %2860 = vmatpush2.msra.mxu1 %v2474_v36  ;;  %2790 = vmatprep.subr.mxu0 %v2343_v38  ;;  %v2427_v63 = vld [vmem:[#allocation6 + $0x668] sm:$0xff]  ;;  %v2422_v35 = vld [vmem:[#allocation6 + $0x640] sm:$0xff] }
 0x258   :  { %2861 = vmatprep.subr.mxu1 %v2471_v39  ;;  %2791 = vmatpush2.msra.mxu0 %v2342_v45  ;;  %v2295_v31 = vld [vmem:[#allocation6 + $0x248] sm:$0xff]  ;;  %v2290_v39 = vld [vmem:[#allocation6 + $0x220] sm:$0xff] }
 0x259   :  { %2862 = vmatpush2.msra.mxu1 %v2470_v41  ;;  %2792 = vmatprep.subr.mxu0 %v2339_v50  ;;  %v2423_v9 = vld [vmem:[#allocation6 + $0x648] sm:$0xff]  ;;  %v2418_v45 = vld [vmem:[#allocation6 + $0x620] sm:$0xff] }
 0x25a   :  { %2863 = vmatprep.subr.mxu1 %v2467_v42  ;;  %2793 = vmatpush2.msra.mxu0 %v2338_v43  ;;  %v2291_v36 = vld [vmem:[#allocation6 + $0x228] sm:$0xff]  ;;  %v2286_v42 = vld [vmem:[#allocation6 + $0x200] sm:$0xff] }
 0x25b   :  { %2864 = vmatpush2.msra.mxu1 %v2466_v47  ;;  %2794 = vmatprep.subr.mxu0 %v2335_v48  ;;  %v2419_v38 = vld [vmem:[#allocation6 + $0x628] sm:$0xff]  ;;  %v2414_v43 = vld [vmem:[#allocation6 + $0x600] sm:$0xff]  ;;  %v2214_v47 = vmax.f32 %v4556_v58, 0.0  ;;  %v2216_v48 = vmax.f32 %v4592_v44, 0.0  ;;  %v2656_v44 = vld [vmem:[#allocation6 + $0xd90] sm:$0xff] }
 0x25c   :  { %2865 = vmatprep.subr.mxu1 %v2463_v49  ;;  %2795 = vmatpush2.msra.mxu0 %v2334_v24  ;;  %v2287_v41 = vld [vmem:[#allocation6 + $0x208] sm:$0xff] }
 0x25d   :  { %2866 = vmatpush2.msra.mxu1 %v2462_v52  ;;  %2796 = vmatprep.subr.mxu0 %v2331_v53  ;;  %v2415_v50 = vld [vmem:[#allocation6 + $0x608] sm:$0xff]  ;;  %v2538_v52 = vld [vmem:[#allocation6 + $0x9e0] sm:$0xff] }
 0x25e   :  { %2867 = vmatprep.subr.mxu1 %v2459_v54  ;;  %2797 = vmatpush2.msra.mxu0 %v2330_v23  ;;  %v2539_v49 = vld [vmem:[#allocation6 + $0x9e8] sm:$0xff]  ;;  %v2666_v53 = vld [vmem:[#allocation6 + $0xde0] sm:$0xff] }
 0x25f   :  { %2868 = vmatpush2.msra.mxu1 %v2458_v55  ;;  %2798 = vmatprep.subr.mxu0 %v2327_v37  ;;  %v2667_v24 = vld [vmem:[#allocation6 + $0xde8] sm:$0xff]  ;;  %v2534_v55 = vld [vmem:[#allocation6 + $0x9c0] sm:$0xff] }
 0x260   :  { %2869 = vmatprep.subr.mxu1 %v2455_v56  ;;  %2799 = vmatpush2.msra.mxu0 %v2326_v59  ;;  %v2535_v54 = vld [vmem:[#allocation6 + $0x9c8] sm:$0xff]  ;;  %v2662_v37 = vld [vmem:[#allocation6 + $0xdc0] sm:$0xff] }
 0x261   :  { %2870 = vmatpush2.msra.mxu1 %v2454_v40  ;;  %2800 = vmatprep.subr.mxu0 %v2323_v26  ;;  %v2663_v23 = vld [vmem:[#allocation6 + $0xdc8] sm:$0xff]  ;;  %v2530_v40 = vld [vmem:[#allocation6 + $0x9a0] sm:$0xff] }
 0x262   :  { %2871 = vmatprep.subr.mxu1 %v2451_v60  ;;  %2801 = vmatpush2.msra.mxu0 %v2322_v61  ;;  %v2531_v56 = vld [vmem:[#allocation6 + $0x9a8] sm:$0xff]  ;;  %v2658_v26 = vld [vmem:[#allocation6 + $0xda0] sm:$0xff] }
 0x263   :  { %2872 = vmatpush2.msra.mxu1 %v2450_v0  ;;  %2802 = vmatprep.subr.mxu0 %v2319_v1  ;;  %v2659_v59 = vld [vmem:[#allocation6 + $0xda8] sm:$0xff]  ;;  %v2526_v0 = vld [vmem:[#allocation6 + $0x980] sm:$0xff] }
 0x264   :  { %2873 = vmatprep.subr.mxu1 %v2447_v3  ;;  %2803 = vmatpush2.msra.mxu0 %v2318_v4  ;;  %v2527_v60 = vld [vmem:[#allocation6 + $0x988] sm:$0xff]  ;;  %v2654_v1 = vld [vmem:[#allocation6 + $0xd80] sm:$0xff] }
 0x265   :  { %2874 = vmatpush2.msra.mxu1 %v2446_v30  ;;  %2804 = vmatprep.subr.mxu0 %v2315_v5  ;;  %v2655_v61 = vld [vmem:[#allocation6 + $0xd88] sm:$0xff]  ;;  %v2522_v30 = vld [vmem:[#allocation6 + $0x960] sm:$0xff] }
 0x266   :  { %2875 = vmatprep.subr.mxu1 %v2443_v7  ;;  %2805 = vmatpush2.msra.mxu0 %v2314_v46  ;;  %v2523_v3 = vld [vmem:[#allocation6 + $0x968] sm:$0xff]  ;;  %v2650_v5 = vld [vmem:[#allocation6 + $0xd60] sm:$0xff] }
 0x267   :  { %2876 = vmatpush2.msra.mxu1 %v2442_v14  ;;  %2806 = vmatprep.subr.mxu0 %v2311_v15  ;;  %v2651_v4 = vld [vmem:[#allocation6 + $0xd68] sm:$0xff]  ;;  %v2518_v14 = vld [vmem:[#allocation6 + $0x940] sm:$0xff] }
 0x268   :  { %2877 = vmatprep.subr.mxu1 %v2439_v32  ;;  %2807 = vmatpush2.msra.mxu0 %v2310_v12  ;;  %v2519_v7 = vld [vmem:[#allocation6 + $0x948] sm:$0xff]  ;;  %v2646_v15 = vld [vmem:[#allocation6 + $0xd40] sm:$0xff] }
 0x269   :  { %2878 = vmatpush2.msra.mxu1 %v2438_v16  ;;  %2808 = vmatprep.subr.mxu0 %v2307_v8  ;;  %v2647_v46 = vld [vmem:[#allocation6 + $0xd48] sm:$0xff]  ;;  %v2514_v16 = vld [vmem:[#allocation6 + $0x920] sm:$0xff] }
 0x26a   :  { %2879 = vmatprep.subr.mxu1 %v2435_v19  ;;  %2809 = vmatpush2.msra.mxu0 %v2306_v20  ;;  %v2515_v32 = vld [vmem:[#allocation6 + $0x928] sm:$0xff]  ;;  %v2642_v8 = vld [vmem:[#allocation6 + $0xd20] sm:$0xff] }
 0x26b   :  { %2880 = vmatpush2.msra.mxu1 %v2434_v21  ;;  %2810 = vmatprep.subr.mxu0 %v2303_v57  ;;  %v2643_v12 = vld [vmem:[#allocation6 + $0xd28] sm:$0xff]  ;;  %v2510_v21 = vld [vmem:[#allocation6 + $0x900] sm:$0xff] }
 0x26c   :  { %2881 = vmatprep.subr.mxu1 %v2431_v25  ;;  %2811 = vmatpush2.msra.mxu0 %v2302_v6  ;;  %v2511_v19 = vld [vmem:[#allocation6 + $0x908] sm:$0xff]  ;;  %v2638_v57 = vld [vmem:[#allocation6 + $0xd00] sm:$0xff] }
 0x26d   :  { %2882 = vmatpush2.msra.mxu1 %v2430_v29  ;;  %2812 = vmatprep.subr.mxu0 %v2299_v11  ;;  %v2639_v20 = vld [vmem:[#allocation6 + $0xd08] sm:$0xff]  ;;  %v1060_v29 = vsub.s32 5, %v4529_v62  ;;  %v2506_v11 = vld [vmem:[#allocation6 + $0x8e0] sm:$0xff] }
 0x26e   :  { %2883 = vmatprep.subr.mxu1 %v2427_v63  ;;  %2813 = vmatpush2.msra.mxu0 %v2298_v13  ;;  %v2507_v25 = vld [vmem:[#allocation6 + $0x8e8] sm:$0xff]  ;;  %v2634_v63 = vld [vmem:[#allocation6 + $0xce0] sm:$0xff]  ;;  %v4639_v13 = vpop.f32.mrf.mxu0 }
 0x26f   :  { %2884 = vmatpush2.msra.mxu1 %v2426_v2  ;;  %2814 = vmatprep.subr.mxu0 %v2295_v31  ;;  %v2635_v6 = vld [vmem:[#allocation6 + $0xce8] sm:$0xff] }
 0x270   :  { %2885 = vmatprep.subr.mxu1 %v2423_v9  ;;  %2815 = vmatpush2.msra.mxu0 %v2294_v34  ;;  %v2503_v2 = vld [vmem:[#allocation6 + $0x8c8] sm:$0xff]  ;;  %v2502_v9 = vld [vmem:[#allocation6 + $0x8c0] sm:$0xff] }
 0x271   :  { %2886 = vmatpush2.msra.mxu1 %v2422_v35  ;;  %2816 = vmatprep.subr.mxu0 %v2291_v36  ;;  %v2631_v31 = vld [vmem:[#allocation6 + $0xcc8] sm:$0xff]  ;;  %v2630_v34 = vld [vmem:[#allocation6 + $0xcc0] sm:$0xff] }
 0x272   :  { %2887 = vmatprep.subr.mxu1 %v2419_v38  ;;  %2817 = vmatpush2.msra.mxu0 %v2290_v39  ;;  %v2499_v35 = vld [vmem:[#allocation6 + $0x8a8] sm:$0xff]  ;;  %v4641_v38 = vld [vmem:[#allocation4] sm:$0xff] }
 0x273   :  { %2888 = vmatpush2.msra.mxu1 %v2418_v45  ;;  %2818 = vmatprep.subr.mxu0 %v2287_v41  ;;  %v2627_v36 = vld [vmem:[#allocation6 + $0xca8] sm:$0xff]  ;;  %v1061_v39 = vrot.slane %v4641_v38, %v1060_v29  ;;  %v2498_v45 = vld [vmem:[#allocation6 + $0x8a0] sm:$0xff] }
 0x274   :  { %2889 = vmatprep.subr.mxu1 %v2415_v50  ;;  %2819 = vmatpush2.msra.mxu0 %v2286_v42  ;;  %v2626_v41 = vld [vmem:[#allocation6 + $0xca0] sm:$0xff]  ;;  %v4644_v50 = vpop.f32.mrf.mxu1  ;;  %v1714_v42 = vpop.f32.mrf.mxu0 }
 0x275   :  { %2890 = vmatpush2.msra.mxu1 %v2414_v43  ;;  %2821 = vmatmul.mubr.f32.vlgmr.msra.gmra.mxu0 %v2214_v47  ;;  %v2495_v43 = vld [vmem:[#allocation6 + $0x888] sm:$0xff]  ;;  %v2598_v29 = vld [vmem:[#allocation6 + $0xbc0] sm:$0xff] }
 0x276   :  { %2892 = vmatmul.mubr.f32.vlgmr.msra.gmra.mxu1 %v2216_v48  ;;  %2898 = vmatprep.subr.mxu0 %v2539_v49  ;;  %v2623_v49 = vld [vmem:[#allocation6 + $0xc88] sm:$0xff] }
 0x277   :  { %2969 = vmatprep.subr.mxu1 %v2667_v24  ;;  %2899 = vmatpush1.msra.mxu0 %v2538_v52  ;;  %v2494_v24 = vld [vmem:[#allocation6 + $0x880] sm:$0xff] }
 0x278   :  { %2970 = vmatpush1.msra.mxu1 %v2666_v53  ;;  %2900 = vmatprep.subr.mxu0 %v2535_v54  ;;  %v2622_v52 = vld [vmem:[#allocation6 + $0xc80] sm:$0xff]  ;;  %v2491_v53 = vld [vmem:[#allocation6 + $0x868] sm:$0xff] }
 0x279   :  { %2971 = vmatprep.subr.mxu1 %v2663_v23  ;;  %2901 = vmatpush1.msra.mxu0 %v2534_v55  ;;  %v2619_v54 = vld [vmem:[#allocation6 + $0xc68] sm:$0xff]  ;;  %v1715_v23 = vadd.f32 %v1714_v42, %v1061_v39  ;;  %v2490_v55 = vld [vmem:[#allocation6 + $0x860] sm:$0xff] }
 0x27a   :  { %2972 = vmatpush1.msra.mxu1 %v2662_v37  ;;  %2902 = vmatprep.subr.mxu0 %v2531_v56  ;;  %v2618_v37 = vld [vmem:[#allocation6 + $0xc60] sm:$0xff]  ;;  %v1785_v56 = vpop.f32.mrf.mxu1  ;;  %v2719_v39 = vld [vmem:[#allocation6 + $0xf88] sm:$0xff] }
 0x27b   :  { %2973 = vmatprep.subr.mxu1 %v2659_v59  ;;  %2903 = vmatpush1.msra.mxu0 %v2530_v40  ;;  %v2487_v59 = vld [vmem:[#allocation6 + $0x848] sm:$0xff]  ;;  %v2586_v42 = vld [vmem:[#allocation6 + $0xb60] sm:$0xff] }
 0x27c   :  { %2974 = vmatpush1.msra.mxu1 %v2658_v26  ;;  %2904 = vmatprep.subr.mxu0 %v2527_v60  ;;  %v2615_v40 = vld [vmem:[#allocation6 + $0xc48] sm:$0xff]  ;;  %v2486_v26 = vld [vmem:[#allocation6 + $0x840] sm:$0xff] }
 0x27d   :  { %2975 = vmatprep.subr.mxu1 %v2655_v61  ;;  %2905 = vmatpush1.msra.mxu0 %v2526_v0  ;;  %v2614_v60 = vld [vmem:[#allocation6 + $0xc40] sm:$0xff]  ;;  %v4646_v61 = vpop.f32.mrf.mxu1  ;;  %v2483_v0 = vld [vmem:[#allocation6 + $0x828] sm:$0xff] }
 0x27e   :  { %2976 = vmatpush1.msra.mxu1 %v2654_v1  ;;  %2906 = vmatprep.subr.mxu0 %v2523_v3  ;;  %v2611_v3 = vld [vmem:[#allocation6 + $0xc28] sm:$0xff] }
 0x27f   :  { %2977 = vmatprep.subr.mxu1 %v2651_v4  ;;  %2907 = vmatpush1.msra.mxu0 %v2522_v30  ;;  %v1786_v4 = vadd.f32 %v1785_v56, %v1715_v23  ;;  %v2482_v30 = vld [vmem:[#allocation6 + $0x820] sm:$0xff]  ;;  %v2579_v23 = vld [vmem:[#allocation6 + $0xb28] sm:$0xff] }
 0x280   :  { %2978 = vmatpush1.msra.mxu1 %v2650_v5  ;;  %2908 = vmatprep.subr.mxu0 %v2519_v7  ;;  %v2610_v5 = vld [vmem:[#allocation6 + $0xc20] sm:$0xff]  ;;  %v2479_v7 = vld [vmem:[#allocation6 + $0x808] sm:$0xff] }
 0x281   :  { %2979 = vmatprep.subr.mxu1 %v2647_v46  ;;  %2909 = vmatpush1.msra.mxu0 %v2518_v14  ;;  %v2607_v14 = vld [vmem:[#allocation6 + $0xc08] sm:$0xff] }
 0x282   :  { %2980 = vmatpush1.msra.mxu1 %v2646_v15  ;;  %2910 = vmatprep.subr.mxu0 %v2515_v32  ;;  %v2478_v15 = vld [vmem:[#allocation6 + $0x800] sm:$0xff]  ;;  %v2707_v56 = vld [vmem:[#allocation6 + $0xf28] sm:$0xff] }
 0x283   :  { %2981 = vmatprep.subr.mxu1 %v2643_v12  ;;  %2911 = vmatpush1.msra.mxu0 %v2514_v16  ;;  %v2606_v12 = vld [vmem:[#allocation6 + $0xc00] sm:$0xff]  ;;  %v1927_v16 = vpop.f32.mrf.mxu1 }
 0x284   :  { %2982 = vmatpush1.msra.mxu1 %v2642_v8  ;;  %2912 = vmatprep.subr.mxu0 %v2511_v19  ;;  %v2603_v8 = vld [vmem:[#allocation6 + $0xbe8] sm:$0xff] }
 0x285   :  { %2983 = vmatprep.subr.mxu1 %v2639_v20  ;;  %2913 = vmatpush1.msra.mxu0 %v2510_v21  ;;  %v2731_v19 = vld [vmem:[#allocation6 + $0xfe8] sm:$0xff]  ;;  %v2602_v20 = vld [vmem:[#allocation6 + $0xbe0] sm:$0xff] }
 0x286   :  { %2984 = vmatpush1.msra.mxu1 %v2638_v57  ;;  %2914 = vmatprep.subr.mxu0 %v2507_v25  ;;  %v2730_v57 = vld [vmem:[#allocation6 + $0xfe0] sm:$0xff]  ;;  %v2599_v25 = vld [vmem:[#allocation6 + $0xbc8] sm:$0xff] }
 0x287   :  { %2985 = vmatprep.subr.mxu1 %v2635_v6  ;;  %2915 = vmatpush1.msra.mxu0 %v2506_v11  ;;  %v2727_v11 = vld [vmem:[#allocation6 + $0xfc8] sm:$0xff] }
 0x288   :  { %2986 = vmatpush1.msra.mxu1 %v2634_v63  ;;  %2916 = vmatprep.subr.mxu0 %v2503_v2  ;;  %v2595_v63 = vld [vmem:[#allocation6 + $0xba8] sm:$0xff]  ;;  %v2726_v2 = vld [vmem:[#allocation6 + $0xfc0] sm:$0xff] }
 0x289   :  { %2987 = vmatprep.subr.mxu1 %v2631_v31  ;;  %2917 = vmatpush1.msra.mxu0 %v2502_v9  ;;  %v2594_v31 = vld [vmem:[#allocation6 + $0xba0] sm:$0xff]  ;;  %v2723_v9 = vld [vmem:[#allocation6 + $0xfa8] sm:$0xff] }
 0x28a   :  { %2988 = vmatpush1.msra.mxu1 %v2630_v34  ;;  %2918 = vmatprep.subr.mxu0 %v2499_v35  ;;  %v2591_v34 = vld [vmem:[#allocation6 + $0xb88] sm:$0xff]  ;;  %v2722_v35 = vld [vmem:[#allocation6 + $0xfa0] sm:$0xff] }
 0x28b   :  { %2989 = vmatprep.subr.mxu1 %v2627_v36  ;;  %2919 = vmatpush1.msra.mxu0 %v2498_v45  ;;  %v2590_v36 = vld [vmem:[#allocation6 + $0xb80] sm:$0xff]  ;;  %v2587_v45 = vld [vmem:[#allocation6 + $0xb68] sm:$0xff] }
 0x28c   :  { %2990 = vmatpush1.msra.mxu1 %v2626_v41  ;;  %2920 = vmatprep.subr.mxu0 %v2495_v43  ;;  %v2718_v41 = vld [vmem:[#allocation6 + $0xf80] sm:$0xff]  ;;  %v2715_v43 = vld [vmem:[#allocation6 + $0xf68] sm:$0xff] }
 0x28d   :  { %2991 = vmatprep.subr.mxu1 %v2623_v49  ;;  %2921 = vmatpush1.msra.mxu0 %v2494_v24  ;;  %v2583_v49 = vld [vmem:[#allocation6 + $0xb48] sm:$0xff]  ;;  %v2714_v24 = vld [vmem:[#allocation6 + $0xf60] sm:$0xff] }
 0x28e   :  { %2992 = vmatpush1.msra.mxu1 %v2622_v52  ;;  %2922 = vmatprep.subr.mxu0 %v2491_v53  ;;  %v1056_v52 = vsub.s32 4, %v4529_v62  ;;  %v2582_v53 = vld [vmem:[#allocation6 + $0xb40] sm:$0xff] }
 0x28f   :  { %2993 = vmatprep.subr.mxu1 %v2619_v54  ;;  %2923 = vmatpush1.msra.mxu0 %v2490_v55  ;;  %v2711_v54 = vld [vmem:[#allocation6 + $0xf48] sm:$0xff]  ;;  %v2710_v55 = vld [vmem:[#allocation6 + $0xf40] sm:$0xff] }
 0x290   :  { %v4648_v1 = vpop.f32.mrf.mxu0  ;;  %2994 = vmatpush1.msra.mxu1 %v2618_v37  ;;  %2924 = vmatprep.subr.mxu0 %v2487_v59  ;;  %v2578_v37 = vld [vmem:[#allocation6 + $0xb20] sm:$0xff]  ;;  %v2575_v59 = vld [vmem:[#allocation6 + $0xb08] sm:$0xff] }
 0x291   :  { %2995 = vmatprep.subr.mxu1 %v2615_v40  ;;  %2925 = vmatpush1.msra.mxu0 %v2486_v26  ;;  %v2706_v40 = vld [vmem:[#allocation6 + $0xf20] sm:$0xff]  ;;  %v1057_v26 = vrot.slane %v4641_v38, %v1056_v52  ;;  %v2671_v52 = vld [vmem:[#allocation6 + $0xe08] sm:$0xff] }
 0x292   :  { %v1856_v46 = vpop.f32.mrf.mxu0  ;;  %2996 = vmatpush1.msra.mxu1 %v2614_v60  ;;  %2926 = vmatprep.subr.mxu0 %v2483_v0  ;;  %v2574_v60 = vld [vmem:[#allocation6 + $0xb00] sm:$0xff]  ;;  %v2703_v0 = vld [vmem:[#allocation6 + $0xf08] sm:$0xff] }
 0x293   :  { %v1857_v32 = vadd.f32 %v1856_v46, %v1786_v4  ;;  %2997 = vmatprep.subr.mxu1 %v2611_v3  ;;  %2927 = vmatpush1.msra.mxu0 %v2482_v30  ;;  %v2571_v3 = vld [vmem:[#allocation6 + $0xae8] sm:$0xff]  ;;  %v2702_v4 = vld [vmem:[#allocation6 + $0xf00] sm:$0xff] }
 0x294   :  { %2998 = vmatpush1.msra.mxu1 %v2610_v5  ;;  %2928 = vmatprep.subr.mxu0 %v2479_v7  ;;  %v2570_v30 = vld [vmem:[#allocation6 + $0xae0] sm:$0xff]  ;;  %v2699_v5 = vld [vmem:[#allocation6 + $0xee8] sm:$0xff] }
 0x295   :  { %v4650_v21 = vadd.f32 %v1927_v16, %v1857_v32  ;;  %2999 = vmatprep.subr.mxu1 %v2607_v14  ;;  %2929 = vmatpush1.msra.mxu0 %v2478_v15  ;;  %v2567_v7 = vld [vmem:[#allocation6 + $0xac8] sm:$0xff]  ;;  %v2698_v46 = vld [vmem:[#allocation6 + $0xee0] sm:$0xff]  ;;  %v1713_v14 = vadd.f32 %v4639_v13, %v1057_v26  ;;  %v2273_v26 = vld [vmem:[#allocation6 + $0x198] sm:$0xff] }
 0x296   :  { %3000 = vmatpush1.msra.mxu1 %v2606_v12  ;;  %2930 = vmatprep.subr.mxu0 %v2603_v8  ;;  %v2566_v15 = vld [vmem:[#allocation6 + $0xac0] sm:$0xff]  ;;  %v2695_v32 = vld [vmem:[#allocation6 + $0xec8] sm:$0xff] }
 0x297   :  { %v2219_v6 = vmax.f32 %v4650_v21, 0.0  ;;  %3001 = vmatprep.subr.mxu1 %v2731_v19  ;;  %2931 = vmatpush2.msra.mxu0 %v2602_v20  ;;  %v2563_v12 = vld [vmem:[#allocation6 + $0xaa8] sm:$0xff]  ;;  %v2694_v16 = vld [vmem:[#allocation6 + $0xec0] sm:$0xff]  ;;  %v2524_v21 = vld [vmem:[#allocation6 + $0x970] sm:$0xff] }
 0x298   :  { %3002 = vmatpush2.msra.mxu1 %v2730_v57  ;;  %2932 = vmatprep.subr.mxu0 %v2599_v25  ;;  %v2562_v8 = vld [vmem:[#allocation6 + $0xaa0] sm:$0xff]  ;;  %v2691_v19 = vld [vmem:[#allocation6 + $0xea8] sm:$0xff]  ;;  %v1784_v25 = vadd.f32 %v4644_v50, %v1713_v14  ;;  %v2252_v14 = vld [vmem:[#allocation6 + $0xf0] sm:$0xff] }
 0x299   :  { %2962 = vmatprep.mubr.f32.mxu0 %v2219_v6  ;;  %2933 = vmatpush2.msra.mxu0 %v2598_v29  ;;  %v2559_v20 = vld [vmem:[#allocation6 + $0xa88] sm:$0xff]  ;;  %v2690_v57 = vld [vmem:[#allocation6 + $0xea0] sm:$0xff] }
 0x29a   :  { %3003 = vmatprep.subr.mxu1 %v2727_v11  ;;  %2934 = vmatprep.subr.mxu0 %v2595_v63  ;;  %v2558_v13 = vld [vmem:[#allocation6 + $0xa80] sm:$0xff]  ;;  %v2687_v29 = vld [vmem:[#allocation6 + $0xe88] sm:$0xff] }
 0x29b   :  { %3004 = vmatpush2.msra.mxu1 %v2726_v2  ;;  %2935 = vmatpush2.msra.mxu0 %v2594_v31  ;;  %v2555_v11 = vld [vmem:[#allocation6 + $0xa68] sm:$0xff]  ;;  %v2686_v63 = vld [vmem:[#allocation6 + $0xe80] sm:$0xff]  ;;  %v1855_v2 = vadd.f32 %v4648_v1, %v1784_v25  ;;  %v2233_v25 = vld [vmem:[#allocation6 + $0x58] sm:$0xff] }
 0x29c   :  { %3005 = vmatprep.subr.mxu1 %v2723_v9  ;;  %2936 = vmatprep.subr.mxu0 %v2591_v34  ;;  %v2554_v31 = vld [vmem:[#allocation6 + $0xa60] sm:$0xff]  ;;  %v2683_v9 = vld [vmem:[#allocation6 + $0xe68] sm:$0xff] }
 0x29d   :  { %3006 = vmatpush2.msra.mxu1 %v2722_v35  ;;  %2937 = vmatpush2.msra.mxu0 %v2590_v36  ;;  %v2551_v34 = vld [vmem:[#allocation6 + $0xa48] sm:$0xff]  ;;  %v2682_v35 = vld [vmem:[#allocation6 + $0xe60] sm:$0xff] }
 0x29e   :  { %3007 = vmatprep.subr.mxu1 %v2719_v39  ;;  %2938 = vmatprep.subr.mxu0 %v2587_v45  ;;  %v2550_v50 = vld [vmem:[#allocation6 + $0xa40] sm:$0xff]  ;;  %v2679_v36 = vld [vmem:[#allocation6 + $0xe48] sm:$0xff] }
 0x29f   :  { %3008 = vmatpush2.msra.mxu1 %v2718_v41  ;;  %2939 = vmatpush2.msra.mxu0 %v2586_v42  ;;  %v2547_v39 = vld [vmem:[#allocation6 + $0xa28] sm:$0xff]  ;;  %v2678_v45 = vld [vmem:[#allocation6 + $0xe40] sm:$0xff]  ;;  %v4661_v41 = vadd.f32 %v4646_v61, %v1855_v2  ;;  %v2284_v61 = vld [vmem:[#allocation6 + $0x1f0] sm:$0xff] }
 0x2a0   :  { %3009 = vmatprep.subr.mxu1 %v2715_v43  ;;  %2940 = vmatprep.subr.mxu0 %v2583_v49  ;;  %v2546_v1 = vld [vmem:[#allocation6 + $0xa20] sm:$0xff]  ;;  %v2675_v42 = vld [vmem:[#allocation6 + $0xe28] sm:$0xff]  ;;  %v2224_v2 = vld [vmem:[#allocation6 + $0x10] sm:$0xff] }
 0x2a1   :  { %3010 = vmatpush2.msra.mxu1 %v2714_v24  ;;  %2941 = vmatpush2.msra.mxu0 %v2582_v53  ;;  %v2543_v43 = vld [vmem:[#allocation6 + $0xa08] sm:$0xff]  ;;  %v2674_v49 = vld [vmem:[#allocation6 + $0xe20] sm:$0xff]  ;;  %v2285_v53 = vld [vmem:[#allocation6 + $0x1f8] sm:$0xff] }
 0x2a2   :  { %3011 = vmatprep.subr.mxu1 %v2711_v54  ;;  %2942 = vmatprep.subr.mxu0 %v2579_v23  ;;  %v2542_v24 = vld [vmem:[#allocation6 + $0xa00] sm:$0xff]  ;;  %v2218_v54 = vmax.f32 %v4661_v41, 0.0  ;;  %v2281_v23 = vld [vmem:[#allocation6 + $0x1d8] sm:$0xff]  ;;  %v3377_v41 = vld [vmem:[#allocation9 + $0x188] sm:$0xff] }
 0x2a3   :  { %3012 = vmatpush2.msra.mxu1 %v2710_v55  ;;  %2943 = vmatpush2.msra.mxu0 %v2578_v37  ;;  %v2670_v55 = vld [vmem:[#allocation6 + $0xe00] sm:$0xff]  ;;  %v2280_v37 = vld [vmem:[#allocation6 + $0x1d0] sm:$0xff] }
 0x2a4   :  { %3013 = vmatprep.subr.mxu1 %v2707_v56  ;;  %2944 = vmatprep.subr.mxu0 %v2575_v59  ;;  %v2413_v56 = vld [vmem:[#allocation6 + $0x5f8] sm:$0xff] }
 0x2a5   :  { %3014 = vmatpush2.msra.mxu1 %v2706_v40  ;;  %2945 = vmatpush2.msra.mxu0 %v2574_v60  ;;  %v2277_v59 = vld [vmem:[#allocation6 + $0x1b8] sm:$0xff]  ;;  %v2276_v40 = vld [vmem:[#allocation6 + $0x1b0] sm:$0xff] }
 0x2a6   :  { %3015 = vmatprep.subr.mxu1 %v2703_v0  ;;  %2946 = vmatprep.subr.mxu0 %v2571_v3  ;;  %v2272_v60 = vld [vmem:[#allocation6 + $0x190] sm:$0xff]  ;;  %v2269_v0 = vld [vmem:[#allocation6 + $0x178] sm:$0xff] }
 0x2a7   :  { %3016 = vmatpush2.msra.mxu1 %v2702_v4  ;;  %2947 = vmatpush2.msra.mxu0 %v2570_v30  ;;  %v2268_v3 = vld [vmem:[#allocation6 + $0x170] sm:$0xff]  ;;  %v2265_v4 = vld [vmem:[#allocation6 + $0x158] sm:$0xff] }
 0x2a8   :  { %3017 = vmatprep.subr.mxu1 %v2699_v5  ;;  %2948 = vmatprep.subr.mxu0 %v2567_v7  ;;  %v2264_v30 = vld [vmem:[#allocation6 + $0x150] sm:$0xff]  ;;  %v2257_v5 = vld [vmem:[#allocation6 + $0x118] sm:$0xff] }
 0x2a9   :  { %3018 = vmatpush2.msra.mxu1 %v2698_v46  ;;  %2949 = vmatpush2.msra.mxu0 %v2566_v15  ;;  %v2256_v7 = vld [vmem:[#allocation6 + $0x110] sm:$0xff]  ;;  %v2253_v46 = vld [vmem:[#allocation6 + $0xf8] sm:$0xff] }
 0x2aa   :  { %3019 = vmatprep.subr.mxu1 %v2695_v32  ;;  %2950 = vmatprep.subr.mxu0 %v2563_v12  ;;  %v2249_v15 = vld [vmem:[#allocation6 + $0xd8] sm:$0xff]  ;;  %v2248_v32 = vld [vmem:[#allocation6 + $0xd0] sm:$0xff] }
 0x2ab   :  { %3020 = vmatpush2.msra.mxu1 %v2694_v16  ;;  %2951 = vmatpush2.msra.mxu0 %v2562_v8  ;;  %v2245_v12 = vld [vmem:[#allocation6 + $0xb8] sm:$0xff]  ;;  %v2244_v16 = vld [vmem:[#allocation6 + $0xb0] sm:$0xff] }
 0x2ac   :  { %3021 = vmatprep.subr.mxu1 %v2691_v19  ;;  %2952 = vmatprep.subr.mxu0 %v2559_v20  ;;  %v2241_v8 = vld [vmem:[#allocation6 + $0x98] sm:$0xff]  ;;  %v2240_v19 = vld [vmem:[#allocation6 + $0x90] sm:$0xff] }
 0x2ad   :  { %3022 = vmatpush2.msra.mxu1 %v2690_v57  ;;  %2953 = vmatpush2.msra.mxu0 %v2558_v13  ;;  %v2237_v20 = vld [vmem:[#allocation6 + $0x78] sm:$0xff]  ;;  %v2236_v57 = vld [vmem:[#allocation6 + $0x70] sm:$0xff] }
 0x2ae   :  { %3023 = vmatprep.subr.mxu1 %v2687_v29  ;;  %2954 = vmatprep.subr.mxu0 %v2555_v11  ;;  %v2232_v13 = vld [vmem:[#allocation6 + $0x50] sm:$0xff]  ;;  %v2229_v29 = vld [vmem:[#allocation6 + $0x38] sm:$0xff] }
 0x2af   :  { %3024 = vmatpush2.msra.mxu1 %v2686_v63  ;;  %2955 = vmatpush2.msra.mxu0 %v2554_v31  ;;  %v2228_v11 = vld [vmem:[#allocation6 + $0x30] sm:$0xff]  ;;  %v2225_v63 = vld [vmem:[#allocation6 + $0x18] sm:$0xff] }
 0x2b0   :  { %3025 = vmatprep.subr.mxu1 %v2683_v9  ;;  %2956 = vmatprep.subr.mxu0 %v2551_v34  ;;  %v2349_v31 = vld [vmem:[#allocation6 + $0x3f8] sm:$0xff]  ;;  %v2348_v9 = vld [vmem:[#allocation6 + $0x3f0] sm:$0xff] }
 0x2b1   :  { %3026 = vmatpush2.msra.mxu1 %v2682_v35  ;;  %2957 = vmatpush2.msra.mxu0 %v2550_v50  ;;  %v2345_v34 = vld [vmem:[#allocation6 + $0x3d8] sm:$0xff]  ;;  %v2344_v35 = vld [vmem:[#allocation6 + $0x3d0] sm:$0xff] }
 0x2b2   :  { %3027 = vmatprep.subr.mxu1 %v2679_v36  ;;  %2958 = vmatprep.subr.mxu0 %v2547_v39  ;;  %v2341_v50 = vld [vmem:[#allocation6 + $0x3b8] sm:$0xff]  ;;  %v2340_v36 = vld [vmem:[#allocation6 + $0x3b0] sm:$0xff] }
 0x2b3   :  { %3028 = vmatpush2.msra.mxu1 %v2678_v45  ;;  %2959 = vmatpush2.msra.mxu0 %v2546_v1  ;;  %v2337_v39 = vld [vmem:[#allocation6 + $0x398] sm:$0xff]  ;;  %v2336_v45 = vld [vmem:[#allocation6 + $0x390] sm:$0xff] }
 0x2b4   :  { %3029 = vmatprep.subr.mxu1 %v2675_v42  ;;  %2960 = vmatprep.subr.mxu0 %v2543_v43  ;;  %v2333_v1 = vld [vmem:[#allocation6 + $0x378] sm:$0xff]  ;;  %v2332_v42 = vld [vmem:[#allocation6 + $0x370] sm:$0xff] }
 0x2b5   :  { %3030 = vmatpush2.msra.mxu1 %v2674_v49  ;;  %2961 = vmatpush2.msra.mxu0 %v2542_v24  ;;  %v2329_v43 = vld [vmem:[#allocation6 + $0x358] sm:$0xff]  ;;  %v2328_v49 = vld [vmem:[#allocation6 + $0x350] sm:$0xff] }
 0x2b6   :  { %3031 = vmatprep.subr.mxu1 %v2671_v52  ;;  %2963 = vmatmul.mubr.f32.vlgmr.msra.gmra.mxu0 %v2218_v54  ;;  %v2325_v24 = vld [vmem:[#allocation6 + $0x338] sm:$0xff]  ;;  %v2324_v52 = vld [vmem:[#allocation6 + $0x330] sm:$0xff] }
 0x2b7   :  { %3040 = vmatprep.subr.mxu0 %v2285_v53  ;;  %3104 = vmatprep.mubr.f32.mxu0 %v2215_v22  ;;  %v2260_v22 = vld [vmem:[#allocation6 + $0x130] sm:$0xff]  ;;  %v2321_v53 = vld [vmem:[#allocation6 + $0x318] sm:$0xff] }
 0x2b8   :  { %3041 = vmatpush1.msra.mxu0 %v2284_v61  ;;  %3032 = vmatpush2.msra.mxu1 %v2670_v55  ;;  %v2320_v61 = vld [vmem:[#allocation6 + $0x310] sm:$0xff] }
 0x2b9   :  { %3042 = vmatprep.subr.mxu0 %v2281_v23  ;;  %3111 = vmatprep.subr.mxu1 %v2413_v56  ;;  %v2317_v23 = vld [vmem:[#allocation6 + $0x2f8] sm:$0xff]  ;;  %v2316_v55 = vld [vmem:[#allocation6 + $0x2f0] sm:$0xff] }
 0x2ba   :  { %3043 = vmatpush1.msra.mxu0 %v2280_v37  ;;  %v2313_v37 = vld [vmem:[#allocation6 + $0x2d8] sm:$0xff]  ;;  %v2312_v56 = vld [vmem:[#allocation6 + $0x2d0] sm:$0xff] }
 0x2bb   :  { %3044 = vmatprep.subr.mxu0 %v2277_v59  ;;  %v2309_v59 = vld [vmem:[#allocation6 + $0x2b8] sm:$0xff] }
 0x2bc   :  { %3045 = vmatpush1.msra.mxu0 %v2276_v40  ;;  %v1064_v40 = vsub.s32 6, %v4529_v62 }
 0x2bd   :  { %3046 = vmatprep.subr.mxu0 %v2273_v26  ;;  %v2308_v26 = vld [vmem:[#allocation6 + $0x2b0] sm:$0xff] }
 0x2be   :  { %3047 = vmatpush1.msra.mxu0 %v2272_v60  ;;  %v2305_v60 = vld [vmem:[#allocation6 + $0x298] sm:$0xff] }
 0x2bf   :  { %3048 = vmatprep.subr.mxu0 %v2269_v0  ;;  %v1068_v0 = vsub.s32 7, %v4529_v62 }
 0x2c0   :  { %3049 = vmatpush1.msra.mxu0 %v2268_v3  ;;  %v2304_v3 = vld [vmem:[#allocation6 + $0x290] sm:$0xff] }
 0x2c1   :  { %3050 = vmatprep.subr.mxu0 %v2265_v4  ;;  %v1996_v4 = vpop.f32.mrf.mxu1 }
 0x2c2   :  { %3051 = vmatpush1.msra.mxu0 %v2264_v30  ;;  %v2301_v30 = vld [vmem:[#allocation6 + $0x278] sm:$0xff] }
 0x2c3   :  { %3052 = vmatprep.subr.mxu0 %v2261_v17  ;;  %v1065_v17 = vrot.slane %v4641_v38, %v1064_v40  ;;  %v2512_v40 = vld [vmem:[#allocation6 + $0x910] sm:$0xff] }
 0x2c4   :  { %3053 = vmatpush1.msra.mxu0 %v2260_v22  ;;  %v2300_v22 = vld [vmem:[#allocation6 + $0x270] sm:$0xff] }
 0x2c5   :  { %3054 = vmatprep.subr.mxu0 %v2257_v5  ;;  %v1997_v62 = vadd.f32 %v1996_v4, %v1065_v17  ;;  %v2396_v4 = vld [vmem:[#allocation6 + $0x570] sm:$0xff] }
 0x2c6   :  { %3055 = vmatpush1.msra.mxu0 %v2256_v7  ;;  %v2297_v7 = vld [vmem:[#allocation6 + $0x258] sm:$0xff]  ;;  %v2392_v17 = vld [vmem:[#allocation6 + $0x550] sm:$0xff] }
 0x2c7   :  { %3056 = vmatprep.subr.mxu0 %v2253_v46  ;;  %v1069_v46 = vrot.slane %v4641_v38, %v1068_v0  ;;  %v2397_v0 = vld [vmem:[#allocation6 + $0x578] sm:$0xff] }
 0x2c8   :  { %3057 = vmatpush1.msra.mxu0 %v2252_v14  ;;  %v2296_v14 = vld [vmem:[#allocation6 + $0x250] sm:$0xff] }
 0x2c9   :  { %3058 = vmatprep.subr.mxu0 %v2249_v15  ;;  %v1998_v15 = vpop.f32.mrf.mxu1 }
 0x2ca   :  { %3059 = vmatpush1.msra.mxu0 %v2248_v32  ;;  %v2293_v32 = vld [vmem:[#allocation6 + $0x238] sm:$0xff] }
 0x2cb   :  { %3060 = vmatprep.subr.mxu0 %v2245_v12  ;;  %v2292_v12 = vld [vmem:[#allocation6 + $0x230] sm:$0xff] }
 0x2cc   :  { %3061 = vmatpush1.msra.mxu0 %v2244_v16 }
 0x2cd   :  { %3062 = vmatprep.subr.mxu0 %v2241_v8  ;;  %v2289_v8 = vld [vmem:[#allocation6 + $0x218] sm:$0xff] }
 0x2ce   :  { %3063 = vmatpush1.msra.mxu0 %v2240_v19  ;;  %v1999_v19 = vadd.f32 %v1998_v15, %v1069_v46  ;;  %v2388_v46 = vld [vmem:[#allocation6 + $0x530] sm:$0xff]  ;;  %v2385_v15 = vld [vmem:[#allocation6 + $0x518] sm:$0xff] }
 0x2cf   :  { %3064 = vmatprep.subr.mxu0 %v2237_v20 }
 0x2d0   :  { %3065 = vmatpush1.msra.mxu0 %v2236_v57  ;;  %v2288_v57 = vld [vmem:[#allocation6 + $0x210] sm:$0xff] }
 0x2d1   :  { %3066 = vmatprep.subr.mxu0 %v2233_v25 }
 0x2d2   :  { %3067 = vmatpush1.msra.mxu0 %v2232_v13  ;;  %v2067_v5 = vpop.f32.mrf.mxu0 }
 0x2d3   :  { %3068 = vmatprep.subr.mxu0 %v2229_v29  ;;  %v2068_v20 = vadd.f32 %v2067_v5, %v1997_v62  ;;  %v2541_v29 = vld [vmem:[#allocation6 + $0x9f8] sm:$0xff]  ;;  %v2384_v62 = vld [vmem:[#allocation6 + $0x510] sm:$0xff] }
 0x2d4   :  { %3069 = vmatpush1.msra.mxu0 %v2228_v11  ;;  %v2069_v16 = vpop.f32.mrf.mxu0  ;;  %v2389_v5 = vld [vmem:[#allocation6 + $0x538] sm:$0xff] }
 0x2d5   :  { %3070 = vmatprep.subr.mxu0 %v2225_v63  ;;  %v2070_v38 = vadd.f32 %v2069_v16, %v1999_v19  ;;  %v2540_v63 = vld [vmem:[#allocation6 + $0x9f0] sm:$0xff]  ;;  %v2381_v16 = vld [vmem:[#allocation6 + $0x4f8] sm:$0xff] }
 0x2d6   :  { %3071 = vmatpush1.msra.mxu0 %v2224_v2  ;;  %v2380_v19 = vld [vmem:[#allocation6 + $0x4f0] sm:$0xff] }
 0x2d7   :  { %3072 = vmatprep.subr.mxu0 %v2349_v31  ;;  %v2537_v31 = vld [vmem:[#allocation6 + $0x9d8] sm:$0xff] }
 0x2d8   :  { %3073 = vmatpush2.msra.mxu0 %v2348_v9 }
 0x2d9   :  { %3074 = vmatprep.subr.mxu0 %v2345_v34  ;;  %v2536_v34 = vld [vmem:[#allocation6 + $0x9d0] sm:$0xff] }
 0x2da   :  { %3075 = vmatpush2.msra.mxu0 %v2344_v35 }
 0x2db   :  { %3076 = vmatprep.subr.mxu0 %v2341_v50 }
 0x2dc   :  { %3077 = vmatpush2.msra.mxu0 %v2340_v36  ;;  %v2533_v36 = vld [vmem:[#allocation6 + $0x9b8] sm:$0xff] }
 0x2dd   :  { %3078 = vmatprep.subr.mxu0 %v2337_v39 }
 0x2de   :  { %3079 = vmatpush2.msra.mxu0 %v2336_v45  ;;  %v2532_v45 = vld [vmem:[#allocation6 + $0x9b0] sm:$0xff] }
 0x2df   :  { %3080 = vmatprep.subr.mxu0 %v2333_v1  ;;  %v2529_v1 = vld [vmem:[#allocation6 + $0x998] sm:$0xff] }
 0x2e0   :  { %3081 = vmatpush2.msra.mxu0 %v2332_v42 }
 0x2e1   :  { %3082 = vmatprep.subr.mxu0 %v2329_v43  ;;  %v2525_v43 = vld [vmem:[#allocation6 + $0x978] sm:$0xff] }
 0x2e2   :  { %3083 = vmatpush2.msra.mxu0 %v2328_v49  ;;  %v2412_v49 = vld [vmem:[#allocation6 + $0x5f0] sm:$0xff] }
 0x2e3   :  { %3084 = vmatprep.subr.mxu0 %v2325_v24  ;;  %v2521_v24 = vld [vmem:[#allocation6 + $0x958] sm:$0xff] }
 0x2e4   :  { %3085 = vmatpush2.msra.mxu0 %v2324_v52  ;;  %v2520_v52 = vld [vmem:[#allocation6 + $0x950] sm:$0xff] }
 0x2e5   :  { %3086 = vmatprep.subr.mxu0 %v2321_v53  ;;  %v2408_v53 = vld [vmem:[#allocation6 + $0x5d0] sm:$0xff] }
 0x2e6   :  { %3087 = vmatpush2.msra.mxu0 %v2320_v61  ;;  %v2517_v61 = vld [vmem:[#allocation6 + $0x938] sm:$0xff] }
 0x2e7   :  { %3088 = vmatprep.subr.mxu0 %v2317_v23  ;;  %v2405_v23 = vld [vmem:[#allocation6 + $0x5b8] sm:$0xff] }
 0x2e8   :  { %3089 = vmatpush2.msra.mxu0 %v2316_v55  ;;  %v2516_v55 = vld [vmem:[#allocation6 + $0x930] sm:$0xff] }
 0x2e9   :  { %3090 = vmatprep.subr.mxu0 %v2313_v37  ;;  %v2404_v37 = vld [vmem:[#allocation6 + $0x5b0] sm:$0xff] }
 0x2ea   :  { %3091 = vmatpush2.msra.mxu0 %v2312_v56  ;;  %v2513_v56 = vld [vmem:[#allocation6 + $0x918] sm:$0xff] }
 0x2eb   :  { %3092 = vmatprep.subr.mxu0 %v2309_v59  ;;  %v2401_v59 = vld [vmem:[#allocation6 + $0x598] sm:$0xff] }
 0x2ec   :  { %3093 = vmatpush2.msra.mxu0 %v2308_v26  ;;  %v2400_v26 = vld [vmem:[#allocation6 + $0x590] sm:$0xff] }
 0x2ed   :  { %3094 = vmatprep.subr.mxu0 %v2305_v60  ;;  %v2509_v60 = vld [vmem:[#allocation6 + $0x8f8] sm:$0xff] }
 0x2ee   :  { %3095 = vmatpush2.msra.mxu0 %v2304_v3  ;;  %v2508_v3 = vld [vmem:[#allocation6 + $0x8f0] sm:$0xff] }
 0x2ef   :  { %3096 = vmatprep.subr.mxu0 %v2301_v30  ;;  %v2504_v30 = vld [vmem:[#allocation6 + $0x8d0] sm:$0xff] }
 0x2f0   :  { %3097 = vmatpush2.msra.mxu0 %v2300_v22  ;;  %v2501_v22 = vld [vmem:[#allocation6 + $0x8b8] sm:$0xff] }
 0x2f1   :  { %3098 = vmatprep.subr.mxu0 %v2297_v7  ;;  %v2500_v7 = vld [vmem:[#allocation6 + $0x8b0] sm:$0xff] }
 0x2f2   :  { %3099 = vmatpush2.msra.mxu0 %v2296_v14  ;;  %v2497_v14 = vld [vmem:[#allocation6 + $0x898] sm:$0xff] }
 0x2f3   :  { %3100 = vmatprep.subr.mxu0 %v2293_v32  ;;  %v2138_v25 = vpop.f32.mrf.mxu1  ;;  %v2496_v32 = vld [vmem:[#allocation6 + $0x890] sm:$0xff] }
 0x2f4   :  { %3101 = vmatpush2.msra.mxu0 %v2292_v12  ;;  %v2209_v13 = vpop.f32.mrf.mxu0  ;;  %v2139_v11 = vadd.f32 %v2138_v25, %v2068_v20  ;;  %v2493_v12 = vld [vmem:[#allocation6 + $0x878] sm:$0xff]  ;;  %v2488_v25 = vld [vmem:[#allocation6 + $0x850] sm:$0xff] }
 0x2f5   :  { %3102 = vmatprep.subr.mxu0 %v2289_v8  ;;  %v2140_v2 = vpop.f32.mrf.mxu1  ;;  %v2492_v8 = vld [vmem:[#allocation6 + $0x870] sm:$0xff]  ;;  %v2489_v20 = vld [vmem:[#allocation6 + $0x858] sm:$0xff] }
 0x2f6   :  { %3103 = vmatpush2.msra.mxu0 %v2288_v57  ;;  %v2141_v9 = vadd.f32 %v2140_v2, %v2070_v38  ;;  %v4674_v35 = vadd.f32 %v2209_v13, %v2139_v11  ;;  %v2211_v50 = vpop.f32.mrf.mxu0  ;;  %v2377_v57 = vld [vmem:[#allocation6 + $0x4d8] sm:$0xff]  ;;  %v2376_v13 = vld [vmem:[#allocation6 + $0x4d0] sm:$0xff] }
 0x2f7   :  { %3105 = vmatmul.mubr.f32.vlgmr.msra.gmra.mxu0 %v2214_v47  ;;  %3182 = vmatprep.subr.mxu0 %v2541_v29  ;;  %v2528_v47 = vld [vmem:[#allocation6 + $0x990] sm:$0xff]  ;;  %v2485_v29 = vld [vmem:[#allocation6 + $0x838] sm:$0xff] }
 0x2f8   :  { %3183 = vmatpush1.msra.mxu0 %v2540_v63  ;;  %3246 = vmatprep.mubr.f32.mxu0 %v2219_v6  ;;  %v4678_v39 = vadd.f32 %v2211_v50, %v2141_v9  ;;  %v2220_v42 = vmax.f32 %v4674_v35, 0.0  ;;  %v2409_v6 = vld [vmem:[#allocation6 + $0x5d8] sm:$0xff]  ;;  %v2484_v11 = vld [vmem:[#allocation6 + $0x830] sm:$0xff] }
 0x2f9   :  { %3184 = vmatprep.subr.mxu0 %v2537_v31  ;;  %v2373_v38 = vld [vmem:[#allocation6 + $0x4b8] sm:$0xff]  ;;  %v2372_v63 = vld [vmem:[#allocation6 + $0x4b0] sm:$0xff] }
 0x2fa   :  { %3185 = vmatpush1.msra.mxu0 %v2536_v34  ;;  %v2221_v58 = vmax.f32 %v4678_v39, 0.0  ;;  %v2481_v2 = vld [vmem:[#allocation6 + $0x818] sm:$0xff]  ;;  %v2480_v9 = vld [vmem:[#allocation6 + $0x810] sm:$0xff] }
 0x2fb   :  { %3186 = vmatprep.subr.mxu0 %v2533_v36  ;;  %v2369_v31 = vld [vmem:[#allocation6 + $0x498] sm:$0xff]  ;;  %v2368_v34 = vld [vmem:[#allocation6 + $0x490] sm:$0xff] }
 0x2fc   :  { %3187 = vmatpush1.msra.mxu0 %v2532_v45  ;;  %3033 = vmatprep.mubr.f32.mxu1 %v2221_v58  ;;  %v2605_v50 = vld [vmem:[#allocation6 + $0xbf8] sm:$0xff]  ;;  %v2604_v45 = vld [vmem:[#allocation6 + $0xbf0] sm:$0xff] }
 0x2fd   :  { %3188 = vmatprep.subr.mxu0 %v2529_v1  ;;  %3034 = vmatmul.mubr.f32.vlgmr.msra.gmra.mxu1 %v2220_v42  ;;  %v2365_v36 = vld [vmem:[#allocation6 + $0x478] sm:$0xff]  ;;  %v2364_v1 = vld [vmem:[#allocation6 + $0x470] sm:$0xff] }
 0x2fe   :  { %3189 = vmatpush1.msra.mxu0 %v2528_v47  ;;  %3112 = vmatpush1.msra.mxu1 %v2412_v49  ;;  %v2601_v47 = vld [vmem:[#allocation6 + $0xbd8] sm:$0xff]  ;;  %v2600_v49 = vld [vmem:[#allocation6 + $0xbd0] sm:$0xff] }
 0x2ff   :  { %3190 = vmatprep.subr.mxu0 %v2525_v43  ;;  %3113 = vmatprep.subr.mxu1 %v2409_v6  ;;  %v2361_v43 = vld [vmem:[#allocation6 + $0x458] sm:$0xff]  ;;  %v2652_v39 = vld [vmem:[#allocation6 + $0xd70] sm:$0xff] }
 0x300   :  { %3191 = vmatpush1.msra.mxu0 %v2524_v21  ;;  %3175 = vmatprep.mubr.f32.mxu1 %v2217_v28  ;;  %v2393_v28 = vld [vmem:[#allocation6 + $0x558] sm:$0xff]  ;;  %v2360_v21 = vld [vmem:[#allocation6 + $0x450] sm:$0xff] }
 0x301   :  { %3192 = vmatprep.subr.mxu0 %v2521_v24  ;;  %3114 = vmatpush1.msra.mxu1 %v2408_v53  ;;  %v2597_v6 = vld [vmem:[#allocation6 + $0xbb8] sm:$0xff]  ;;  %v2356_v53 = vld [vmem:[#allocation6 + $0x430] sm:$0xff] }
 0x302   :  { %3193 = vmatpush1.msra.mxu0 %v2520_v52  ;;  %3115 = vmatprep.subr.mxu1 %v2405_v23  ;;  %v2357_v24 = vld [vmem:[#allocation6 + $0x438] sm:$0xff]  ;;  %v2596_v52 = vld [vmem:[#allocation6 + $0xbb0] sm:$0xff] }
 0x303   :  { %3194 = vmatprep.subr.mxu0 %v2517_v61  ;;  %3116 = vmatpush1.msra.mxu1 %v2404_v37  ;;  %v2593_v61 = vld [vmem:[#allocation6 + $0xb98] sm:$0xff]  ;;  %v2352_v37 = vld [vmem:[#allocation6 + $0x410] sm:$0xff] }
 0x304   :  { %3195 = vmatpush1.msra.mxu0 %v2516_v55  ;;  %3117 = vmatprep.subr.mxu1 %v2401_v59  ;;  %v2353_v23 = vld [vmem:[#allocation6 + $0x418] sm:$0xff]  ;;  %v2592_v55 = vld [vmem:[#allocation6 + $0xb90] sm:$0xff] }
 0x305   :  { %3196 = vmatprep.subr.mxu0 %v2513_v56  ;;  %3118 = vmatpush1.msra.mxu1 %v2400_v26  ;;  %v2589_v56 = vld [vmem:[#allocation6 + $0xb78] sm:$0xff]  ;;  %v2476_v26 = vld [vmem:[#allocation6 + $0x7f0] sm:$0xff] }
 0x306   :  { %3197 = vmatpush1.msra.mxu0 %v2512_v40  ;;  %3119 = vmatprep.subr.mxu1 %v2397_v0  ;;  %v2477_v59 = vld [vmem:[#allocation6 + $0x7f8] sm:$0xff]  ;;  %v2588_v40 = vld [vmem:[#allocation6 + $0xb70] sm:$0xff] }
 0x307   :  { %3198 = vmatprep.subr.mxu0 %v2509_v60  ;;  %3120 = vmatpush1.msra.mxu1 %v2396_v4  ;;  %v2585_v60 = vld [vmem:[#allocation6 + $0xb58] sm:$0xff]  ;;  %v2472_v4 = vld [vmem:[#allocation6 + $0x7d0] sm:$0xff] }
 0x308   :  { %3199 = vmatpush1.msra.mxu0 %v2508_v3  ;;  %3121 = vmatprep.subr.mxu1 %v2393_v28  ;;  %v2473_v0 = vld [vmem:[#allocation6 + $0x7d8] sm:$0xff]  ;;  %v2584_v3 = vld [vmem:[#allocation6 + $0xb50] sm:$0xff] }
 0x309   :  { %3200 = vmatprep.subr.mxu0 %v2505_v18  ;;  %3122 = vmatpush1.msra.mxu1 %v2392_v17  ;;  %v2581_v18 = vld [vmem:[#allocation6 + $0xb38] sm:$0xff]  ;;  %v2468_v17 = vld [vmem:[#allocation6 + $0x7b0] sm:$0xff] }
 0x30a   :  { %3201 = vmatpush1.msra.mxu0 %v2504_v30  ;;  %3123 = vmatprep.subr.mxu1 %v2389_v5  ;;  %v2469_v28 = vld [vmem:[#allocation6 + $0x7b8] sm:$0xff]  ;;  %v2580_v30 = vld [vmem:[#allocation6 + $0xb30] sm:$0xff] }
 0x30b   :  { %3202 = vmatprep.subr.mxu0 %v2501_v22  ;;  %3124 = vmatpush1.msra.mxu1 %v2388_v46  ;;  %v2577_v22 = vld [vmem:[#allocation6 + $0xb18] sm:$0xff]  ;;  %v2464_v46 = vld [vmem:[#allocation6 + $0x790] sm:$0xff] }
 0x30c   :  { %3203 = vmatpush1.msra.mxu0 %v2500_v7  ;;  %3125 = vmatprep.subr.mxu1 %v2385_v15  ;;  %v2465_v5 = vld [vmem:[#allocation6 + $0x798] sm:$0xff]  ;;  %v2576_v7 = vld [vmem:[#allocation6 + $0xb10] sm:$0xff] }
 0x30d   :  { %3204 = vmatprep.subr.mxu0 %v2497_v14  ;;  %3126 = vmatpush1.msra.mxu1 %v2384_v62  ;;  %v2573_v14 = vld [vmem:[#allocation6 + $0xaf8] sm:$0xff]  ;;  %v2460_v62 = vld [vmem:[#allocation6 + $0x770] sm:$0xff] }
 0x30e   :  { %3205 = vmatpush1.msra.mxu0 %v2496_v32  ;;  %3127 = vmatprep.subr.mxu1 %v2381_v16  ;;  %v2461_v15 = vld [vmem:[#allocation6 + $0x778] sm:$0xff]  ;;  %v2572_v32 = vld [vmem:[#allocation6 + $0xaf0] sm:$0xff] }
 0x30f   :  { %3206 = vmatprep.subr.mxu0 %v2493_v12  ;;  %3128 = vmatpush1.msra.mxu1 %v2380_v19  ;;  %v2569_v12 = vld [vmem:[#allocation6 + $0xad8] sm:$0xff]  ;;  %v2456_v19 = vld [vmem:[#allocation6 + $0x750] sm:$0xff] }
 0x310   :  { %3207 = vmatpush1.msra.mxu0 %v2492_v8  ;;  %3129 = vmatprep.subr.mxu1 %v2377_v57  ;;  %v2457_v16 = vld [vmem:[#allocation6 + $0x758] sm:$0xff]  ;;  %v2568_v8 = vld [vmem:[#allocation6 + $0xad0] sm:$0xff] }
 0x311   :  { %3208 = vmatprep.subr.mxu0 %v2489_v20  ;;  %3130 = vmatpush1.msra.mxu1 %v2376_v13  ;;  %v2565_v20 = vld [vmem:[#allocation6 + $0xab8] sm:$0xff]  ;;  %v2452_v13 = vld [vmem:[#allocation6 + $0x730] sm:$0xff] }
 0x312   :  { %3209 = vmatpush1.msra.mxu0 %v2488_v25  ;;  %3131 = vmatprep.subr.mxu1 %v2373_v38  ;;  %v2453_v57 = vld [vmem:[#allocation6 + $0x738] sm:$0xff]  ;;  %v2564_v25 = vld [vmem:[#allocation6 + $0xab0] sm:$0xff] }
 0x313   :  { %3210 = vmatprep.subr.mxu0 %v2485_v29  ;;  %3132 = vmatpush1.msra.mxu1 %v2372_v63  ;;  %v2561_v29 = vld [vmem:[#allocation6 + $0xa98] sm:$0xff]  ;;  %v2448_v63 = vld [vmem:[#allocation6 + $0x710] sm:$0xff] }
 0x314   :  { %3211 = vmatpush1.msra.mxu0 %v2484_v11  ;;  %3133 = vmatprep.subr.mxu1 %v2369_v31  ;;  %v2449_v38 = vld [vmem:[#allocation6 + $0x718] sm:$0xff]  ;;  %v2560_v11 = vld [vmem:[#allocation6 + $0xa90] sm:$0xff] }
 0x315   :  { %3212 = vmatprep.subr.mxu0 %v2481_v2  ;;  %3134 = vmatpush1.msra.mxu1 %v2368_v34  ;;  %v2557_v2 = vld [vmem:[#allocation6 + $0xa78] sm:$0xff]  ;;  %v2444_v34 = vld [vmem:[#allocation6 + $0x6f0] sm:$0xff] }
 0x316   :  { %3213 = vmatpush1.msra.mxu0 %v2480_v9  ;;  %3135 = vmatprep.subr.mxu1 %v2365_v36  ;;  %v2445_v31 = vld [vmem:[#allocation6 + $0x6f8] sm:$0xff]  ;;  %v2556_v9 = vld [vmem:[#allocation6 + $0xa70] sm:$0xff] }
 0x317   :  { %3214 = vmatprep.subr.mxu0 %v2605_v50  ;;  %3136 = vmatpush1.msra.mxu1 %v2364_v1  ;;  %v2553_v50 = vld [vmem:[#allocation6 + $0xa58] sm:$0xff]  ;;  %v2440_v1 = vld [vmem:[#allocation6 + $0x6d0] sm:$0xff] }
 0x318   :  { %3215 = vmatpush2.msra.mxu0 %v2604_v45  ;;  %3137 = vmatprep.subr.mxu1 %v2361_v43  ;;  %v2441_v36 = vld [vmem:[#allocation6 + $0x6d8] sm:$0xff]  ;;  %v2552_v45 = vld [vmem:[#allocation6 + $0xa50] sm:$0xff] }
 0x319   :  { %3216 = vmatprep.subr.mxu0 %v2601_v47  ;;  %3138 = vmatpush1.msra.mxu1 %v2360_v21  ;;  %v2549_v47 = vld [vmem:[#allocation6 + $0xa38] sm:$0xff]  ;;  %v2436_v21 = vld [vmem:[#allocation6 + $0x6b0] sm:$0xff] }
 0x31a   :  { %3217 = vmatpush2.msra.mxu0 %v2600_v49  ;;  %3139 = vmatprep.subr.mxu1 %v2357_v24  ;;  %v2437_v43 = vld [vmem:[#allocation6 + $0x6b8] sm:$0xff]  ;;  %v2548_v49 = vld [vmem:[#allocation6 + $0xa30] sm:$0xff] }
 0x31b   :  { %3218 = vmatprep.subr.mxu0 %v2597_v6  ;;  %3140 = vmatpush1.msra.mxu1 %v2356_v53  ;;  %v2545_v6 = vld [vmem:[#allocation6 + $0xa18] sm:$0xff]  ;;  %v2432_v53 = vld [vmem:[#allocation6 + $0x690] sm:$0xff] }
 0x31c   :  { %3219 = vmatpush2.msra.mxu0 %v2596_v52  ;;  %3141 = vmatprep.subr.mxu1 %v2353_v23  ;;  %v2433_v24 = vld [vmem:[#allocation6 + $0x698] sm:$0xff]  ;;  %v2544_v52 = vld [vmem:[#allocation6 + $0xa10] sm:$0xff] }
 0x31d   :  { %3220 = vmatprep.subr.mxu0 %v2593_v61  ;;  %3142 = vmatpush1.msra.mxu1 %v2352_v37  ;;  %v2429_v61 = vld [vmem:[#allocation6 + $0x678] sm:$0xff]  ;;  %v2428_v23 = vld [vmem:[#allocation6 + $0x670] sm:$0xff] }
 0x31e   :  { %3221 = vmatpush2.msra.mxu0 %v2592_v55  ;;  %3143 = vmatprep.subr.mxu1 %v2477_v59  ;;  %v3389_v55 = vld [vmem:[#allocation9 + $0x1e8] sm:$0xff]  ;;  %v2425_v37 = vld [vmem:[#allocation6 + $0x658] sm:$0xff] }
 0x31f   :  { %3222 = vmatprep.subr.mxu0 %v2589_v56  ;;  %3144 = vmatpush2.msra.mxu1 %v2476_v26  ;;  %v3388_v56 = vld [vmem:[#allocation9 + $0x1e0] sm:$0xff]  ;;  %v2424_v59 = vld [vmem:[#allocation6 + $0x650] sm:$0xff]  ;;  %v2421_v26 = vld [vmem:[#allocation6 + $0x638] sm:$0xff] }
 0x320   :  { %3223 = vmatpush2.msra.mxu0 %v2588_v40  ;;  %3145 = vmatprep.subr.mxu1 %v2473_v0  ;;  %v3385_v40 = vld [vmem:[#allocation9 + $0x1c8] sm:$0xff] }
 0x321   :  { %3224 = vmatprep.subr.mxu0 %v2585_v60  ;;  %3146 = vmatpush2.msra.mxu1 %v2472_v4  ;;  %v3384_v60 = vld [vmem:[#allocation9 + $0x1c0] sm:$0xff]  ;;  %v2420_v0 = vld [vmem:[#allocation6 + $0x630] sm:$0xff]  ;;  %v2417_v4 = vld [vmem:[#allocation6 + $0x618] sm:$0xff] }
 0x322   :  { %3225 = vmatpush2.msra.mxu0 %v2584_v3  ;;  %3147 = vmatprep.subr.mxu1 %v2469_v28  ;;  %v3381_v3 = vld [vmem:[#allocation9 + $0x1a8] sm:$0xff] }
 0x323   :  { %3226 = vmatprep.subr.mxu0 %v2581_v18  ;;  %3148 = vmatpush2.msra.mxu1 %v2468_v17  ;;  %v3380_v18 = vld [vmem:[#allocation9 + $0x1a0] sm:$0xff]  ;;  %v2416_v28 = vld [vmem:[#allocation6 + $0x610] sm:$0xff]  ;;  %v2665_v17 = vld [vmem:[#allocation6 + $0xdd8] sm:$0xff] }
 0x324   :  { %3227 = vmatpush2.msra.mxu0 %v2580_v30  ;;  %3149 = vmatprep.subr.mxu1 %v2465_v5  ;;  %v2668_v30 = vld [vmem:[#allocation6 + $0xdf0] sm:$0xff] }
 0x325   :  { %3228 = vmatprep.subr.mxu0 %v2577_v22  ;;  %3150 = vmatpush2.msra.mxu1 %v2464_v46  ;;  %v3376_v22 = vld [vmem:[#allocation9 + $0x180] sm:$0xff]  ;;  %v2664_v5 = vld [vmem:[#allocation6 + $0xdd0] sm:$0xff]  ;;  %v2661_v46 = vld [vmem:[#allocation6 + $0xdb8] sm:$0xff] }
 0x326   :  { %3229 = vmatpush2.msra.mxu0 %v2576_v7  ;;  %3151 = vmatprep.subr.mxu1 %v2461_v15  ;;  %v3373_v7 = vld [vmem:[#allocation9 + $0x168] sm:$0xff] }
 0x327   :  { %3230 = vmatprep.subr.mxu0 %v2573_v14  ;;  %3152 = vmatpush2.msra.mxu1 %v2460_v62  ;;  %v3372_v14 = vld [vmem:[#allocation9 + $0x160] sm:$0xff]  ;;  %v2660_v15 = vld [vmem:[#allocation6 + $0xdb0] sm:$0xff]  ;;  %v2657_v62 = vld [vmem:[#allocation6 + $0xd98] sm:$0xff] }
 0x328   :  { %3231 = vmatpush2.msra.mxu0 %v2572_v32  ;;  %3153 = vmatprep.subr.mxu1 %v2457_v16  ;;  %v3369_v32 = vld [vmem:[#allocation9 + $0x148] sm:$0xff]  ;;  %v2653_v16 = vld [vmem:[#allocation6 + $0xd78] sm:$0xff] }
 0x329   :  { %3232 = vmatprep.subr.mxu0 %v2569_v12  ;;  %3154 = vmatpush2.msra.mxu1 %v2456_v19  ;;  %v3368_v12 = vld [vmem:[#allocation9 + $0x140] sm:$0xff]  ;;  %v2649_v19 = vld [vmem:[#allocation6 + $0xd58] sm:$0xff]  ;;  %v3497_v35 = vld [vmem:[#allocation9 + $0x548] sm:$0xff] }
 0x32a   :  { %3233 = vmatpush2.msra.mxu0 %v2568_v8  ;;  %3155 = vmatprep.subr.mxu1 %v2453_v57  ;;  %v3364_v8 = vld [vmem:[#allocation9 + $0x120] sm:$0xff]  ;;  %v2648_v57 = vld [vmem:[#allocation6 + $0xd50] sm:$0xff] }
 0x32b   :  { %3234 = vmatprep.subr.mxu0 %v2565_v20  ;;  %3156 = vmatpush2.msra.mxu1 %v2452_v13  ;;  %v3360_v20 = vld [vmem:[#allocation9 + $0x100] sm:$0xff]  ;;  %v2645_v13 = vld [vmem:[#allocation6 + $0xd38] sm:$0xff] }
 0x32c   :  { %3235 = vmatpush2.msra.mxu0 %v2564_v25  ;;  %3157 = vmatprep.subr.mxu1 %v2449_v38  ;;  %v3357_v25 = vld [vmem:[#allocation9 + $0xe8] sm:$0xff] }
 0x32d   :  { %3236 = vmatprep.subr.mxu0 %v2561_v29  ;;  %3158 = vmatpush2.msra.mxu1 %v2448_v63  ;;  %v3356_v29 = vld [vmem:[#allocation9 + $0xe0] sm:$0xff]  ;;  %v2644_v38 = vld [vmem:[#allocation6 + $0xd30] sm:$0xff]  ;;  %v2641_v63 = vld [vmem:[#allocation6 + $0xd18] sm:$0xff] }
 0x32e   :  { %3237 = vmatpush2.msra.mxu0 %v2560_v11  ;;  %3159 = vmatprep.subr.mxu1 %v2445_v31  ;;  %v3353_v11 = vld [vmem:[#allocation9 + $0xc8] sm:$0xff] }
 0x32f   :  { %3238 = vmatprep.subr.mxu0 %v2557_v2  ;;  %3160 = vmatpush2.msra.mxu1 %v2444_v34  ;;  %v3352_v2 = vld [vmem:[#allocation9 + $0xc0] sm:$0xff]  ;;  %v2640_v31 = vld [vmem:[#allocation6 + $0xd10] sm:$0xff]  ;;  %v2637_v34 = vld [vmem:[#allocation6 + $0xcf8] sm:$0xff] }
 0x330   :  { %3239 = vmatpush2.msra.mxu0 %v2556_v9  ;;  %3161 = vmatprep.subr.mxu1 %v2441_v36  ;;  %v3349_v9 = vld [vmem:[#allocation9 + $0xa8] sm:$0xff] }
 0x331   :  { %3240 = vmatprep.subr.mxu0 %v2553_v50  ;;  %3162 = vmatpush2.msra.mxu1 %v2440_v1  ;;  %v3348_v50 = vld [vmem:[#allocation9 + $0xa0] sm:$0xff]  ;;  %v2636_v36 = vld [vmem:[#allocation6 + $0xcf0] sm:$0xff]  ;;  %v2633_v1 = vld [vmem:[#allocation6 + $0xcd8] sm:$0xff] }
 0x332   :  { %3241 = vmatpush2.msra.mxu0 %v2552_v45  ;;  %3163 = vmatprep.subr.mxu1 %v2437_v43  ;;  %v3345_v45 = vld [vmem:[#allocation9 + $0x88] sm:$0xff] }
 0x333   :  { %3242 = vmatprep.subr.mxu0 %v2549_v47  ;;  %3164 = vmatpush2.msra.mxu1 %v2436_v21  ;;  %v3344_v47 = vld [vmem:[#allocation9 + $0x80] sm:$0xff]  ;;  %v2632_v43 = vld [vmem:[#allocation6 + $0xcd0] sm:$0xff]  ;;  %v2629_v21 = vld [vmem:[#allocation6 + $0xcb8] sm:$0xff] }
 0x334   :  { %3243 = vmatpush2.msra.mxu0 %v2548_v49  ;;  %3165 = vmatprep.subr.mxu1 %v2433_v24  ;;  %v3341_v49 = vld [vmem:[#allocation9 + $0x68] sm:$0xff] }
 0x335   :  { %3244 = vmatprep.subr.mxu0 %v2545_v6  ;;  %3166 = vmatpush2.msra.mxu1 %v2432_v53  ;;  %v3340_v6 = vld [vmem:[#allocation9 + $0x60] sm:$0xff]  ;;  %v2628_v24 = vld [vmem:[#allocation6 + $0xcb0] sm:$0xff]  ;;  %v2625_v53 = vld [vmem:[#allocation6 + $0xc98] sm:$0xff] }
 0x336   :  { %3245 = vmatpush2.msra.mxu0 %v2544_v52  ;;  %3167 = vmatprep.subr.mxu1 %v2429_v61  ;;  %v3337_v52 = vld [vmem:[#allocation9 + $0x48] sm:$0xff]  ;;  %v3336_v61 = vld [vmem:[#allocation9 + $0x40] sm:$0xff] }
 0x337   :  { %3247 = vmatmul.mubr.f32.vlgmr.msra.gmra.mxu0 %v2218_v54  ;;  %3168 = vmatpush2.msra.mxu1 %v2428_v23  ;;  %v2669_v54 = vld [vmem:[#allocation6 + $0xdf8] sm:$0xff]  ;;  %v2624_v23 = vld [vmem:[#allocation6 + $0xc90] sm:$0xff] }
 0x338   :  { %3606 = vmatprep.subr.mxu0 %v3389_v55  ;;  %3169 = vmatprep.subr.mxu1 %v2425_v37  ;;  %v3333_v55 = vld [vmem:[#allocation9 + $0x28] sm:$0xff]  ;;  %v2621_v37 = vld [vmem:[#allocation6 + $0xc78] sm:$0xff] }
 0x339   :  { %3607 = vmatpush1.msra.mxu0 %v3388_v56  ;;  %3170 = vmatpush2.msra.mxu1 %v2424_v59  ;;  %v3332_v56 = vld [vmem:[#allocation9 + $0x20] sm:$0xff]  ;;  %v2620_v59 = vld [vmem:[#allocation6 + $0xc70] sm:$0xff] }
 0x33a   :  { %3608 = vmatprep.subr.mxu0 %v3385_v40  ;;  %3171 = vmatprep.subr.mxu1 %v2421_v26  ;;  %v3329_v40 = vld [vmem:[#allocation9 + $0x8] sm:$0xff]  ;;  %v2617_v26 = vld [vmem:[#allocation6 + $0xc58] sm:$0xff] }
 0x33b   :  { %3609 = vmatpush1.msra.mxu0 %v3384_v60  ;;  %3172 = vmatpush2.msra.mxu1 %v2420_v0  ;;  %v3328_v60 = vld [vmem:[#allocation9] sm:$0xff]  ;;  %v2616_v0 = vld [vmem:[#allocation6 + $0xc50] sm:$0xff] }
 0x33c   :  { %3610 = vmatprep.subr.mxu0 %v3381_v3  ;;  %3173 = vmatprep.subr.mxu1 %v2417_v4  ;;  %v3453_v3 = vld [vmem:[#allocation9 + $0x3e8] sm:$0xff]  ;;  %v2613_v4 = vld [vmem:[#allocation6 + $0xc38] sm:$0xff] }
 0x33d   :  { %3611 = vmatpush1.msra.mxu0 %v3380_v18  ;;  %3174 = vmatpush2.msra.mxu1 %v2416_v28  ;;  %v3452_v18 = vld [vmem:[#allocation9 + $0x3e0] sm:$0xff]  ;;  %v2612_v28 = vld [vmem:[#allocation6 + $0xc30] sm:$0xff] }
 0x33e   :  { %3612 = vmatprep.subr.mxu0 %v3377_v41  ;;  %3176 = vmatmul.mubr.f32.vlgmr.msra.gmra.mxu1 %v2216_v48  ;;  %v3365_v48 = vld [vmem:[#allocation9 + $0x128] sm:$0xff] }
 0x33f   :  { %3253 = vmatprep.subr.mxu1 %v2669_v54  ;;  %3317 = vmatprep.mubr.f32.mxu1 %v2221_v58  ;;  %v3361_v58 = vld [vmem:[#allocation9 + $0x108] sm:$0xff]  ;;  %v2609_v54 = vld [vmem:[#allocation6 + $0xc18] sm:$0xff] }
 0x340   :  { %3254 = vmatpush1.msra.mxu1 %v2668_v30  ;;  %3613 = vmatpush1.msra.mxu0 %v3376_v22  ;;  %v3449_v41 = vld [vmem:[#allocation9 + $0x3c8] sm:$0xff]  ;;  %v3448_v30 = vld [vmem:[#allocation9 + $0x3c0] sm:$0xff] }
 0x341   :  { %3255 = vmatprep.subr.mxu1 %v2665_v17  ;;  %3614 = vmatprep.subr.mxu0 %v3373_v7  ;;  %v2608_v17 = vld [vmem:[#allocation6 + $0xc10] sm:$0xff]  ;;  %v3444_v7 = vld [vmem:[#allocation9 + $0x3a0] sm:$0xff] }
 0x342   :  { %3256 = vmatpush1.msra.mxu1 %v2664_v5  ;;  %3615 = vmatpush1.msra.mxu0 %v3372_v14  ;;  %v3445_v22 = vld [vmem:[#allocation9 + $0x3a8] sm:$0xff]  ;;  %v2733_v5 = vld [vmem:[#allocation6 + $0xff8] sm:$0xff] }
 0x343   :  { %3257 = vmatprep.subr.mxu1 %v2661_v46  ;;  %3616 = vmatprep.subr.mxu0 %v3369_v32  ;;  %v2732_v46 = vld [vmem:[#allocation6 + $0xff0] sm:$0xff]  ;;  %v3440_v32 = vld [vmem:[#allocation9 + $0x380] sm:$0xff] }
 0x344   :  { %3258 = vmatpush1.msra.mxu1 %v2660_v15  ;;  %3617 = vmatpush1.msra.mxu0 %v3368_v12  ;;  %v3441_v14 = vld [vmem:[#allocation9 + $0x388] sm:$0xff]  ;;  %v2729_v15 = vld [vmem:[#allocation6 + $0xfd8] sm:$0xff] }
 0x345   :  { %3259 = vmatprep.subr.mxu1 %v2657_v62  ;;  %3618 = vmatprep.subr.mxu0 %v3365_v48  ;;  %v2728_v62 = vld [vmem:[#allocation6 + $0xfd0] sm:$0xff]  ;;  %v3436_v48 = vld [vmem:[#allocation9 + $0x360] sm:$0xff] }
 0x346   :  { %3260 = vmatpush1.msra.mxu1 %v2656_v44  ;;  %3619 = vmatpush1.msra.mxu0 %v3364_v8  ;;  %v3437_v12 = vld [vmem:[#allocation9 + $0x368] sm:$0xff]  ;;  %v2725_v44 = vld [vmem:[#allocation6 + $0xfb8] sm:$0xff] }
 0x347   :  { %3261 = vmatprep.subr.mxu1 %v2653_v16  ;;  %3620 = vmatprep.subr.mxu0 %v3361_v58  ;;  %v2724_v16 = vld [vmem:[#allocation6 + $0xfb0] sm:$0xff]  ;;  %v3432_v58 = vld [vmem:[#allocation9 + $0x340] sm:$0xff] }
 0x348   :  { %3262 = vmatpush1.msra.mxu1 %v2652_v39  ;;  %3621 = vmatpush1.msra.mxu0 %v3360_v20  ;;  %v3433_v8 = vld [vmem:[#allocation9 + $0x348] sm:$0xff]  ;;  %v2721_v39 = vld [vmem:[#allocation6 + $0xf98] sm:$0xff] }
 0x349   :  { %3263 = vmatprep.subr.mxu1 %v2649_v19  ;;  %3622 = vmatprep.subr.mxu0 %v3357_v25  ;;  %v2720_v19 = vld [vmem:[#allocation6 + $0xf90] sm:$0xff]  ;;  %v3428_v25 = vld [vmem:[#allocation9 + $0x320] sm:$0xff] }
 0x34a   :  { %3264 = vmatpush1.msra.mxu1 %v2648_v57  ;;  %3623 = vmatpush1.msra.mxu0 %v3356_v29  ;;  %v3429_v20 = vld [vmem:[#allocation9 + $0x328] sm:$0xff]  ;;  %v2717_v57 = vld [vmem:[#allocation6 + $0xf78] sm:$0xff] }
 0x34b   :  { %3265 = vmatprep.subr.mxu1 %v2645_v13  ;;  %3624 = vmatprep.subr.mxu0 %v3353_v11  ;;  %v2716_v13 = vld [vmem:[#allocation6 + $0xf70] sm:$0xff]  ;;  %v3424_v11 = vld [vmem:[#allocation9 + $0x300] sm:$0xff] }
 0x34c   :  { %3266 = vmatpush1.msra.mxu1 %v2644_v38  ;;  %3625 = vmatpush1.msra.mxu0 %v3352_v2  ;;  %v3425_v29 = vld [vmem:[#allocation9 + $0x308] sm:$0xff]  ;;  %v2713_v38 = vld [vmem:[#allocation6 + $0xf58] sm:$0xff] }
 0x34d   :  { %3267 = vmatprep.subr.mxu1 %v2641_v63  ;;  %3626 = vmatprep.subr.mxu0 %v3349_v9  ;;  %v2712_v63 = vld [vmem:[#allocation6 + $0xf50] sm:$0xff]  ;;  %v3420_v9 = vld [vmem:[#allocation9 + $0x2e0] sm:$0xff] }
 0x34e   :  { %3268 = vmatpush1.msra.mxu1 %v2640_v31  ;;  %3627 = vmatpush1.msra.mxu0 %v3348_v50  ;;  %v3421_v2 = vld [vmem:[#allocation9 + $0x2e8] sm:$0xff]  ;;  %v2709_v31 = vld [vmem:[#allocation6 + $0xf38] sm:$0xff] }
 0x34f   :  { %3269 = vmatprep.subr.mxu1 %v2637_v34  ;;  %3628 = vmatprep.subr.mxu0 %v3345_v45  ;;  %v2708_v34 = vld [vmem:[#allocation6 + $0xf30] sm:$0xff]  ;;  %v3416_v45 = vld [vmem:[#allocation9 + $0x2c0] sm:$0xff] }
 0x350   :  { %3270 = vmatpush1.msra.mxu1 %v2636_v36  ;;  %3629 = vmatpush1.msra.mxu0 %v3344_v47  ;;  %v3417_v50 = vld [vmem:[#allocation9 + $0x2c8] sm:$0xff]  ;;  %v2705_v36 = vld [vmem:[#allocation6 + $0xf18] sm:$0xff] }
 0x351   :  { %3271 = vmatprep.subr.mxu1 %v2633_v1  ;;  %3630 = vmatprep.subr.mxu0 %v3341_v49  ;;  %v2704_v1 = vld [vmem:[#allocation6 + $0xf10] sm:$0xff]  ;;  %v3412_v49 = vld [vmem:[#allocation9 + $0x2a0] sm:$0xff] }
 0x352   :  { %3272 = vmatpush1.msra.mxu1 %v2632_v43  ;;  %3631 = vmatpush1.msra.mxu0 %v3340_v6  ;;  %v3413_v47 = vld [vmem:[#allocation9 + $0x2a8] sm:$0xff]  ;;  %v2701_v43 = vld [vmem:[#allocation6 + $0xef8] sm:$0xff] }
 0x353   :  { %3273 = vmatprep.subr.mxu1 %v2629_v21  ;;  %3632 = vmatprep.subr.mxu0 %v3337_v52  ;;  %v2700_v21 = vld [vmem:[#allocation6 + $0xef0] sm:$0xff]  ;;  %v3408_v52 = vld [vmem:[#allocation9 + $0x280] sm:$0xff] }
 0x354   :  { %3274 = vmatpush1.msra.mxu1 %v2628_v24  ;;  %3633 = vmatpush1.msra.mxu0 %v3336_v61  ;;  %v3409_v6 = vld [vmem:[#allocation9 + $0x288] sm:$0xff]  ;;  %v2697_v24 = vld [vmem:[#allocation6 + $0xed8] sm:$0xff] }
 0x355   :  { %3275 = vmatprep.subr.mxu1 %v2625_v53  ;;  %3634 = vmatprep.subr.mxu0 %v3333_v55  ;;  %v2696_v53 = vld [vmem:[#allocation6 + $0xed0] sm:$0xff]  ;;  %v3404_v55 = vld [vmem:[#allocation9 + $0x260] sm:$0xff] }
 0x356   :  { %3276 = vmatpush1.msra.mxu1 %v2624_v23  ;;  %3635 = vmatpush1.msra.mxu0 %v3332_v56  ;;  %v3405_v61 = vld [vmem:[#allocation9 + $0x268] sm:$0xff]  ;;  %v2693_v23 = vld [vmem:[#allocation6 + $0xeb8] sm:$0xff] }
 0x357   :  { %3277 = vmatprep.subr.mxu1 %v2621_v37  ;;  %3636 = vmatprep.subr.mxu0 %v3329_v40  ;;  %v2692_v37 = vld [vmem:[#allocation6 + $0xeb0] sm:$0xff]  ;;  %v3400_v40 = vld [vmem:[#allocation9 + $0x240] sm:$0xff] }
 0x358   :  { %3278 = vmatpush1.msra.mxu1 %v2620_v59  ;;  %3637 = vmatpush1.msra.mxu0 %v3328_v60  ;;  %v3401_v56 = vld [vmem:[#allocation9 + $0x248] sm:$0xff]  ;;  %v2689_v59 = vld [vmem:[#allocation6 + $0xe98] sm:$0xff] }
 0x359   :  { %3279 = vmatprep.subr.mxu1 %v2617_v26  ;;  %3638 = vmatprep.subr.mxu0 %v3453_v3  ;;  %v2688_v26 = vld [vmem:[#allocation6 + $0xe90] sm:$0xff]  ;;  %v3396_v3 = vld [vmem:[#allocation9 + $0x220] sm:$0xff] }
 0x35a   :  { %3280 = vmatpush1.msra.mxu1 %v2616_v0  ;;  %3639 = vmatpush2.msra.mxu0 %v3452_v18  ;;  %v3397_v60 = vld [vmem:[#allocation9 + $0x228] sm:$0xff]  ;;  %v2685_v0 = vld [vmem:[#allocation6 + $0xe78] sm:$0xff] }
 0x35b   :  { %3281 = vmatprep.subr.mxu1 %v2613_v4  ;;  %3640 = vmatprep.subr.mxu0 %v3449_v41  ;;  %v2684_v4 = vld [vmem:[#allocation6 + $0xe70] sm:$0xff]  ;;  %v3392_v41 = vld [vmem:[#allocation9 + $0x200] sm:$0xff] }
 0x35c   :  { %3282 = vmatpush1.msra.mxu1 %v2612_v28  ;;  %3641 = vmatpush2.msra.mxu0 %v3448_v30  ;;  %v3393_v18 = vld [vmem:[#allocation9 + $0x208] sm:$0xff]  ;;  %v2681_v28 = vld [vmem:[#allocation6 + $0xe58] sm:$0xff] }
 0x35d   :  { %3283 = vmatprep.subr.mxu1 %v2609_v54  ;;  %3642 = vmatprep.subr.mxu0 %v3445_v22  ;;  %v2680_v54 = vld [vmem:[#allocation6 + $0xe50] sm:$0xff]  ;;  %v3391_v30 = vld [vmem:[#allocation9 + $0x1f8] sm:$0xff] }
 0x35e   :  { %3284 = vmatpush1.msra.mxu1 %v2608_v17  ;;  %3643 = vmatpush2.msra.mxu0 %v3444_v7  ;;  %v2677_v17 = vld [vmem:[#allocation6 + $0xe38] sm:$0xff]  ;;  %v2676_v22 = vld [vmem:[#allocation6 + $0xe30] sm:$0xff] }
 0x35f   :  { %3285 = vmatprep.subr.mxu1 %v2733_v5  ;;  %3644 = vmatprep.subr.mxu0 %v3441_v14  ;;  %v2673_v5 = vld [vmem:[#allocation6 + $0xe18] sm:$0xff]  ;;  %v2672_v7 = vld [vmem:[#allocation6 + $0xe10] sm:$0xff]  ;;  %v3516_v14 = vld [vmem:[#allocation9 + $0x5e0] sm:$0xff] }
 0x360   :  { %3286 = vmatpush2.msra.mxu1 %v2732_v46  ;;  %3645 = vmatpush2.msra.mxu0 %v3440_v32  ;;  %v3517_v46 = vld [vmem:[#allocation9 + $0x5e8] sm:$0xff]  ;;  %v3512_v32 = vld [vmem:[#allocation9 + $0x5c0] sm:$0xff] }
 0x361   :  { %3287 = vmatprep.subr.mxu1 %v2729_v15  ;;  %3646 = vmatprep.subr.mxu0 %v3437_v12  ;;  %v3513_v15 = vld [vmem:[#allocation9 + $0x5c8] sm:$0xff]  ;;  %v3508_v12 = vld [vmem:[#allocation9 + $0x5a0] sm:$0xff] }
 0x362   :  { %3288 = vmatpush2.msra.mxu1 %v2728_v62  ;;  %3647 = vmatpush2.msra.mxu0 %v3436_v48  ;;  %v3509_v62 = vld [vmem:[#allocation9 + $0x5a8] sm:$0xff]  ;;  %v3504_v48 = vld [vmem:[#allocation9 + $0x580] sm:$0xff] }
 0x363   :  { %3289 = vmatprep.subr.mxu1 %v2725_v44  ;;  %3648 = vmatprep.subr.mxu0 %v3433_v8  ;;  %v3505_v44 = vld [vmem:[#allocation9 + $0x588] sm:$0xff]  ;;  %v3500_v8 = vld [vmem:[#allocation9 + $0x560] sm:$0xff] }
 0x364   :  { %3290 = vmatpush2.msra.mxu1 %v2724_v16  ;;  %3649 = vmatpush2.msra.mxu0 %v3432_v58  ;;  %v3501_v16 = vld [vmem:[#allocation9 + $0x568] sm:$0xff]  ;;  %v3492_v58 = vld [vmem:[#allocation9 + $0x520] sm:$0xff] }
 0x365   :  { %3291 = vmatprep.subr.mxu1 %v2721_v39  ;;  %3650 = vmatprep.subr.mxu0 %v3429_v20  ;;  %v3493_v39 = vld [vmem:[#allocation9 + $0x528] sm:$0xff]  ;;  %v3488_v20 = vld [vmem:[#allocation9 + $0x500] sm:$0xff] }
 0x366   :  { %3292 = vmatpush2.msra.mxu1 %v2720_v19  ;;  %3651 = vmatpush2.msra.mxu0 %v3428_v25  ;;  %v3489_v19 = vld [vmem:[#allocation9 + $0x508] sm:$0xff]  ;;  %v3484_v25 = vld [vmem:[#allocation9 + $0x4e0] sm:$0xff] }
 0x367   :  { %3293 = vmatprep.subr.mxu1 %v2717_v57  ;;  %3652 = vmatprep.subr.mxu0 %v3425_v29  ;;  %v3485_v57 = vld [vmem:[#allocation9 + $0x4e8] sm:$0xff]  ;;  %v3480_v29 = vld [vmem:[#allocation9 + $0x4c0] sm:$0xff] }
 0x368   :  { %3294 = vmatpush2.msra.mxu1 %v2716_v13  ;;  %3653 = vmatpush2.msra.mxu0 %v3424_v11  ;;  %v3481_v13 = vld [vmem:[#allocation9 + $0x4c8] sm:$0xff]  ;;  %v3476_v11 = vld [vmem:[#allocation9 + $0x4a0] sm:$0xff] }
 0x369   :  { %3295 = vmatprep.subr.mxu1 %v2713_v38  ;;  %3654 = vmatprep.subr.mxu0 %v3421_v2  ;;  %v3477_v38 = vld [vmem:[#allocation9 + $0x4a8] sm:$0xff]  ;;  %v3472_v2 = vld [vmem:[#allocation9 + $0x480] sm:$0xff] }
 0x36a   :  { %3296 = vmatpush2.msra.mxu1 %v2712_v63  ;;  %3655 = vmatpush2.msra.mxu0 %v3420_v9  ;;  %v3473_v63 = vld [vmem:[#allocation9 + $0x488] sm:$0xff]  ;;  %v3468_v9 = vld [vmem:[#allocation9 + $0x460] sm:$0xff] }
 0x36b   :  { %3297 = vmatprep.subr.mxu1 %v2709_v31  ;;  %3656 = vmatprep.subr.mxu0 %v3417_v50  ;;  %v3469_v31 = vld [vmem:[#allocation9 + $0x468] sm:$0xff]  ;;  %v3464_v50 = vld [vmem:[#allocation9 + $0x440] sm:$0xff] }
 0x36c   :  { %3298 = vmatpush2.msra.mxu1 %v2708_v34  ;;  %3657 = vmatpush2.msra.mxu0 %v3416_v45  ;;  %v3465_v34 = vld [vmem:[#allocation9 + $0x448] sm:$0xff]  ;;  %v3460_v45 = vld [vmem:[#allocation9 + $0x420] sm:$0xff] }
 0x36d   :  { %3299 = vmatprep.subr.mxu1 %v2705_v36  ;;  %3658 = vmatprep.subr.mxu0 %v3413_v47  ;;  %v3461_v36 = vld [vmem:[#allocation9 + $0x428] sm:$0xff]  ;;  %v3456_v47 = vld [vmem:[#allocation9 + $0x400] sm:$0xff] }
 0x36e   :  { %3300 = vmatpush2.msra.mxu1 %v2704_v1  ;;  %3659 = vmatpush2.msra.mxu0 %v3412_v49  ;;  %v3457_v1 = vld [vmem:[#allocation9 + $0x408] sm:$0xff]  ;;  %v3580_v49 = vld [vmem:[#allocation9 + $0x7e0] sm:$0xff] }
 0x36f   :  { %3301 = vmatprep.subr.mxu1 %v2701_v43  ;;  %3660 = vmatprep.subr.mxu0 %v3409_v6  ;;  %v3581_v43 = vld [vmem:[#allocation9 + $0x7e8] sm:$0xff]  ;;  %v3576_v6 = vld [vmem:[#allocation9 + $0x7c0] sm:$0xff] }
 0x370   :  { %3302 = vmatpush2.msra.mxu1 %v2700_v21  ;;  %3661 = vmatpush2.msra.mxu0 %v3408_v52  ;;  %v3577_v21 = vld [vmem:[#allocation9 + $0x7c8] sm:$0xff]  ;;  %v3572_v52 = vld [vmem:[#allocation9 + $0x7a0] sm:$0xff] }
 0x371   :  { %3303 = vmatprep.subr.mxu1 %v2697_v24  ;;  %3662 = vmatprep.subr.mxu0 %v3405_v61  ;;  %v3573_v24 = vld [vmem:[#allocation9 + $0x7a8] sm:$0xff]  ;;  %v3568_v61 = vld [vmem:[#allocation9 + $0x780] sm:$0xff] }
 0x372   :  { %3304 = vmatpush2.msra.mxu1 %v2696_v53  ;;  %3663 = vmatpush2.msra.mxu0 %v3404_v55  ;;  %v3569_v53 = vld [vmem:[#allocation9 + $0x788] sm:$0xff]  ;;  %v3564_v55 = vld [vmem:[#allocation9 + $0x760] sm:$0xff] }
 0x373   :  { %3305 = vmatprep.subr.mxu1 %v2693_v23  ;;  %3664 = vmatprep.subr.mxu0 %v3401_v56  ;;  %v3565_v23 = vld [vmem:[#allocation9 + $0x768] sm:$0xff]  ;;  %v3560_v56 = vld [vmem:[#allocation9 + $0x740] sm:$0xff] }
 0x374   :  { %3306 = vmatpush2.msra.mxu1 %v2692_v37  ;;  %3665 = vmatpush2.msra.mxu0 %v3400_v40  ;;  %v3561_v37 = vld [vmem:[#allocation9 + $0x748] sm:$0xff]  ;;  %v3556_v40 = vld [vmem:[#allocation9 + $0x720] sm:$0xff] }
 0x375   :  { %3307 = vmatprep.subr.mxu1 %v2689_v59  ;;  %3666 = vmatprep.subr.mxu0 %v3397_v60  ;;  %v3557_v59 = vld [vmem:[#allocation9 + $0x728] sm:$0xff]  ;;  %v4696_v60 = vld [vmem:[#allocation7] sm:$0xf] }
 0x376   :  { %3308 = vmatpush2.msra.mxu1 %v2688_v26  ;;  %3667 = vmatpush2.msra.mxu0 %v3396_v3  ;;  %v3553_v26 = vld [vmem:[#allocation9 + $0x708] sm:$0xff]  ;;  %v2822_v3 = vpop.f32.mrf.mxu0 }
 0x377   :  { %3309 = vmatprep.subr.mxu1 %v2685_v0  ;;  %3668 = vmatprep.subr.mxu0 %v3393_v18  ;;  %v3552_v0 = vld [vmem:[#allocation9 + $0x700] sm:$0xff] }
 0x378   :  { %3310 = vmatpush2.msra.mxu1 %v2684_v4  ;;  %3669 = vmatpush2.msra.mxu0 %v3392_v41  ;;  %v3549_v4 = vld [vmem:[#allocation9 + $0x6e8] sm:$0xff]  ;;  %v3548_v18 = vld [vmem:[#allocation9 + $0x6e0] sm:$0xff] }
 0x379   :  { %3311 = vmatprep.subr.mxu1 %v2681_v28  ;;  %3748 = vmatprep.subr.mxu0 %v3391_v30  ;;  %v2739_v28 = vrot.slane %v4696_v60, %v4532_v10  ;;  %v3545_v41 = vld [vmem:[#allocation9 + $0x6c8] sm:$0xff]  ;;  %v3544_v30 = vld [vmem:[#allocation9 + $0x6c0] sm:$0xff] }
 0x37a   :  { %3312 = vmatpush2.msra.mxu1 %v2680_v54  ;;  %v2743_v54 = vrot.slane %v4696_v60, %v4601_v27 }
 0x37b   :  { %3313 = vmatprep.subr.mxu1 %v2677_v17  ;;  %v2824_v17 = vpop.f32.mrf.mxu0 }
 0x37c   :  { %3314 = vmatpush2.msra.mxu1 %v2676_v22  ;;  %v3541_v22 = vld [vmem:[#allocation9 + $0x6a8] sm:$0xff] }
 0x37d   :  { %3315 = vmatprep.subr.mxu1 %v2673_v5  ;;  %v3540_v5 = vld [vmem:[#allocation9 + $0x6a0] sm:$0xff] }
 0x37e   :  { %3316 = vmatpush2.msra.mxu1 %v2672_v7  ;;  %v2823_v7 = vadd.f32 %v2822_v3, %v2739_v28  ;;  %v3346_v3 = vld [vmem:[#allocation9 + $0x90] sm:$0xff]  ;;  %v3339_v28 = vld [vmem:[#allocation9 + $0x58] sm:$0xff] }
 0x37f   :  { %3318 = vmatmul.mubr.f32.vlgmr.msra.gmra.mxu1 %v2220_v42  ;;  %3677 = vmatprep.subr.mxu1 %v3517_v46  ;;  %v3496_v42 = vld [vmem:[#allocation9 + $0x540] sm:$0xff]  ;;  %v2893_v46 = vpop.f32.mrf.mxu1 }
 0x380   :  { %3678 = vmatpush1.msra.mxu1 %v3516_v14  ;;  %v2964_v14 = vpop.f32.mrf.mxu0 }
 0x381   :  { %3679 = vmatprep.subr.mxu1 %v3513_v15  ;;  %v3537_v15 = vld [vmem:[#allocation9 + $0x688] sm:$0xff] }
 0x382   :  { %3680 = vmatpush1.msra.mxu1 %v3512_v32  ;;  %v2825_v32 = vadd.f32 %v2824_v17, %v2743_v54  ;;  %v3335_v54 = vld [vmem:[#allocation9 + $0x38] sm:$0xff] }
 0x383   :  { %3681 = vmatprep.subr.mxu1 %v3509_v62  ;;  %v3536_v62 = vld [vmem:[#allocation9 + $0x680] sm:$0xff]  ;;  %v3331_v17 = vld [vmem:[#allocation9 + $0x18] sm:$0xff] }
 0x384   :  { %3682 = vmatpush1.msra.mxu1 %v3508_v12  ;;  %v3533_v12 = vld [vmem:[#allocation9 + $0x668] sm:$0xff] }
 0x385   :  { %3683 = vmatprep.subr.mxu1 %v3505_v44  ;;  %v2894_v44 = vadd.f32 %v2893_v46, %v2823_v7  ;;  %v3454_v7 = vld [vmem:[#allocation9 + $0x3f0] sm:$0xff]  ;;  %v3451_v46 = vld [vmem:[#allocation9 + $0x3d8] sm:$0xff] }
 0x386   :  { %3684 = vmatpush1.msra.mxu1 %v3504_v48  ;;  %v2895_v48 = vpop.f32.mrf.mxu1 }
 0x387   :  { %3685 = vmatprep.subr.mxu1 %v3501_v16  ;;  %v2966_v16 = vpop.f32.mrf.mxu0 }
 0x388   :  { %3686 = vmatpush1.msra.mxu1 %v3500_v8  ;;  %v2896_v8 = vadd.f32 %v2895_v48, %v2825_v32  ;;  %v3446_v32 = vld [vmem:[#allocation9 + $0x3b0] sm:$0xff] }
 0x389   :  { %3687 = vmatprep.subr.mxu1 %v3497_v35  ;;  %v2965_v35 = vadd.f32 %v2964_v14, %v2894_v44  ;;  %v3450_v14 = vld [vmem:[#allocation9 + $0x3d0] sm:$0xff]  ;;  %v3439_v44 = vld [vmem:[#allocation9 + $0x378] sm:$0xff] }
 0x38a   :  { %3688 = vmatpush1.msra.mxu1 %v3496_v42  ;;  %v3438_v48 = vld [vmem:[#allocation9 + $0x370] sm:$0xff] }
 0x38b   :  { %3689 = vmatprep.subr.mxu1 %v3493_v39  ;;  %v2967_v39 = vadd.f32 %v2966_v16, %v2896_v8  ;;  %v3435_v16 = vld [vmem:[#allocation9 + $0x358] sm:$0xff]  ;;  %v3434_v8 = vld [vmem:[#allocation9 + $0x350] sm:$0xff] }
 0x38c   :  { %3690 = vmatpush1.msra.mxu1 %v3492_v58  ;;  %v3532_v58 = vld [vmem:[#allocation9 + $0x660] sm:$0xff] }
 0x38d   :  { %3691 = vmatprep.subr.mxu1 %v3489_v19 }
 0x38e   :  { %3692 = vmatpush1.msra.mxu1 %v3488_v20 }
 0x38f   :  { %3693 = vmatprep.subr.mxu1 %v3485_v57  ;;  %v3529_v57 = vld [vmem:[#allocation9 + $0x648] sm:$0xff] }
 0x390   :  { %3694 = vmatpush1.msra.mxu1 %v3484_v25 }
 0x391   :  { %3695 = vmatprep.subr.mxu1 %v3481_v13  ;;  %v3528_v13 = vld [vmem:[#allocation9 + $0x640] sm:$0xff] }
 0x392   :  { %3696 = vmatpush1.msra.mxu1 %v3480_v29  ;;  %v3525_v29 = vld [vmem:[#allocation9 + $0x628] sm:$0xff] }
 0x393   :  { %3697 = vmatprep.subr.mxu1 %v3477_v38 }
 0x394   :  { %3698 = vmatpush1.msra.mxu1 %v3476_v11  ;;  %v3524_v11 = vld [vmem:[#allocation9 + $0x620] sm:$0xff] }
 0x395   :  { %3699 = vmatprep.subr.mxu1 %v3473_v63 }
 0x396   :  { %3700 = vmatpush1.msra.mxu1 %v3472_v2  ;;  %v3390_v2 = vld [vmem:[#allocation9 + $0x1f0] sm:$0xff] }
 0x397   :  { %3701 = vmatprep.subr.mxu1 %v3469_v31  ;;  %v3521_v31 = vld [vmem:[#allocation9 + $0x608] sm:$0xff] }
 0x398   :  { %3702 = vmatpush1.msra.mxu1 %v3468_v9  ;;  %v3520_v9 = vld [vmem:[#allocation9 + $0x600] sm:$0xff] }
 0x399   :  { %3703 = vmatprep.subr.mxu1 %v3465_v34  ;;  %v3387_v34 = vld [vmem:[#allocation9 + $0x1d8] sm:$0xff] }
 0x39a   :  { %3704 = vmatpush1.msra.mxu1 %v3464_v50  ;;  %v3386_v50 = vld [vmem:[#allocation9 + $0x1d0] sm:$0xff] }
 0x39b   :  { %3705 = vmatprep.subr.mxu1 %v3461_v36  ;;  %v3519_v36 = vld [vmem:[#allocation9 + $0x5f8] sm:$0xff] }
 0x39c   :  { %3706 = vmatpush1.msra.mxu1 %v3460_v45  ;;  %v3383_v45 = vld [vmem:[#allocation9 + $0x1b8] sm:$0xff] }
 0x39d   :  { %3707 = vmatprep.subr.mxu1 %v3457_v1  ;;  %v3382_v1 = vld [vmem:[#allocation9 + $0x1b0] sm:$0xff] }
 0x39e   :  { %3708 = vmatpush1.msra.mxu1 %v3456_v47  ;;  %v3379_v47 = vld [vmem:[#allocation9 + $0x198] sm:$0xff] }
 0x39f   :  { %3709 = vmatprep.subr.mxu1 %v3581_v43  ;;  %v3378_v43 = vld [vmem:[#allocation9 + $0x190] sm:$0xff] }
 0x3a0   :  { %3710 = vmatpush2.msra.mxu1 %v3580_v49  ;;  %v3375_v49 = vld [vmem:[#allocation9 + $0x178] sm:$0xff] }
 0x3a1   :  { %3711 = vmatprep.subr.mxu1 %v3577_v21  ;;  %v3374_v21 = vld [vmem:[#allocation9 + $0x170] sm:$0xff] }
 0x3a2   :  { %3712 = vmatpush2.msra.mxu1 %v3576_v6  ;;  %v3371_v6 = vld [vmem:[#allocation9 + $0x158] sm:$0xff] }
 0x3a3   :  { %3713 = vmatprep.subr.mxu1 %v3573_v24  ;;  %v3370_v24 = vld [vmem:[#allocation9 + $0x150] sm:$0xff] }
 0x3a4   :  { %3714 = vmatpush2.msra.mxu1 %v3572_v52  ;;  %v3367_v52 = vld [vmem:[#allocation9 + $0x138] sm:$0xff] }
 0x3a5   :  { %3715 = vmatprep.subr.mxu1 %v3569_v53  ;;  %v3366_v53 = vld [vmem:[#allocation9 + $0x130] sm:$0xff] }
 0x3a6   :  { %3716 = vmatpush2.msra.mxu1 %v3568_v61  ;;  %v3363_v61 = vld [vmem:[#allocation9 + $0x118] sm:$0xff] }
 0x3a7   :  { %3717 = vmatprep.subr.mxu1 %v3565_v23  ;;  %v3362_v23 = vld [vmem:[#allocation9 + $0x110] sm:$0xff] }
 0x3a8   :  { %3718 = vmatpush2.msra.mxu1 %v3564_v55  ;;  %v3359_v55 = vld [vmem:[#allocation9 + $0xf8] sm:$0xff] }
 0x3a9   :  { %3719 = vmatprep.subr.mxu1 %v3561_v37  ;;  %v3358_v37 = vld [vmem:[#allocation9 + $0xf0] sm:$0xff] }
 0x3aa   :  { %3720 = vmatpush2.msra.mxu1 %v3560_v56  ;;  %v3355_v56 = vld [vmem:[#allocation9 + $0xd8] sm:$0xff] }
 0x3ab   :  { %3721 = vmatprep.subr.mxu1 %v3557_v59  ;;  %v3354_v59 = vld [vmem:[#allocation9 + $0xd0] sm:$0xff] }
 0x3ac   :  { %3722 = vmatpush2.msra.mxu1 %v3556_v40  ;;  %v3351_v40 = vld [vmem:[#allocation9 + $0xb8] sm:$0xff] }
 0x3ad   :  { %3723 = vmatprep.subr.mxu1 %v3553_v26  ;;  %v3350_v26 = vld [vmem:[#allocation9 + $0xb0] sm:$0xff] }
 0x3ae   :  { %3724 = vmatpush2.msra.mxu1 %v3552_v0  ;;  %v3347_v0 = vld [vmem:[#allocation9 + $0x98] sm:$0xff] }
 0x3af   :  { %3725 = vmatprep.subr.mxu1 %v3549_v4  ;;  %v3343_v4 = vld [vmem:[#allocation9 + $0x78] sm:$0xff] }
 0x3b0   :  { %3726 = vmatpush2.msra.mxu1 %v3548_v18  ;;  %v3342_v18 = vld [vmem:[#allocation9 + $0x70] sm:$0xff] }
 0x3b1   :  { %3727 = vmatprep.subr.mxu1 %v3545_v41  ;;  %v3338_v41 = vld [vmem:[#allocation9 + $0x50] sm:$0xff] }
 0x3b2   :  { %3728 = vmatpush2.msra.mxu1 %v3544_v30  ;;  %v3334_v30 = vld [vmem:[#allocation9 + $0x30] sm:$0xff] }
 0x3b3   :  { %3729 = vmatprep.subr.mxu1 %v3541_v22  ;;  %v3330_v22 = vld [vmem:[#allocation9 + $0x10] sm:$0xff] }
 0x3b4   :  { %3730 = vmatpush2.msra.mxu1 %v3540_v5  ;;  %v3455_v5 = vld [vmem:[#allocation9 + $0x3f8] sm:$0xff] }
 0x3b5   :  { %3731 = vmatprep.subr.mxu1 %v3537_v15  ;;  %v3447_v15 = vld [vmem:[#allocation9 + $0x3b8] sm:$0xff] }
 0x3b6   :  { %3732 = vmatpush2.msra.mxu1 %v3536_v62  ;;  %v3443_v62 = vld [vmem:[#allocation9 + $0x398] sm:$0xff] }
 0x3b7   :  { %3733 = vmatprep.subr.mxu1 %v3533_v12  ;;  %v3442_v12 = vld [vmem:[#allocation9 + $0x390] sm:$0xff] }
 0x3b8   :  { %3734 = vmatpush2.msra.mxu1 %v3532_v58  ;;  %v3426_v58 = vld [vmem:[#allocation9 + $0x310] sm:$0xff] }
 0x3b9   :  { %3735 = vmatprep.subr.mxu1 %v3529_v57  ;;  %v3422_v57 = vld [vmem:[#allocation9 + $0x2f0] sm:$0xff] }
 0x3ba   :  { %3736 = vmatpush2.msra.mxu1 %v3528_v13  ;;  %v3418_v13 = vld [vmem:[#allocation9 + $0x2d0] sm:$0xff] }
 0x3bb   :  { %3737 = vmatprep.subr.mxu1 %v3525_v29  ;;  %v3415_v29 = vld [vmem:[#allocation9 + $0x2b8] sm:$0xff] }
 0x3bc   :  { %3738 = vmatpush2.msra.mxu1 %v3524_v11  ;;  %v3411_v11 = vld [vmem:[#allocation9 + $0x298] sm:$0xff] }
 0x3bd   :  { %v3035_v42 = vpop.f32.mrf.mxu1  ;;  %3739 = vmatprep.subr.mxu1 %v3521_v31  ;;  %v3407_v31 = vld [vmem:[#allocation9 + $0x278] sm:$0xff] }
 0x3be   :  { %v4702_v19 = vadd.f32 %v3035_v42, %v2965_v35  ;;  %3740 = vmatpush2.msra.mxu1 %v3520_v9  ;;  %v3431_v35 = vld [vmem:[#allocation9 + $0x338] sm:$0xff]  ;;  %v3430_v42 = vld [vmem:[#allocation9 + $0x330] sm:$0xff] }
 0x3bf   :  { %v3037_v20 = vpop.f32.mrf.mxu1  ;;  %3819 = vmatprep.subr.mxu1 %v3519_v36  ;;  %v3406_v9 = vld [vmem:[#allocation9 + $0x270] sm:$0xff]  ;;  %v3399_v36 = vld [vmem:[#allocation9 + $0x238] sm:$0xff] }
 0x3c0   :  { %v3038_v25 = vadd.f32 %v3037_v20, %v2967_v39  ;;  %v3324_v63 = vmax.f32 %v4702_v19, 0.0  ;;  %v3427_v39 = vld [vmem:[#allocation9 + $0x318] sm:$0xff] }
 0x3c1   :  { %v3423_v20 = vld [vmem:[#allocation9 + $0x2f8] sm:$0xff] }
 0x3c2   :  { %v3325_v38 = vmax.f32 %v3038_v25, 0.0  ;;  %v3419_v25 = vld [vmem:[#allocation9 + $0x2d8] sm:$0xff] }
 0x3c4   :  { %3670 = vmatprep.mubr.f32.mxu0 %v3325_v38 }
 0x3c5   :  { %3671 = vmatmul.mubr.f32.vlgmr.msra.gmra.mxu0 %v3324_v63 }
 0x3c6   :  { %3749 = vmatpush1.msra.mxu0 %v3390_v2  ;;  %3812 = vmatprep.mubr.f32.mxu0 %v3325_v38  ;;  %v3414_v38 = vld [vmem:[#allocation9 + $0x2b0] sm:$0xff] }
 0x3c7   :  { %3750 = vmatprep.subr.mxu0 %v3387_v34  ;;  %v3410_v2 = vld [vmem:[#allocation9 + $0x290] sm:$0xff]  ;;  %v3403_v34 = vld [vmem:[#allocation9 + $0x258] sm:$0xff] }
 0x3c8   :  { %3751 = vmatpush1.msra.mxu0 %v3386_v50  ;;  %v3402_v50 = vld [vmem:[#allocation9 + $0x250] sm:$0xff] }
 0x3c9   :  { %3752 = vmatprep.subr.mxu0 %v3383_v45  ;;  %v3398_v45 = vld [vmem:[#allocation9 + $0x230] sm:$0xff] }
 0x3ca   :  { %3753 = vmatpush1.msra.mxu0 %v3382_v1  ;;  %v3395_v1 = vld [vmem:[#allocation9 + $0x218] sm:$0xff] }
 0x3cb   :  { %3754 = vmatprep.subr.mxu0 %v3379_v47  ;;  %v3394_v47 = vld [vmem:[#allocation9 + $0x210] sm:$0xff] }
 0x3cc   :  { %3755 = vmatpush1.msra.mxu0 %v3378_v43  ;;  %v3106_v43 = vpop.f32.mrf.mxu0 }
 0x3cd   :  { %3756 = vmatprep.subr.mxu0 %v3375_v49  ;;  %v2747_v49 = vrot.slane %v4696_v60, %v4573_v51 }
 0x3ce   :  { %3757 = vmatpush1.msra.mxu0 %v3374_v21 }
 0x3cf   :  { %3758 = vmatprep.subr.mxu0 %v3371_v6  ;;  %v2751_v6 = vrot.slane %v4696_v60, %v4604_v33  ;;  %v3515_v60 = vld [vmem:[#allocation9 + $0x5d8] sm:$0xff] }
 0x3d0   :  { %3759 = vmatpush1.msra.mxu0 %v3370_v24  ;;  %v3108_v24 = vpop.f32.mrf.mxu0 }
 0x3d1   :  { %3760 = vmatprep.subr.mxu0 %v3367_v52  ;;  %v3107_v52 = vadd.f32 %v3106_v43, %v2747_v49  ;;  %v3475_v43 = vld [vmem:[#allocation9 + $0x498] sm:$0xff] }
 0x3d2   :  { %3761 = vmatpush1.msra.mxu0 %v3366_v53  ;;  %v3900_v49 = vld [vmem:[#allocation12 + $0x30] sm:$0xff] }
 0x3d3   :  { %3762 = vmatprep.subr.mxu0 %v3363_v61  ;;  %v3109_v61 = vadd.f32 %v3108_v24, %v2751_v6  ;;  %v3915_v6 = vld [vmem:[#allocation12 + $0xa8] sm:$0xff]  ;;  %v3471_v24 = vld [vmem:[#allocation9 + $0x478] sm:$0xff] }
 0x3d4   :  { %3763 = vmatpush1.msra.mxu0 %v3362_v23 }
 0x3d5   :  { %3764 = vmatprep.subr.mxu0 %v3359_v55 }
 0x3d6   :  { %3765 = vmatpush1.msra.mxu0 %v3358_v37 }
 0x3d7   :  { %3766 = vmatprep.subr.mxu0 %v3355_v56 }
 0x3d8   :  { %3767 = vmatpush1.msra.mxu0 %v3354_v59 }
 0x3d9   :  { %3768 = vmatprep.subr.mxu0 %v3351_v40 }
 0x3da   :  { %3769 = vmatpush1.msra.mxu0 %v3350_v26 }
 0x3db   :  { %3770 = vmatprep.subr.mxu0 %v3347_v0 }
 0x3dc   :  { %3771 = vmatpush1.msra.mxu0 %v3346_v3 }
 0x3dd   :  { %3772 = vmatprep.subr.mxu0 %v3343_v4 }
 0x3de   :  { %3773 = vmatpush1.msra.mxu0 %v3342_v18  ;;  %v3518_v18 = vld [vmem:[#allocation9 + $0x5f0] sm:$0xff] }
 0x3df   :  { %3774 = vmatprep.subr.mxu0 %v3339_v28  ;;  %v3514_v28 = vld [vmem:[#allocation9 + $0x5d0] sm:$0xff] }
 0x3e0   :  { %3775 = vmatpush1.msra.mxu0 %v3338_v41  ;;  %v3511_v41 = vld [vmem:[#allocation9 + $0x5b8] sm:$0xff] }
 0x3e1   :  { %3776 = vmatprep.subr.mxu0 %v3335_v54  ;;  %v3510_v54 = vld [vmem:[#allocation9 + $0x5b0] sm:$0xff] }
 0x3e2   :  { %3777 = vmatpush1.msra.mxu0 %v3334_v30  ;;  %v3925_v30 = vld [vmem:[#allocation12 + $0xf8] sm:$0xff] }
 0x3e3   :  { %3778 = vmatprep.subr.mxu0 %v3331_v17  ;;  %v3909_v17 = vld [vmem:[#allocation12 + $0x78] sm:$0xff] }
 0x3e4   :  { %3779 = vmatpush1.msra.mxu0 %v3330_v22  ;;  %v3924_v22 = vld [vmem:[#allocation12 + $0xf0] sm:$0xff] }
 0x3e5   :  { %3780 = vmatprep.subr.mxu0 %v3455_v5  ;;  %v3507_v5 = vld [vmem:[#allocation9 + $0x598] sm:$0xff] }
 0x3e6   :  { %3781 = vmatpush2.msra.mxu0 %v3454_v7  ;;  %v3908_v7 = vld [vmem:[#allocation12 + $0x70] sm:$0xff] }
 0x3e7   :  { %3782 = vmatprep.subr.mxu0 %v3451_v46  ;;  %v3506_v46 = vld [vmem:[#allocation9 + $0x590] sm:$0xff] }
 0x3e8   :  { %3783 = vmatpush2.msra.mxu0 %v3450_v14  ;;  %v3923_v14 = vld [vmem:[#allocation12 + $0xe8] sm:$0xff] }
 0x3e9   :  { %3784 = vmatprep.subr.mxu0 %v3447_v15  ;;  %v3503_v15 = vld [vmem:[#allocation9 + $0x578] sm:$0xff] }
 0x3ea   :  { %3785 = vmatpush2.msra.mxu0 %v3446_v32  ;;  %v3907_v32 = vld [vmem:[#allocation12 + $0x68] sm:$0xff] }
 0x3eb   :  { %3786 = vmatprep.subr.mxu0 %v3443_v62  ;;  %v3502_v62 = vld [vmem:[#allocation9 + $0x570] sm:$0xff] }
 0x3ec   :  { %3787 = vmatpush2.msra.mxu0 %v3442_v12  ;;  %v3922_v12 = vld [vmem:[#allocation12 + $0xe0] sm:$0xff] }
 0x3ed   :  { %3788 = vmatprep.subr.mxu0 %v3439_v44  ;;  %v3499_v44 = vld [vmem:[#allocation9 + $0x558] sm:$0xff] }
 0x3ee   :  { %3789 = vmatpush2.msra.mxu0 %v3438_v48  ;;  %v3906_v48 = vld [vmem:[#allocation12 + $0x60] sm:$0xff] }
 0x3ef   :  { %3790 = vmatprep.subr.mxu0 %v3435_v16  ;;  %v3498_v16 = vld [vmem:[#allocation9 + $0x550] sm:$0xff] }
 0x3f0   :  { %3791 = vmatpush2.msra.mxu0 %v3434_v8  ;;  %v3921_v8 = vld [vmem:[#allocation12 + $0xd8] sm:$0xff] }
 0x3f1   :  { %3792 = vmatprep.subr.mxu0 %v3431_v35  ;;  %v3495_v35 = vld [vmem:[#allocation9 + $0x538] sm:$0xff] }
 0x3f2   :  { %3793 = vmatpush2.msra.mxu0 %v3430_v42  ;;  %v3905_v42 = vld [vmem:[#allocation12 + $0x58] sm:$0xff] }
 0x3f3   :  { %3794 = vmatprep.subr.mxu0 %v3427_v39  ;;  %v3494_v39 = vld [vmem:[#allocation9 + $0x530] sm:$0xff] }
 0x3f4   :  { %3795 = vmatpush2.msra.mxu0 %v3426_v58  ;;  %v3920_v58 = vld [vmem:[#allocation12 + $0xd0] sm:$0xff] }
 0x3f5   :  { %3796 = vmatprep.subr.mxu0 %v3423_v20  ;;  %v3491_v20 = vld [vmem:[#allocation9 + $0x518] sm:$0xff] }
 0x3f6   :  { %3797 = vmatpush2.msra.mxu0 %v3422_v57  ;;  %v3904_v57 = vld [vmem:[#allocation12 + $0x50] sm:$0xff] }
 0x3f7   :  { %3798 = vmatprep.subr.mxu0 %v3419_v25  ;;  %v3248_v23 = vpop.f32.mrf.mxu0  ;;  %v3490_v25 = vld [vmem:[#allocation9 + $0x510] sm:$0xff] }
 0x3f8   :  { %3799 = vmatpush2.msra.mxu0 %v3418_v13  ;;  %v3919_v13 = vld [vmem:[#allocation12 + $0xc8] sm:$0xff] }
 0x3f9   :  { %3800 = vmatprep.subr.mxu0 %v3415_v29  ;;  %v3250_v56 = vpop.f32.mrf.mxu0  ;;  %v3487_v29 = vld [vmem:[#allocation9 + $0x4f8] sm:$0xff] }
 0x3fa   :  { %3801 = vmatpush2.msra.mxu0 %v3414_v38  ;;  %v3903_v38 = vld [vmem:[#allocation12 + $0x48] sm:$0xff] }
 0x3fb   :  { %3802 = vmatprep.subr.mxu0 %v3411_v11  ;;  %v3486_v11 = vld [vmem:[#allocation9 + $0x4f0] sm:$0xff] }
 0x3fc   :  { %3803 = vmatpush2.msra.mxu0 %v3410_v2  ;;  %v3918_v2 = vld [vmem:[#allocation12 + $0xc0] sm:$0xff] }
 0x3fd   :  { %3804 = vmatprep.subr.mxu0 %v3407_v31  ;;  %v3483_v31 = vld [vmem:[#allocation9 + $0x4d8] sm:$0xff] }
 0x3fe   :  { %3805 = vmatpush2.msra.mxu0 %v3406_v9  ;;  %v3177_v21 = vpop.f32.mrf.mxu1  ;;  %v3902_v9 = vld [vmem:[#allocation12 + $0x40] sm:$0xff] }
 0x3ff   :  { %3806 = vmatprep.subr.mxu0 %v3403_v34  ;;  %v3178_v55 = vadd.f32 %v3177_v21, %v3107_v52  ;;  %v3482_v34 = vld [vmem:[#allocation9 + $0x4d0] sm:$0xff] }
 0x400   :  { %3807 = vmatpush2.msra.mxu0 %v3402_v50  ;;  %v3179_v53 = vpop.f32.mrf.mxu1  ;;  %v3917_v50 = vld [vmem:[#allocation12 + $0xb8] sm:$0xff]  ;;  %v3474_v21 = vld [vmem:[#allocation9 + $0x490] sm:$0xff] }
 0x401   :  { %3808 = vmatprep.subr.mxu0 %v3399_v36  ;;  %v3180_v37 = vadd.f32 %v3179_v53, %v3109_v61  ;;  %v3249_v59 = vadd.f32 %v3248_v23, %v3178_v55  ;;  %v3479_v36 = vld [vmem:[#allocation9 + $0x4b8] sm:$0xff]  ;;  %v3899_v52 = vld [vmem:[#allocation12 + $0x28] sm:$0xff]  ;;  %v3914_v61 = vld [vmem:[#allocation12 + $0xa0] sm:$0xff] }
 0x402   :  { %3809 = vmatpush2.msra.mxu0 %v3398_v45  ;;  %v3901_v45 = vld [vmem:[#allocation12 + $0x38] sm:$0xff]  ;;  %v3470_v53 = vld [vmem:[#allocation9 + $0x470] sm:$0xff]  ;;  %v3898_v55 = vld [vmem:[#allocation12 + $0x20] sm:$0xff] }
 0x403   :  { %3810 = vmatprep.subr.mxu0 %v3395_v1  ;;  %v3251_v19 = vadd.f32 %v3250_v56, %v3180_v37  ;;  %v3478_v1 = vld [vmem:[#allocation9 + $0x4b0] sm:$0xff]  ;;  %v3467_v23 = vld [vmem:[#allocation9 + $0x458] sm:$0xff] }
 0x404   :  { %3811 = vmatpush2.msra.mxu0 %v3394_v47  ;;  %v3916_v47 = vld [vmem:[#allocation12 + $0xb0] sm:$0xff] }
 0x405   :  { %3813 = vmatmul.mubr.f32.vlgmr.msra.gmra.mxu0 %v3324_v63  ;;  %4116 = vmatprep.subr.mxu0 %v3925_v30  ;;  %v3466_v37 = vld [vmem:[#allocation9 + $0x450] sm:$0xff]  ;;  %v3463_v56 = vld [vmem:[#allocation9 + $0x438] sm:$0xff] }
 0x406   :  { %4117 = vmatpush3.msra.mxu0 %v3909_v17  ;;  %v3567_v30 = vld [vmem:[#allocation9 + $0x778] sm:$0xff]  ;;  %v3566_v17 = vld [vmem:[#allocation9 + $0x770] sm:$0xff] }
 0x407   :  { %4118 = vmatprep.subr.mxu0 %v3924_v22  ;;  %v3563_v22 = vld [vmem:[#allocation9 + $0x758] sm:$0xff] }
 0x408   :  { %4119 = vmatpush3.msra.mxu0 %v3908_v7  ;;  %v3559_v7 = vld [vmem:[#allocation9 + $0x738] sm:$0xff] }
 0x409   :  { %4120 = vmatprep.subr.mxu0 %v3923_v14  ;;  %v3555_v14 = vld [vmem:[#allocation9 + $0x718] sm:$0xff] }
 0x40a   :  { %4121 = vmatpush3.msra.mxu0 %v3907_v32  ;;  %v3551_v32 = vld [vmem:[#allocation9 + $0x6f8] sm:$0xff] }
 0x40b   :  { %4122 = vmatprep.subr.mxu0 %v3922_v12  ;;  %v3547_v12 = vld [vmem:[#allocation9 + $0x6d8] sm:$0xff] }
 0x40c   :  { %4123 = vmatpush3.msra.mxu0 %v3906_v48  ;;  %v3543_v48 = vld [vmem:[#allocation9 + $0x6b8] sm:$0xff] }
 0x40d   :  { %4124 = vmatprep.subr.mxu0 %v3921_v8  ;;  %v3539_v8 = vld [vmem:[#allocation9 + $0x698] sm:$0xff] }
 0x40e   :  { %4125 = vmatpush3.msra.mxu0 %v3905_v42  ;;  %v3535_v42 = vld [vmem:[#allocation9 + $0x678] sm:$0xff] }
 0x40f   :  { %4126 = vmatprep.subr.mxu0 %v3920_v58  ;;  %v3531_v58 = vld [vmem:[#allocation9 + $0x658] sm:$0xff] }
 0x410   :  { %4127 = vmatpush3.msra.mxu0 %v3904_v57  ;;  %v3527_v57 = vld [vmem:[#allocation9 + $0x638] sm:$0xff] }
 0x411   :  { %4128 = vmatprep.subr.mxu0 %v3919_v13  ;;  %v3523_v13 = vld [vmem:[#allocation9 + $0x618] sm:$0xff] }
 0x412   :  { %4129 = vmatpush3.msra.mxu0 %v3903_v38  ;;  %v3913_v38 = vld [vmem:[#allocation12 + $0x98] sm:$0xff] }
 0x413   :  { %4130 = vmatprep.subr.mxu0 %v3918_v2  ;;  %v3912_v2 = vld [vmem:[#allocation12 + $0x90] sm:$0xff] }
 0x414   :  { %4131 = vmatpush3.msra.mxu0 %v3902_v9  ;;  %v3911_v9 = vld [vmem:[#allocation12 + $0x88] sm:$0xff] }
 0x415   :  { %4132 = vmatprep.subr.mxu0 %v3917_v50  ;;  %v3910_v50 = vld [vmem:[#allocation12 + $0x80] sm:$0xff] }
 0x416   :  { %4133 = vmatpush3.msra.mxu0 %v3901_v45  ;;  %v3957_v45 = vld [vmem:[#allocation12 + $0x1f8] sm:$0xff] }
 0x417   :  { %4134 = vmatprep.subr.mxu0 %v3916_v47  ;;  %v3955_v47 = vld [vmem:[#allocation12 + $0x1e8] sm:$0xff] }
 0x418   :  { %4135 = vmatpush3.msra.mxu0 %v3900_v49  ;;  %v3954_v49 = vld [vmem:[#allocation12 + $0x1e0] sm:$0xff] }
 0x419   :  { %4136 = vmatprep.subr.mxu0 %v3915_v6  ;;  %v3953_v6 = vld [vmem:[#allocation12 + $0x1d8] sm:$0xff] }
 0x41a   :  { %4137 = vmatpush3.msra.mxu0 %v3899_v52  ;;  %v3952_v52 = vld [vmem:[#allocation12 + $0x1d0] sm:$0xff] }
 0x41b   :  { %4138 = vmatprep.subr.mxu0 %v3914_v61  ;;  %v3951_v61 = vld [vmem:[#allocation12 + $0x1c8] sm:$0xff] }
 0x41c   :  { %4139 = vmatpush3.msra.mxu0 %v3898_v55  ;;  %v3950_v55 = vld [vmem:[#allocation12 + $0x1c0] sm:$0xff] }
 0x41d   :  { %4140 = vmatprep.subr.mxu0 %v3913_v38 }
 0x43f   :  { %v3319_v40 = vpop.f32.mrf.mxu1 }
 0x440   :  { %v4713_v63 = vadd.f32 %v3319_v40, %v3249_v59  ;;  %v3462_v59 = vld [vmem:[#allocation9 + $0x430] sm:$0xff]  ;;  %v3459_v40 = vld [vmem:[#allocation9 + $0x418] sm:$0xff] }
 0x441   :  { %v3321_v26 = vpop.f32.mrf.mxu1 }
 0x442   :  { %v3322_v0 = vadd.f32 %v3321_v26, %v3251_v19  ;;  %v3326_v4 = vmax.f32 %v4713_v63, 0.0  ;;  %v3458_v19 = vld [vmem:[#allocation9 + $0x410] sm:$0xff]  ;;  %v3583_v26 = vld [vmem:[#allocation9 + $0x7f8] sm:$0xff] }
 0x443   :  { %v3956_v63 = vld [vmem:[#allocation12 + $0x1f0] sm:$0xff] }
 0x444   :  { %v3327_v3 = vmax.f32 %v3322_v0, 0.0  ;;  %v3582_v0 = vld [vmem:[#allocation9 + $0x7f0] sm:$0xff] }
 0x446   :  { %3741 = vmatprep.mubr.f32.mxu1 %v3327_v3 }
 0x447   :  { %3742 = vmatmul.mubr.f32.vlgmr.msra.gmra.mxu1 %v3326_v4 }
 0x448   :  { %3820 = vmatpush1.msra.mxu1 %v3518_v18  ;;  %3883 = vmatprep.mubr.f32.mxu1 %v3327_v3  ;;  %v3579_v3 = vld [vmem:[#allocation9 + $0x7d8] sm:$0xff]  ;;  %v3578_v18 = vld [vmem:[#allocation9 + $0x7d0] sm:$0xff] }
 0x449   :  { %3821 = vmatprep.subr.mxu1 %v3515_v60  ;;  %v3575_v60 = vld [vmem:[#allocation9 + $0x7b8] sm:$0xff] }
 0x44a   :  { %3822 = vmatpush1.msra.mxu1 %v3514_v28  ;;  %v3574_v28 = vld [vmem:[#allocation9 + $0x7b0] sm:$0xff] }
 0x44b   :  { %3823 = vmatprep.subr.mxu1 %v3511_v41  ;;  %v3571_v41 = vld [vmem:[#allocation9 + $0x798] sm:$0xff] }
 0x44c   :  { %3824 = vmatpush1.msra.mxu1 %v3510_v54  ;;  %v3570_v54 = vld [vmem:[#allocation9 + $0x790] sm:$0xff] }
 0x44d   :  { %3825 = vmatprep.subr.mxu1 %v3507_v5  ;;  %v3562_v5 = vld [vmem:[#allocation9 + $0x750] sm:$0xff] }
 0x44e   :  { %3826 = vmatpush1.msra.mxu1 %v3506_v46  ;;  %v3558_v46 = vld [vmem:[#allocation9 + $0x730] sm:$0xff] }
 0x44f   :  { %3827 = vmatprep.subr.mxu1 %v3503_v15  ;;  %v3554_v15 = vld [vmem:[#allocation9 + $0x710] sm:$0xff] }
 0x450   :  { %3828 = vmatpush1.msra.mxu1 %v3502_v62  ;;  %v3550_v62 = vld [vmem:[#allocation9 + $0x6f0] sm:$0xff] }
 0x451   :  { %3829 = vmatprep.subr.mxu1 %v3499_v44  ;;  %v3546_v44 = vld [vmem:[#allocation9 + $0x6d0] sm:$0xff] }
 0x452   :  { %3830 = vmatpush1.msra.mxu1 %v3498_v16  ;;  %v3542_v16 = vld [vmem:[#allocation9 + $0x6b0] sm:$0xff] }
 0x453   :  { %3831 = vmatprep.subr.mxu1 %v3495_v35  ;;  %v3538_v35 = vld [vmem:[#allocation9 + $0x690] sm:$0xff] }
 0x454   :  { %3832 = vmatpush1.msra.mxu1 %v3494_v39  ;;  %v3534_v39 = vld [vmem:[#allocation9 + $0x670] sm:$0xff] }
 0x455   :  { %3833 = vmatprep.subr.mxu1 %v3491_v20  ;;  %v3530_v20 = vld [vmem:[#allocation9 + $0x650] sm:$0xff] }
 0x456   :  { %3834 = vmatpush1.msra.mxu1 %v3490_v25  ;;  %v3526_v25 = vld [vmem:[#allocation9 + $0x630] sm:$0xff] }
 0x457   :  { %3835 = vmatprep.subr.mxu1 %v3487_v29  ;;  %v3522_v29 = vld [vmem:[#allocation9 + $0x610] sm:$0xff] }
 0x458   :  { %3836 = vmatpush1.msra.mxu1 %v3486_v11  ;;  %v3897_v11 = vld [vmem:[#allocation12 + $0x18] sm:$0xff] }
 0x459   :  { %3837 = vmatprep.subr.mxu1 %v3483_v31  ;;  %4141 = vmatpush3.msra.mxu0 %v3897_v11  ;;  %v3896_v31 = vld [vmem:[#allocation12 + $0x10] sm:$0xff] }
 0x45a   :  { %3838 = vmatpush1.msra.mxu1 %v3482_v34  ;;  %4142 = vmatprep.subr.mxu0 %v3912_v2  ;;  %v3895_v34 = vld [vmem:[#allocation12 + $0x8] sm:$0xff] }
 0x45b   :  { %3839 = vmatprep.subr.mxu1 %v3479_v36  ;;  %4143 = vmatpush3.msra.mxu0 %v3896_v31  ;;  %v3894_v36 = vld [vmem:[#allocation12] sm:$0xff] }
 0x45c   :  { %3840 = vmatpush1.msra.mxu1 %v3478_v1  ;;  %4144 = vmatprep.subr.mxu0 %v3911_v9  ;;  %v3941_v1 = vld [vmem:[#allocation12 + $0x178] sm:$0xff] }
 0x45d   :  { %3841 = vmatprep.subr.mxu1 %v3475_v43  ;;  %4145 = vmatpush3.msra.mxu0 %v3895_v34  ;;  %v3939_v43 = vld [vmem:[#allocation12 + $0x168] sm:$0xff] }
 0x45e   :  { %3842 = vmatpush1.msra.mxu1 %v3474_v21  ;;  %4146 = vmatprep.subr.mxu0 %v3910_v50  ;;  %v3938_v21 = vld [vmem:[#allocation12 + $0x160] sm:$0xff] }
 0x45f   :  { %3843 = vmatprep.subr.mxu1 %v3471_v24  ;;  %4147 = vmatpush3.msra.mxu0 %v3894_v36  ;;  %v3937_v24 = vld [vmem:[#allocation12 + $0x158] sm:$0xff]  ;;  %v4115_v50 = vld [vmem:[#allocation13] ss:$0 sm:$0xff] }
 0x460   :  { %3844 = vmatpush1.msra.mxu1 %v3470_v53  ;;  %v3936_v53 = vld [vmem:[#allocation12 + $0x150] sm:$0xff] }
 0x461   :  { %3845 = vmatprep.subr.mxu1 %v3467_v23  ;;  %v3935_v23 = vld [vmem:[#allocation12 + $0x148] sm:$0xff] }
 0x462   :  { %3846 = vmatpush1.msra.mxu1 %v3466_v37  ;;  %v3934_v37 = vld [vmem:[#allocation12 + $0x140] sm:$0xff] }
 0x463   :  { %3847 = vmatprep.subr.mxu1 %v3463_v56  ;;  %v3949_v56 = vld [vmem:[#allocation12 + $0x1b8] sm:$0xff] }
 0x464   :  { %3848 = vmatpush1.msra.mxu1 %v3462_v59  ;;  %v3933_v59 = vld [vmem:[#allocation12 + $0x138] sm:$0xff] }
 0x465   :  { %3849 = vmatprep.subr.mxu1 %v3459_v40  ;;  %v3948_v40 = vld [vmem:[#allocation12 + $0x1b0] sm:$0xff] }
 0x466   :  { %3850 = vmatpush1.msra.mxu1 %v3458_v19  ;;  %v3932_v19 = vld [vmem:[#allocation12 + $0x130] sm:$0xff] }
 0x467   :  { %3851 = vmatprep.subr.mxu1 %v3583_v26  ;;  %v3947_v26 = vld [vmem:[#allocation12 + $0x1a8] sm:$0xff] }
 0x468   :  { %3852 = vmatpush2.msra.mxu1 %v3582_v0  ;;  %v3931_v0 = vld [vmem:[#allocation12 + $0x128] sm:$0xff] }
 0x469   :  { %3853 = vmatprep.subr.mxu1 %v3579_v3  ;;  %v3946_v3 = vld [vmem:[#allocation12 + $0x1a0] sm:$0xff] }
 0x46a   :  { %3854 = vmatpush2.msra.mxu1 %v3578_v18  ;;  %v3930_v18 = vld [vmem:[#allocation12 + $0x120] sm:$0xff] }
 0x46b   :  { %3855 = vmatprep.subr.mxu1 %v3575_v60  ;;  %v3945_v60 = vld [vmem:[#allocation12 + $0x198] sm:$0xff] }
 0x46c   :  { %3856 = vmatpush2.msra.mxu1 %v3574_v28  ;;  %v3929_v28 = vld [vmem:[#allocation12 + $0x118] sm:$0xff] }
 0x46d   :  { %3857 = vmatprep.subr.mxu1 %v3571_v41  ;;  %v3944_v41 = vld [vmem:[#allocation12 + $0x190] sm:$0xff] }
 0x46e   :  { %3858 = vmatpush2.msra.mxu1 %v3570_v54  ;;  %v3928_v54 = vld [vmem:[#allocation12 + $0x110] sm:$0xff] }
 0x46f   :  { %3859 = vmatprep.subr.mxu1 %v3567_v30  ;;  %v3943_v30 = vld [vmem:[#allocation12 + $0x188] sm:$0xff] }
 0x470   :  { %3860 = vmatpush2.msra.mxu1 %v3566_v17  ;;  %v3927_v17 = vld [vmem:[#allocation12 + $0x108] sm:$0xff] }
 0x471   :  { %3861 = vmatprep.subr.mxu1 %v3563_v22  ;;  %v3942_v22 = vld [vmem:[#allocation12 + $0x180] sm:$0xff] }
 0x472   :  { %3862 = vmatpush2.msra.mxu1 %v3562_v5  ;;  %v3926_v5 = vld [vmem:[#allocation12 + $0x100] sm:$0xff] }
 0x473   :  { %3863 = vmatprep.subr.mxu1 %v3559_v7  ;;  %v3584_v7 = vld [vmem:[#allocation10] sm:$0xf] }
 0x474   :  { %3864 = vmatpush2.msra.mxu1 %v3558_v46 }
 0x475   :  { %3865 = vmatprep.subr.mxu1 %v3555_v14  ;;  %v3589_v14 = vrot.slane %v3584_v7, %v4532_v10 }
 0x476   :  { %3866 = vmatpush2.msra.mxu1 %v3554_v15  ;;  %v3593_v15 = vrot.slane %v3584_v7, %v4601_v27 }
 0x477   :  { %3867 = vmatprep.subr.mxu1 %v3551_v32 }
 0x478   :  { %3868 = vmatpush2.msra.mxu1 %v3550_v62 }
 0x479   :  { %3869 = vmatprep.subr.mxu1 %v3547_v12 }
 0x47a   :  { %3870 = vmatpush2.msra.mxu1 %v3546_v44 }
 0x47b   :  { %3871 = vmatprep.subr.mxu1 %v3543_v48 }
 0x47c   :  { %3872 = vmatpush2.msra.mxu1 %v3542_v16 }
 0x47d   :  { %3873 = vmatprep.subr.mxu1 %v3539_v8 }
 0x47e   :  { %3874 = vmatpush2.msra.mxu1 %v3538_v35 }
 0x47f   :  { %3875 = vmatprep.subr.mxu1 %v3535_v42 }
 0x480   :  { %3876 = vmatpush2.msra.mxu1 %v3534_v39 }
 0x481   :  { %3877 = vmatprep.subr.mxu1 %v3531_v58  ;;  %v3597_v58 = vrot.slane %v3584_v7, %v4573_v51 }
 0x482   :  { %3878 = vmatpush2.msra.mxu1 %v3530_v20  ;;  %v3601_v20 = vrot.slane %v3584_v7, %v4604_v33 }
 0x483   :  { %3879 = vmatprep.subr.mxu1 %v3527_v57 }
 0x484   :  { %3880 = vmatpush2.msra.mxu1 %v3526_v25 }
 0x485   :  { %3881 = vmatprep.subr.mxu1 %v3523_v13  ;;  %v3672_v46 = vpop.f32.mrf.mxu0 }
 0x486   :  { %3882 = vmatpush2.msra.mxu1 %v3522_v29  ;;  %v3673_v62 = vadd.f32 %v3672_v46, %v3589_v14 }
 0x487   :  { %3884 = vmatmul.mubr.f32.vlgmr.msra.gmra.mxu1 %v3326_v4  ;;  %4151 = vmatprep.subr.mxu1 %v3957_v45  ;;  %v3940_v4 = vld [vmem:[#allocation12 + $0x170] sm:$0xff]  ;;  %v3674_v32 = vpop.f32.mrf.mxu0 }
 0x488   :  { %4152 = vmatpush3.msra.mxu1 %v3941_v1  ;;  %v3675_v44 = vadd.f32 %v3674_v32, %v3593_v15 }
 0x489   :  { %4153 = vmatprep.subr.mxu1 %v3956_v63 }
 0x48a   :  { %4154 = vmatpush3.msra.mxu1 %v3940_v4 }
 0x48b   :  { %4155 = vmatprep.subr.mxu1 %v3955_v47 }
 0x48c   :  { %4156 = vmatpush3.msra.mxu1 %v3939_v43 }
 0x48d   :  { %4157 = vmatprep.subr.mxu1 %v3954_v49 }
 0x48e   :  { %4158 = vmatpush3.msra.mxu1 %v3938_v21 }
 0x48f   :  { %4159 = vmatprep.subr.mxu1 %v3953_v6 }
 0x490   :  { %4160 = vmatpush3.msra.mxu1 %v3937_v24 }
 0x491   :  { %4161 = vmatprep.subr.mxu1 %v3952_v52 }
 0x492   :  { %4162 = vmatpush3.msra.mxu1 %v3936_v53 }
 0x493   :  { %4163 = vmatprep.subr.mxu1 %v3951_v61 }
 0x494   :  { %4164 = vmatpush3.msra.mxu1 %v3935_v23 }
 0x495   :  { %4165 = vmatprep.subr.mxu1 %v3950_v55 }
 0x496   :  { %4166 = vmatpush3.msra.mxu1 %v3934_v37 }
 0x497   :  { %4167 = vmatprep.subr.mxu1 %v3949_v56 }
 0x498   :  { %4168 = vmatpush3.msra.mxu1 %v3933_v59 }
 0x499   :  { %4169 = vmatprep.subr.mxu1 %v3948_v40 }
 0x49a   :  { %4170 = vmatpush3.msra.mxu1 %v3932_v19 }
 0x49b   :  { %4171 = vmatprep.subr.mxu1 %v3947_v26 }
 0x49c   :  { %4172 = vmatpush3.msra.mxu1 %v3931_v0 }
 0x49d   :  { %4173 = vmatprep.subr.mxu1 %v3946_v3 }
 0x49e   :  { %4174 = vmatpush3.msra.mxu1 %v3930_v18 }
 0x49f   :  { %4175 = vmatprep.subr.mxu1 %v3945_v60 }
 0x4a0   :  { %4176 = vmatpush3.msra.mxu1 %v3929_v28 }
 0x4a1   :  { %4177 = vmatprep.subr.mxu1 %v3944_v41 }
 0x4a2   :  { %4178 = vmatpush3.msra.mxu1 %v3928_v54 }
 0x4a3   :  { %4179 = vmatprep.subr.mxu1 %v3943_v30 }
 0x4a4   :  { %4180 = vmatpush3.msra.mxu1 %v3927_v17 }
 0x4a5   :  { %4181 = vmatprep.subr.mxu1 %v3942_v22 }
 0x4a6   :  { %4182 = vmatpush3.msra.mxu1 %v3926_v5 }
 0x4c5   :  { %v3814_v39 = vpop.f32.mrf.mxu0 }
 0x4c6   :  { %v3815_v10 = vadd.f32 %v3814_v39, %v3597_v58 }
 0x4c7   :  { %v3816_v57 = vpop.f32.mrf.mxu0 }
 0x4c8   :  { %v3817_v27 = vadd.f32 %v3816_v57, %v3601_v20 }
 0x507   :  { %v3743_v12 = vpop.f32.mrf.mxu1 }
 0x508   :  { %v3744_v48 = vadd.f32 %v3743_v12, %v3673_v62 }
 0x509   :  { %v3745_v16 = vpop.f32.mrf.mxu1 }
 0x50a   :  { %v3746_v8 = vadd.f32 %v3745_v16, %v3675_v44  ;;  %v3890_v42 = vmax.f32 %v3744_v48, 0.0 }
 0x50c   :  { %v3891_v35 = vmax.f32 %v3746_v8, 0.0 }
 0x50e   :  { %4029 = vmatprep.mubr.f32.mxu0 %v3891_v35 }
 0x50f   :  { %4030 = vmatmul.mubr.f32.vlgmr.msra.gmra.mxu0 %v3890_v42 }
 0x547   :  { %v3885_v25 = vpop.f32.mrf.mxu1 }
 0x548   :  { %v3886_v13 = vadd.f32 %v3885_v25, %v3815_v10 }
 0x549   :  { %v3887_v29 = vpop.f32.mrf.mxu1 }
 0x54a   :  { %v3888_v38 = vadd.f32 %v3887_v29, %v3817_v27  ;;  %v3892_v2 = vmax.f32 %v3886_v13, 0.0 }
 0x54c   :  { %v3893_v11 = vmax.f32 %v3888_v38, 0.0 }
 0x54e   :  { %4099 = vmatprep.mubr.f32.mxu1 %v3893_v11 }
 0x54f   :  { %4100 = vmatmul.mubr.f32.vlgmr.msra.gmra.mxu1 %v3892_v2 }
 0x5cf   :  { %v4148_v31 = vpop.f32.mrf.mxu0 }
 0x5d1   :  { %v4149_v9 = vpop.f32.mrf.mxu0 }
 0x5d2   :  { %v4150_v34 = vadd.f32 %v4149_v9, %v4148_v31 }
 0x5d4   :  { %v4032_v51 = vadd.f32 %v4150_v34, %v4115_v50 }
 0x60f   :  { %v4183_v36 = vpop.f32.mrf.mxu1 }
 0x611   :  { %v4184_v45 = vpop.f32.mrf.mxu1 }
 0x612   :  { %v4185_v1 = vadd.f32 %v4184_v45, %v4183_v36 }
 0x614   :  { %v4102_v33 = vadd.f32 %v4185_v1, %v4032_v51 }
 0x616   :  { %4105 = vst [vmem:[%s4736_s9] sm:$0xff] %v4102_v33 }
 0x617   :  { %4110 = vsyncpa [#allocation3], 1 }
 0x618   :  { %4111 = vsyncpa [#allocation5], 1 }
 0x619   :  { %4112 = vsyncpa [#allocation8], 1 }
 0x61a   :  { %4113 = vsyncpa [#allocation11], 1 }
 0x61b   :  { %4114 = vsyncpa [#allocation14], 1 }

</bundles_post_ra>
